<compile_context>
chip_gen: v5e
topology: v5e:2x2
jax: 0.10.0
libtpu: 0.0.40
codegen_flags: <defaults>
</compile_context>

<pallas_src>
import math

import jax
import jax.numpy as jnp
from jax import lax
from jax.experimental import pallas as pl
from jax.experimental.pallas import tpu as pltpu

# --- small, shape-consistent hyperparameters (module defaults scaled down) ---
D_MODEL = 32          # d_emb == d_model
N_HEAD = 4
D_HEAD = D_MODEL // N_HEAD
D_INNER = 64
N_LAYERS = 2
VOC_SIZE = 50
MAX_LEN = 16
LN_EPS = 1e-5

# order of the stacked weight operands passed to the fused kernel
PACK_KEYS = ("sqkv_w", "sqkv_b", "so_w", "so_b",
             "cq_w", "cq_b", "ckv_w", "ckv_b", "co_w", "co_b",
             "ln_g", "ln_b", "w1", "b1", "w2", "b2")


# ----------------------------- kernel helpers -------------------------------
def _layer_norm(x, g, b):
    mean = jnp.mean(x, axis=-1, keepdims=True)
    var = jnp.mean((x - mean) ** 2, axis=-1, keepdims=True)
    return (x - mean) * lax.rsqrt(var + LN_EPS) * g[None, :] + b[None, :]


def _attend(q, k, v, bias, wo):
    """Multi-head attention core on 2-D operands for a single batch element.

    q: (Tq, D), k/v: (Tk, D), bias: (Tq, Tk) additive mask (0 / -1e9),
    wo: (D, D) output projection.  The per-head output projection is
    accumulated, so there is no lane-axis concatenate over heads.
    """
    scale = 1.0 / math.sqrt(D_HEAD)
    o = jnp.zeros((q.shape[0], D_MODEL), jnp.float32)
    for h in range(N_HEAD):                      # static unrolled head loop
        sl = slice(h * D_HEAD, (h + 1) * D_HEAD)
        qh, kh, vh = q[:, sl], k[:, sl], v[:, sl]
        s = lax.dot_general(qh, kh, (((1,), (1,)), ((), ())),
                            preferred_element_type=jnp.float32) * scale + bias
        s = s - jnp.max(s, axis=-1, keepdims=True)
        p = jnp.exp(s)
        p = p * pl.reciprocal(jnp.sum(p, axis=-1, keepdims=True), approx=True)
        oh = jnp.dot(p, vh, preferred_element_type=jnp.float32)   # (Tq, D_HEAD)
        o = o + jnp.dot(oh, wo[sl, :], preferred_element_type=jnp.float32)
    return o


# ------------------------------- the kernel ---------------------------------
def decoder_kernel(x_ref, mem_ref, trg_mask_ref, src_mask_ref,
                   sqkv_w, sqkv_b, so_w, so_b,
                   cq_w, cq_b, ckv_w, ckv_b, co_w, co_b,
                   ln_g, ln_b, w1, b1, w2, b2,
                   out_ref):
    D = D_MODEL
    x = x_ref[0]                 # (T, D)
    mem = mem_ref[0]             # (S, D)

    # mask -> additive bias, computed once (shared by all heads / all layers)
    trg_bias = jnp.where(trg_mask_ref[...] > 0, 0.0, -1e9)   # (T, T)
    src_bias = jnp.where(src_mask_ref[...] > 0, 0.0, -1e9)   # (T, S)

    for l in range(N_LAYERS):    # static unrolled layer loop, weights in VMEM
        gl = ln_g[l]             # (3, D)
        bl = ln_b[l]             # (3, D)

        # --- masked self-attention (fused QKV projection) + residual + LN ---
        qkv = jnp.dot(x, sqkv_w[l],
                      preferred_element_type=jnp.float32) + sqkv_b[l]  # (T, 3D)
        attn = _attend(qkv[:, 0:D], qkv[:, D:2 * D], qkv[:, 2 * D:3 * D],
                       trg_bias, so_w[l]) + so_b[l]
        x = _layer_norm(attn + x, gl[0], bl[0])

        # --- encoder-decoder attention (fused KV projection) + residual + LN
        q = jnp.dot(x, cq_w[l], preferred_element_type=jnp.float32) + cq_b[l]
        kv = jnp.dot(mem, ckv_w[l],
                     preferred_element_type=jnp.float32) + ckv_b[l]    # (S, 2D)
        attn = _attend(q, kv[:, 0:D], kv[:, D:2 * D],
                       src_bias, co_w[l]) + co_b[l]
        x = _layer_norm(attn + x, gl[1], bl[1])

        # --- position-wise feed-forward + residual + LN ---
        h = jnp.maximum(
            jnp.dot(x, w1[l], preferred_element_type=jnp.float32) + b1[l], 0.0)
        ff = jnp.dot(h, w2[l], preferred_element_type=jnp.float32) + b2[l]
        x = _layer_norm(ff + x, gl[2], bl[2])

    out_ref[0] = x


def decoder_stack(x, mem, trg_mask, src_mask, packed):
    """One pallas_call running the full layer stack; grid only over batch."""
    B, T, D = x.shape
    S = mem.shape[1]
    weights = [packed[k] for k in PACK_KEYS]

    def full_spec(a):
        nd = a.ndim
        return pl.BlockSpec(a.shape, lambda b, _nd=nd: (0,) * _nd)

    in_specs = [
        pl.BlockSpec((1, T, D), lambda b: (b, 0, 0)),   # x
        pl.BlockSpec((1, S, D), lambda b: (b, 0, 0)),   # mem
        pl.BlockSpec((T, T), lambda b: (0, 0)),         # trg_mask (shared)
        pl.BlockSpec((T, S), lambda b: (0, 0)),         # src_mask (shared)
    ] + [full_spec(w) for w in weights]

    grid_spec = pltpu.PrefetchScalarGridSpec(
        num_scalar_prefetch=0,
        grid=(B,),                                      # 2-way parallel (v7x)
        in_specs=in_specs,
        out_specs=pl.BlockSpec((1, T, D), lambda b: (b, 0, 0)),
    )
    return pl.pallas_call(
        decoder_kernel,
        out_shape=jax.ShapeDtypeStruct((B, T, D), jnp.float32),
        grid_spec=grid_spec,
        compiler_params=pltpu.CompilerParams(
            dimension_semantics=("parallel",)),
    )(x, mem, trg_mask, src_mask, *weights)


# ------------------------------ JAX-side glue --------------------------------
def sinusoid_table(max_len, d):
    pos = jnp.arange(max_len, dtype=jnp.float32)[:, None]
    i = jnp.arange(d, dtype=jnp.float32)[None, :]
    angle = pos / jnp.power(10000.0, 2.0 * jnp.floor(i / 2.0) / d)
    even = (jnp.arange(d) % 2 == 0)[None, :]
    return jnp.where(even, jnp.sin(angle), jnp.cos(angle)).astype(jnp.float32)


def init_layer(key):
    ks = jax.random.split(key, 8)
    s = 0.05
    return dict(
        self_w=jax.random.normal(ks[0], (4, D_MODEL, D_MODEL), jnp.float32) * s,
        self_b=jax.random.normal(ks[1], (4, D_MODEL), jnp.float32) * s,
        cross_w=jax.random.normal(ks[2], (4, D_MODEL, D_MODEL), jnp.float32) * s,
        cross_b=jax.random.normal(ks[3], (4, D_MODEL), jnp.float32) * s,
        ln_g=jnp.ones((3, D_MODEL), jnp.float32),
        ln_b=jnp.zeros((3, D_MODEL), jnp.float32),
        w1=jax.random.normal(ks[4], (D_MODEL, D_INNER), jnp.float32) * s,
        b1=jax.random.normal(ks[5], (1, D_INNER), jnp.float32) * s,
        w2=jax.random.normal(ks[6], (D_INNER, D_MODEL), jnp.float32) * s,
        b2=jax.random.normal(ks[7], (1, D_MODEL), jnp.float32) * s,
    )


def pack_params(layer_params):
    """Stack per-layer weights along a leading layer axis and fuse Q|K|V."""
    def stack(fn):
        return jnp.stack([fn(p) for p in layer_params], axis=0)

    return dict(
        sqkv_w=stack(lambda p: jnp.concatenate(
            [p["self_w"][0], p["self_w"][1], p["self_w"][2]], axis=1)),
        sqkv_b=stack(lambda p: jnp.concatenate(
            [p["self_b"][0], p["self_b"][1], p["self_b"][2]])[None, :]),
        so_w=stack(lambda p: p["self_w"][3]),
        so_b=stack(lambda p: p["self_b"][3][None, :]),
        cq_w=stack(lambda p: p["cross_w"][0]),
        cq_b=stack(lambda p: p["cross_b"][0][None, :]),
        ckv_w=stack(lambda p: jnp.concatenate(
            [p["cross_w"][1], p["cross_w"][2]], axis=1)),
        ckv_b=stack(lambda p: jnp.concatenate(
            [p["cross_b"][1], p["cross_b"][2]])[None, :]),
        co_w=stack(lambda p: p["cross_w"][3]),
        co_b=stack(lambda p: p["cross_b"][3][None, :]),
        ln_g=stack(lambda p: p["ln_g"]),
        ln_b=stack(lambda p: p["ln_b"]),
        w1=stack(lambda p: p["w1"]),
        b1=stack(lambda p: p["b1"]),
        w2=stack(lambda p: p["w2"]),
        b2=stack(lambda p: p["b2"]),
    )


def decoder_forward(tokens, mem, emb_table, pos_table, packed,
                    trg_mask, src_mask):
    # TODO(synk): `atn_mask` usage inside the original DecoderLayer is not
    # specified in the reference source; only trg_mask / src_mask are applied.
    T = tokens.shape[1]
    x = pos_table[None, :T, :] + emb_table[tokens]   # posit_emb(x) + token_emb(x)
    return decoder_stack(x, mem, trg_mask, src_mask, packed)


# --------------------------- pure-JAX reference ------------------------------
def _ref_layer(x, mem, trg_mask, src_mask, p):
    def mha(q_in, kv_in, mask, w, b):
        q = q_in @ w[0] + b[0]
        k = kv_in @ w[1] + b[1]
        v = kv_in @ w[2] + b[2]
        B, Tq, D = q.shape
        Tk = k.shape[1]
        qh = q.reshape(B, Tq, N_HEAD, D_HEAD).transpose(0, 2, 1, 3)
        kh = k.reshape(B, Tk, N_HEAD, D_HEAD).transpose(0, 2, 1, 3)
        vh = v.reshape(B, Tk, N_HEAD, D_HEAD).transpose(0, 2, 1, 3)
        s = jnp.einsum('bhqd,bhkd->bhqk', qh, kh) / math.sqrt(D_HEAD)
        s = jnp.where(mask > 0, s, -1e9)          # (Tq,Tk) broadcasts over (B,H)
        a = jax.nn.softmax(s, axis=-1)
        o = jnp.einsum('bhqk,bhkd->bhqd', a, vh).transpose(0, 2, 1, 3).reshape(B, Tq, D)
        return o @ w[3] + b[3]

    def ln(x, g, b):
        m = x.mean(-1, keepdims=True)
        v = ((x - m) ** 2).mean(-1, keepdims=True)
        return (x - m) / jnp.sqrt(v + LN_EPS) * g + b

    x = ln(mha(x, x, trg_mask, p['self_w'], p['self_b']) + x,
           p['ln_g'][0], p['ln_b'][0])
    x = ln(mha(x, mem, src_mask, p['cross_w'], p['cross_b']) + x,
           p['ln_g'][1], p['ln_b'][1])
    h = jax.nn.relu(x @ p['w1'] + p['b1'])
    x = ln(h @ p['w2'] + p['b2'] + x, p['ln_g'][2], p['ln_b'][2])
    return x


# ---------------------------------- main -------------------------------------
if __name__ == "__main__":
    key = jax.random.PRNGKey(0)
    keys = jax.random.split(key, 3 + N_LAYERS)
    k_emb, k_mem, k_tok = keys[0], keys[1], keys[2]
    k_layers = keys[3:]

    B, T, S = 2, 8, 8
    emb_table = jax.random.normal(k_emb, (VOC_SIZE, D_MODEL), jnp.float32) * 0.1
    emb_table = emb_table.at[0].set(0.0)          # padding_idx = 0
    pos_table = sinusoid_table(MAX_LEN, D_MODEL)

    tokens = jax.random.randint(k_tok, (B, T), 0, VOC_SIZE, dtype=jnp.int32)
    mem = jax.random.normal(k_mem, (B, S, D_MODEL), jnp.float32)
    layer_params = [init_layer(k) for k in k_layers]
    packed = pack_params(layer_params)

    # masks are batch-uniform -> pass once, no per-batch tiling
    trg_mask = jnp.tril(jnp.ones((T, T), jnp.float32))   # causal
    src_mask = jnp.ones((T, S), jnp.float32)

    out = decoder_forward(tokens, mem, emb_table, pos_table, packed,
                          trg_mask, src_mask)
    out = jax.block_until_ready(out)

    # correctness check against a pure-JAX reference of the same math
    # (tolerance accounts for the EUP approximate-reciprocal softmax denom)
    x_ref = pos_table[None, :T, :] + emb_table[tokens]
    for p in layer_params:
        x_ref = _ref_layer(x_ref, mem, trg_mask, src_mask, p)
    assert out.shape == (B, T, D_MODEL)
    assert jnp.allclose(out, x_ref, atol=2e-3, rtol=2e-3), "mismatch vs reference"

    print("KERNEL_OK")
</pallas_src>

<mosaic_0001>
module attributes {stable_mosaic.version = 11 : i64} {
  func.func @decoder_kernel(%arg0: i32, %arg1: memref<1x8x32xf32, #tpu.memory_space<vmem>>, %arg2: memref<1x8x32xf32, #tpu.memory_space<vmem>>, %arg3: memref<8x8xf32, #tpu.memory_space<vmem>>, %arg4: memref<8x8xf32, #tpu.memory_space<vmem>>, %arg5: memref<2x32x96xf32, #tpu.memory_space<vmem>>, %arg6: memref<2x1x96xf32, #tpu.memory_space<vmem>>, %arg7: memref<2x32x32xf32, #tpu.memory_space<vmem>>, %arg8: memref<2x1x32xf32, #tpu.memory_space<vmem>>, %arg9: memref<2x32x32xf32, #tpu.memory_space<vmem>>, %arg10: memref<2x1x32xf32, #tpu.memory_space<vmem>>, %arg11: memref<2x32x64xf32, #tpu.memory_space<vmem>>, %arg12: memref<2x1x64xf32, #tpu.memory_space<vmem>>, %arg13: memref<2x32x32xf32, #tpu.memory_space<vmem>>, %arg14: memref<2x1x32xf32, #tpu.memory_space<vmem>>, %arg15: memref<2x3x32xf32, #tpu.memory_space<vmem>>, %arg16: memref<2x3x32xf32, #tpu.memory_space<vmem>>, %arg17: memref<2x32x64xf32, #tpu.memory_space<vmem>>, %arg18: memref<2x1x64xf32, #tpu.memory_space<vmem>>, %arg19: memref<2x64x32xf32, #tpu.memory_space<vmem>>, %arg20: memref<2x1x32xf32, #tpu.memory_space<vmem>>, %arg21: memref<1x8x32xf32, #tpu.memory_space<vmem>>) attributes {dimension_semantics = [#tpu.dimension_semantics<parallel>], iteration_bounds = array<i64: 2>, scalar_prefetch = 0 : i64, scratch_operands = 0 : i64, tpu.core_type = #tpu.core_type<tc>, window_params = [{transform_indices = @transform_0, window_bounds = array<i64: 1, 8, 32>}, {transform_indices = @transform_1, window_bounds = array<i64: 1, 8, 32>}, {pipeline_mode = #tpu.pipeline_mode<synchronous>, transform_indices = @transform_2, window_bounds = array<i64: 8, 8>}, {pipeline_mode = #tpu.pipeline_mode<synchronous>, transform_indices = @transform_3, window_bounds = array<i64: 8, 8>}, {pipeline_mode = #tpu.pipeline_mode<synchronous>, transform_indices = @transform_4, window_bounds = array<i64: 2, 32, 96>}, {pipeline_mode = #tpu.pipeline_mode<synchronous>, transform_indices = @transform_5, window_bounds = array<i64: 2, 1, 96>}, {pipeline_mode = #tpu.pipeline_mode<synchronous>, transform_indices = @transform_6, window_bounds = array<i64: 2, 32, 32>}, {pipeline_mode = #tpu.pipeline_mode<synchronous>, transform_indices = @transform_7, window_bounds = array<i64: 2, 1, 32>}, {pipeline_mode = #tpu.pipeline_mode<synchronous>, transform_indices = @transform_8, window_bounds = array<i64: 2, 32, 32>}, {pipeline_mode = #tpu.pipeline_mode<synchronous>, transform_indices = @transform_9, window_bounds = array<i64: 2, 1, 32>}, {pipeline_mode = #tpu.pipeline_mode<synchronous>, transform_indices = @transform_10, window_bounds = array<i64: 2, 32, 64>}, {pipeline_mode = #tpu.pipeline_mode<synchronous>, transform_indices = @transform_11, window_bounds = array<i64: 2, 1, 64>}, {pipeline_mode = #tpu.pipeline_mode<synchronous>, transform_indices = @transform_12, window_bounds = array<i64: 2, 32, 32>}, {pipeline_mode = #tpu.pipeline_mode<synchronous>, transform_indices = @transform_13, window_bounds = array<i64: 2, 1, 32>}, {pipeline_mode = #tpu.pipeline_mode<synchronous>, transform_indices = @transform_14, window_bounds = array<i64: 2, 3, 32>}, {pipeline_mode = #tpu.pipeline_mode<synchronous>, transform_indices = @transform_15, window_bounds = array<i64: 2, 3, 32>}, {pipeline_mode = #tpu.pipeline_mode<synchronous>, transform_indices = @transform_16, window_bounds = array<i64: 2, 32, 64>}, {pipeline_mode = #tpu.pipeline_mode<synchronous>, transform_indices = @transform_17, window_bounds = array<i64: 2, 1, 64>}, {pipeline_mode = #tpu.pipeline_mode<synchronous>, transform_indices = @transform_18, window_bounds = array<i64: 2, 64, 32>}, {pipeline_mode = #tpu.pipeline_mode<synchronous>, transform_indices = @transform_19, window_bounds = array<i64: 2, 1, 32>}, {transform_indices = @transform_20, window_bounds = array<i64: 1, 8, 32>}]} {
    %c0 = arith.constant 0 : index
    %c0_0 = arith.constant 0 : index
    %c0_1 = arith.constant 0 : index
    %0 = vector.load %arg1[%c0, %c0_0, %c0_1] : memref<1x8x32xf32, #tpu.memory_space<vmem>>, vector<1x8x32xf32>
    %1 = vector.shape_cast %0 : vector<1x8x32xf32> to vector<8x32xf32>
    %c0_2 = arith.constant 0 : index
    %c0_3 = arith.constant 0 : index
    %c0_4 = arith.constant 0 : index
    %2 = vector.load %arg2[%c0_2, %c0_3, %c0_4] : memref<1x8x32xf32, #tpu.memory_space<vmem>>, vector<1x8x32xf32>
    %3 = vector.shape_cast %2 : vector<1x8x32xf32> to vector<8x32xf32>
    %c0_5 = arith.constant 0 : index
    %c0_6 = arith.constant 0 : index
    %4 = vector.load %arg3[%c0_5, %c0_6] : memref<8x8xf32, #tpu.memory_space<vmem>>, vector<8x8xf32>
    %cst = arith.constant 0.000000e+00 : f32
    %5 = vector.broadcast %cst : f32 to vector<8x8xf32>
    %6 = arith.cmpf ogt, %4, %5 : vector<8x8xf32>
    %cst_7 = arith.constant 0.000000e+00 : f32
    %cst_8 = arith.constant -1.000000e+09 : f32
    %7 = vector.broadcast %cst_7 : f32 to vector<8x8xf32>
    %8 = vector.broadcast %cst_8 : f32 to vector<8x8xf32>
    %9 = arith.select %6, %7, %8 : vector<8x8xi1>, vector<8x8xf32>
    %c0_9 = arith.constant 0 : index
    %c0_10 = arith.constant 0 : index
    %10 = vector.load %arg4[%c0_9, %c0_10] : memref<8x8xf32, #tpu.memory_space<vmem>>, vector<8x8xf32>
    %cst_11 = arith.constant 0.000000e+00 : f32
    %11 = vector.broadcast %cst_11 : f32 to vector<8x8xf32>
    %12 = arith.cmpf ogt, %10, %11 : vector<8x8xf32>
    %cst_12 = arith.constant 0.000000e+00 : f32
    %cst_13 = arith.constant -1.000000e+09 : f32
    %13 = vector.broadcast %cst_12 : f32 to vector<8x8xf32>
    %14 = vector.broadcast %cst_13 : f32 to vector<8x8xf32>
    %15 = arith.select %12, %13, %14 : vector<8x8xi1>, vector<8x8xf32>
    %c0_14 = arith.constant 0 : index
    %c0_15 = arith.constant 0 : index
    %c0_16 = arith.constant 0 : index
    %16 = vector.load %arg15[%c0_14, %c0_15, %c0_16] : memref<2x3x32xf32, #tpu.memory_space<vmem>>, vector<1x3x32xf32>
    %17 = vector.shape_cast %16 : vector<1x3x32xf32> to vector<3x32xf32>
    %c0_17 = arith.constant 0 : index
    %c0_18 = arith.constant 0 : index
    %c0_19 = arith.constant 0 : index
    %18 = vector.load %arg16[%c0_17, %c0_18, %c0_19] : memref<2x3x32xf32, #tpu.memory_space<vmem>>, vector<1x3x32xf32>
    %19 = vector.shape_cast %18 : vector<1x3x32xf32> to vector<3x32xf32>
    %c0_20 = arith.constant 0 : index
    %c0_21 = arith.constant 0 : index
    %c0_22 = arith.constant 0 : index
    %20 = vector.load %arg5[%c0_20, %c0_21, %c0_22] : memref<2x32x96xf32, #tpu.memory_space<vmem>>, vector<1x32x96xf32>
    %21 = vector.shape_cast %20 : vector<1x32x96xf32> to vector<32x96xf32>
    %cst_23 = arith.constant dense<0.000000e+00> : vector<8x96xf32>
    %22 = tpu.matmul %1, %21, %cst_23 {dimension_numbers = #tpu.dot_dimension_numbers<[1], [0], [0], [1], [0, 0, 1, 1], [], []>} : vector<8x32xf32>, vector<32x96xf32>, vector<8x96xf32> -> vector<8x96xf32>
    %c0_24 = arith.constant 0 : index
    %c0_25 = arith.constant 0 : index
    %c0_26 = arith.constant 0 : index
    %23 = vector.load %arg6[%c0_24, %c0_25, %c0_26] : memref<2x1x96xf32, #tpu.memory_space<vmem>>, vector<1x1x96xf32>
    %24 = vector.shape_cast %23 : vector<1x1x96xf32> to vector<1x96xf32>
    %25 = vector.broadcast %24 : vector<1x96xf32> to vector<8x96xf32>
    %26 = arith.addf %22, %25 : vector<8x96xf32>
    %27 = vector.extract_strided_slice %26 {offsets = [0, 0], sizes = [8, 32], strides = [1, 1]} : vector<8x96xf32> to vector<8x32xf32>
    %28 = vector.extract_strided_slice %26 {offsets = [0, 32], sizes = [8, 32], strides = [1, 1]} : vector<8x96xf32> to vector<8x32xf32>
    %29 = vector.extract_strided_slice %26 {offsets = [0, 64], sizes = [8, 32], strides = [1, 1]} : vector<8x96xf32> to vector<8x32xf32>
    %c0_27 = arith.constant 0 : index
    %c0_28 = arith.constant 0 : index
    %c0_29 = arith.constant 0 : index
    %30 = vector.load %arg7[%c0_27, %c0_28, %c0_29] : memref<2x32x32xf32, #tpu.memory_space<vmem>>, vector<1x32x32xf32>
    %31 = vector.shape_cast %30 : vector<1x32x32xf32> to vector<32x32xf32>
    %cst_30 = arith.constant 0.000000e+00 : f32
    %32 = vector.broadcast %cst_30 : f32 to vector<8x32xf32>
    %33 = vector.extract_strided_slice %27 {offsets = [0, 0], sizes = [8, 8], strides = [1, 1]} : vector<8x32xf32> to vector<8x8xf32>
    %34 = vector.extract_strided_slice %28 {offsets = [0, 0], sizes = [8, 8], strides = [1, 1]} : vector<8x32xf32> to vector<8x8xf32>
    %35 = vector.extract_strided_slice %29 {offsets = [0, 0], sizes = [8, 8], strides = [1, 1]} : vector<8x32xf32> to vector<8x8xf32>
    %cst_31 = arith.constant dense<0.000000e+00> : vector<8x8xf32>
    %36 = tpu.matmul %33, %34, %cst_31 {dimension_numbers = #tpu.dot_dimension_numbers<[1], [1], [0], [0], [0, 0, 1, 0], [], []>} : vector<8x8xf32>, vector<8x8xf32>, vector<8x8xf32> -> vector<8x8xf32>
    %cst_32 = arith.constant 0.353553385 : f32
    %37 = vector.broadcast %cst_32 : f32 to vector<8x8xf32>
    %38 = arith.mulf %36, %37 : vector<8x8xf32>
    %39 = arith.addf %38, %9 : vector<8x8xf32>
    %cst_33 = arith.constant dense<0xFF800000> : vector<8xf32>
    %40 = vector.multi_reduction <maximumf>, %39, %cst_33 [1] : vector<8x8xf32> to vector<8xf32>
    %41 = vector.shape_cast %40 : vector<8xf32> to vector<8x1xf32>
    %42 = vector.broadcast %41 : vector<8x1xf32> to vector<8x8xf32>
    %43 = arith.subf %39, %42 : vector<8x8xf32>
    %44 = math.exp %43 : vector<8x8xf32>
    %cst_34 = arith.constant dense<0.000000e+00> : vector<8xf32>
    %45 = vector.multi_reduction <add>, %44, %cst_34 [1] : vector<8x8xf32> to vector<8xf32>
    %46 = vector.shape_cast %45 : vector<8xf32> to vector<8x1xf32>
    %47 = tpu.reciprocal %46 {approx = true} : vector<8x1xf32> -> vector<8x1xf32>
    %48 = vector.broadcast %47 : vector<8x1xf32> to vector<8x8xf32>
    %49 = arith.mulf %44, %48 : vector<8x8xf32>
    %cst_35 = arith.constant dense<0.000000e+00> : vector<8x8xf32>
    %50 = tpu.matmul %49, %35, %cst_35 {dimension_numbers = #tpu.dot_dimension_numbers<[1], [0], [0], [1], [0, 0, 1, 1], [], []>} : vector<8x8xf32>, vector<8x8xf32>, vector<8x8xf32> -> vector<8x8xf32>
    %51 = vector.extract_strided_slice %31 {offsets = [0, 0], sizes = [8, 32], strides = [1, 1]} : vector<32x32xf32> to vector<8x32xf32>
    %cst_36 = arith.constant dense<0.000000e+00> : vector<8x32xf32>
    %52 = tpu.matmul %50, %51, %cst_36 {dimension_numbers = #tpu.dot_dimension_numbers<[1], [0], [0], [1], [0, 0, 1, 1], [], []>} : vector<8x8xf32>, vector<8x32xf32>, vector<8x32xf32> -> vector<8x32xf32>
    %53 = arith.addf %32, %52 : vector<8x32xf32>
    %54 = vector.extract_strided_slice %27 {offsets = [0, 8], sizes = [8, 8], strides = [1, 1]} : vector<8x32xf32> to vector<8x8xf32>
    %55 = vector.extract_strided_slice %28 {offsets = [0, 8], sizes = [8, 8], strides = [1, 1]} : vector<8x32xf32> to vector<8x8xf32>
    %56 = vector.extract_strided_slice %29 {offsets = [0, 8], sizes = [8, 8], strides = [1, 1]} : vector<8x32xf32> to vector<8x8xf32>
    %cst_37 = arith.constant dense<0.000000e+00> : vector<8x8xf32>
    %57 = tpu.matmul %54, %55, %cst_37 {dimension_numbers = #tpu.dot_dimension_numbers<[1], [1], [0], [0], [0, 0, 1, 0], [], []>} : vector<8x8xf32>, vector<8x8xf32>, vector<8x8xf32> -> vector<8x8xf32>
    %cst_38 = arith.constant 0.353553385 : f32
    %58 = vector.broadcast %cst_38 : f32 to vector<8x8xf32>
    %59 = arith.mulf %57, %58 : vector<8x8xf32>
    %60 = arith.addf %59, %9 : vector<8x8xf32>
    %cst_39 = arith.constant dense<0xFF800000> : vector<8xf32>
    %61 = vector.multi_reduction <maximumf>, %60, %cst_39 [1] : vector<8x8xf32> to vector<8xf32>
    %62 = vector.shape_cast %61 : vector<8xf32> to vector<8x1xf32>
    %63 = vector.broadcast %62 : vector<8x1xf32> to vector<8x8xf32>
    %64 = arith.subf %60, %63 : vector<8x8xf32>
    %65 = math.exp %64 : vector<8x8xf32>
    %cst_40 = arith.constant dense<0.000000e+00> : vector<8xf32>
    %66 = vector.multi_reduction <add>, %65, %cst_40 [1] : vector<8x8xf32> to vector<8xf32>
    %67 = vector.shape_cast %66 : vector<8xf32> to vector<8x1xf32>
    %68 = tpu.reciprocal %67 {approx = true} : vector<8x1xf32> -> vector<8x1xf32>
    %69 = vector.broadcast %68 : vector<8x1xf32> to vector<8x8xf32>
    %70 = arith.mulf %65, %69 : vector<8x8xf32>
    %cst_41 = arith.constant dense<0.000000e+00> : vector<8x8xf32>
    %71 = tpu.matmul %70, %56, %cst_41 {dimension_numbers = #tpu.dot_dimension_numbers<[1], [0], [0], [1], [0, 0, 1, 1], [], []>} : vector<8x8xf32>, vector<8x8xf32>, vector<8x8xf32> -> vector<8x8xf32>
    %72 = vector.extract_strided_slice %31 {offsets = [8, 0], sizes = [8, 32], strides = [1, 1]} : vector<32x32xf32> to vector<8x32xf32>
    %cst_42 = arith.constant dense<0.000000e+00> : vector<8x32xf32>
    %73 = tpu.matmul %71, %72, %cst_42 {dimension_numbers = #tpu.dot_dimension_numbers<[1], [0], [0], [1], [0, 0, 1, 1], [], []>} : vector<8x8xf32>, vector<8x32xf32>, vector<8x32xf32> -> vector<8x32xf32>
    %74 = arith.addf %53, %73 : vector<8x32xf32>
    %75 = vector.extract_strided_slice %27 {offsets = [0, 16], sizes = [8, 8], strides = [1, 1]} : vector<8x32xf32> to vector<8x8xf32>
    %76 = vector.extract_strided_slice %28 {offsets = [0, 16], sizes = [8, 8], strides = [1, 1]} : vector<8x32xf32> to vector<8x8xf32>
    %77 = vector.extract_strided_slice %29 {offsets = [0, 16], sizes = [8, 8], strides = [1, 1]} : vector<8x32xf32> to vector<8x8xf32>
    %cst_43 = arith.constant dense<0.000000e+00> : vector<8x8xf32>
    %78 = tpu.matmul %75, %76, %cst_43 {dimension_numbers = #tpu.dot_dimension_numbers<[1], [1], [0], [0], [0, 0, 1, 0], [], []>} : vector<8x8xf32>, vector<8x8xf32>, vector<8x8xf32> -> vector<8x8xf32>
    %cst_44 = arith.constant 0.353553385 : f32
    %79 = vector.broadcast %cst_44 : f32 to vector<8x8xf32>
    %80 = arith.mulf %78, %79 : vector<8x8xf32>
    %81 = arith.addf %80, %9 : vector<8x8xf32>
    %cst_45 = arith.constant dense<0xFF800000> : vector<8xf32>
    %82 = vector.multi_reduction <maximumf>, %81, %cst_45 [1] : vector<8x8xf32> to vector<8xf32>
    %83 = vector.shape_cast %82 : vector<8xf32> to vector<8x1xf32>
    %84 = vector.broadcast %83 : vector<8x1xf32> to vector<8x8xf32>
    %85 = arith.subf %81, %84 : vector<8x8xf32>
    %86 = math.exp %85 : vector<8x8xf32>
    %cst_46 = arith.constant dense<0.000000e+00> : vector<8xf32>
    %87 = vector.multi_reduction <add>, %86, %cst_46 [1] : vector<8x8xf32> to vector<8xf32>
    %88 = vector.shape_cast %87 : vector<8xf32> to vector<8x1xf32>
    %89 = tpu.reciprocal %88 {approx = true} : vector<8x1xf32> -> vector<8x1xf32>
    %90 = vector.broadcast %89 : vector<8x1xf32> to vector<8x8xf32>
    %91 = arith.mulf %86, %90 : vector<8x8xf32>
    %cst_47 = arith.constant dense<0.000000e+00> : vector<8x8xf32>
    %92 = tpu.matmul %91, %77, %cst_47 {dimension_numbers = #tpu.dot_dimension_numbers<[1], [0], [0], [1], [0, 0, 1, 1], [], []>} : vector<8x8xf32>, vector<8x8xf32>, vector<8x8xf32> -> vector<8x8xf32>
    %93 = vector.extract_strided_slice %31 {offsets = [16, 0], sizes = [8, 32], strides = [1, 1]} : vector<32x32xf32> to vector<8x32xf32>
    %cst_48 = arith.constant dense<0.000000e+00> : vector<8x32xf32>
    %94 = tpu.matmul %92, %93, %cst_48 {dimension_numbers = #tpu.dot_dimension_numbers<[1], [0], [0], [1], [0, 0, 1, 1], [], []>} : vector<8x8xf32>, vector<8x32xf32>, vector<8x32xf32> -> vector<8x32xf32>
    %95 = arith.addf %74, %94 : vector<8x32xf32>
    %96 = vector.extract_strided_slice %27 {offsets = [0, 24], sizes = [8, 8], strides = [1, 1]} : vector<8x32xf32> to vector<8x8xf32>
    %97 = vector.extract_strided_slice %28 {offsets = [0, 24], sizes = [8, 8], strides = [1, 1]} : vector<8x32xf32> to vector<8x8xf32>
    %98 = vector.extract_strided_slice %29 {offsets = [0, 24], sizes = [8, 8], strides = [1, 1]} : vector<8x32xf32> to vector<8x8xf32>
    %cst_49 = arith.constant dense<0.000000e+00> : vector<8x8xf32>
    %99 = tpu.matmul %96, %97, %cst_49 {dimension_numbers = #tpu.dot_dimension_numbers<[1], [1], [0], [0], [0, 0, 1, 0], [], []>} : vector<8x8xf32>, vector<8x8xf32>, vector<8x8xf32> -> vector<8x8xf32>
    %cst_50 = arith.constant 0.353553385 : f32
    %100 = vector.broadcast %cst_50 : f32 to vector<8x8xf32>
    %101 = arith.mulf %99, %100 : vector<8x8xf32>
    %102 = arith.addf %101, %9 : vector<8x8xf32>
    %cst_51 = arith.constant dense<0xFF800000> : vector<8xf32>
    %103 = vector.multi_reduction <maximumf>, %102, %cst_51 [1] : vector<8x8xf32> to vector<8xf32>
    %104 = vector.shape_cast %103 : vector<8xf32> to vector<8x1xf32>
    %105 = vector.broadcast %104 : vector<8x1xf32> to vector<8x8xf32>
    %106 = arith.subf %102, %105 : vector<8x8xf32>
    %107 = math.exp %106 : vector<8x8xf32>
    %cst_52 = arith.constant dense<0.000000e+00> : vector<8xf32>
    %108 = vector.multi_reduction <add>, %107, %cst_52 [1] : vector<8x8xf32> to vector<8xf32>
    %109 = vector.shape_cast %108 : vector<8xf32> to vector<8x1xf32>
    %110 = tpu.reciprocal %109 {approx = true} : vector<8x1xf32> -> vector<8x1xf32>
    %111 = vector.broadcast %110 : vector<8x1xf32> to vector<8x8xf32>
    %112 = arith.mulf %107, %111 : vector<8x8xf32>
    %cst_53 = arith.constant dense<0.000000e+00> : vector<8x8xf32>
    %113 = tpu.matmul %112, %98, %cst_53 {dimension_numbers = #tpu.dot_dimension_numbers<[1], [0], [0], [1], [0, 0, 1, 1], [], []>} : vector<8x8xf32>, vector<8x8xf32>, vector<8x8xf32> -> vector<8x8xf32>
    %114 = vector.extract_strided_slice %31 {offsets = [24, 0], sizes = [8, 32], strides = [1, 1]} : vector<32x32xf32> to vector<8x32xf32>
    %cst_54 = arith.constant dense<0.000000e+00> : vector<8x32xf32>
    %115 = tpu.matmul %113, %114, %cst_54 {dimension_numbers = #tpu.dot_dimension_numbers<[1], [0], [0], [1], [0, 0, 1, 1], [], []>} : vector<8x8xf32>, vector<8x32xf32>, vector<8x32xf32> -> vector<8x32xf32>
    %116 = arith.addf %95, %115 : vector<8x32xf32>
    %c0_55 = arith.constant 0 : index
    %c0_56 = arith.constant 0 : index
    %c0_57 = arith.constant 0 : index
    %117 = vector.load %arg8[%c0_55, %c0_56, %c0_57] : memref<2x1x32xf32, #tpu.memory_space<vmem>>, vector<1x1x32xf32>
    %118 = vector.shape_cast %117 : vector<1x1x32xf32> to vector<1x32xf32>
    %119 = vector.broadcast %118 : vector<1x32xf32> to vector<8x32xf32>
    %120 = arith.addf %116, %119 : vector<8x32xf32>
    %121 = arith.addf %120, %1 : vector<8x32xf32>
    %122 = vector.extract_strided_slice %17 {offsets = [0, 0], sizes = [1, 32], strides = [1, 1]} : vector<3x32xf32> to vector<1x32xf32>
    %123 = vector.shape_cast %122 : vector<1x32xf32> to vector<32xf32>
    %124 = vector.extract_strided_slice %19 {offsets = [0, 0], sizes = [1, 32], strides = [1, 1]} : vector<3x32xf32> to vector<1x32xf32>
    %125 = vector.shape_cast %124 : vector<1x32xf32> to vector<32xf32>
    %cst_58 = arith.constant dense<0.000000e+00> : vector<8xf32>
    %126 = vector.multi_reduction <add>, %121, %cst_58 [1] : vector<8x32xf32> to vector<8xf32>
    %127 = vector.shape_cast %126 : vector<8xf32> to vector<8x1xf32>
    %cst_59 = arith.constant 3.200000e+01 : f32
    %128 = vector.broadcast %cst_59 : f32 to vector<8x1xf32>
    %129 = arith.divf %127, %128 : vector<8x1xf32>
    %130 = vector.broadcast %129 : vector<8x1xf32> to vector<8x32xf32>
    %131 = arith.subf %121, %130 : vector<8x32xf32>
    %132 = arith.mulf %131, %131 : vector<8x32xf32>
    %cst_60 = arith.constant dense<0.000000e+00> : vector<8xf32>
    %133 = vector.multi_reduction <add>, %132, %cst_60 [1] : vector<8x32xf32> to vector<8xf32>
    %134 = vector.shape_cast %133 : vector<8xf32> to vector<8x1xf32>
    %cst_61 = arith.constant 3.200000e+01 : f32
    %135 = vector.broadcast %cst_61 : f32 to vector<8x1xf32>
    %136 = arith.divf %134, %135 : vector<8x1xf32>
    %137 = vector.broadcast %129 : vector<8x1xf32> to vector<8x32xf32>
    %138 = arith.subf %121, %137 : vector<8x32xf32>
    %cst_62 = arith.constant 9.99999974E-6 : f32
    %139 = vector.broadcast %cst_62 : f32 to vector<8x1xf32>
    %140 = arith.addf %136, %139 : vector<8x1xf32>
    %141 = math.rsqrt %140 : vector<8x1xf32>
    %142 = vector.broadcast %141 : vector<8x1xf32> to vector<8x32xf32>
    %143 = arith.mulf %138, %142 : vector<8x32xf32>
    %144 = vector.shape_cast %123 : vector<32xf32> to vector<1x32xf32>
    %145 = vector.broadcast %144 : vector<1x32xf32> to vector<8x32xf32>
    %146 = arith.mulf %143, %145 : vector<8x32xf32>
    %147 = vector.shape_cast %125 : vector<32xf32> to vector<1x32xf32>
    %148 = vector.broadcast %147 : vector<1x32xf32> to vector<8x32xf32>
    %149 = arith.addf %146, %148 : vector<8x32xf32>
    %c0_63 = arith.constant 0 : index
    %c0_64 = arith.constant 0 : index
    %c0_65 = arith.constant 0 : index
    %150 = vector.load %arg9[%c0_63, %c0_64, %c0_65] : memref<2x32x32xf32, #tpu.memory_space<vmem>>, vector<1x32x32xf32>
    %151 = vector.shape_cast %150 : vector<1x32x32xf32> to vector<32x32xf32>
    %cst_66 = arith.constant dense<0.000000e+00> : vector<8x32xf32>
    %152 = tpu.matmul %149, %151, %cst_66 {dimension_numbers = #tpu.dot_dimension_numbers<[1], [0], [0], [1], [0, 0, 1, 1], [], []>} : vector<8x32xf32>, vector<32x32xf32>, vector<8x32xf32> -> vector<8x32xf32>
    %c0_67 = arith.constant 0 : index
    %c0_68 = arith.constant 0 : index
    %c0_69 = arith.constant 0 : index
    %153 = vector.load %arg10[%c0_67, %c0_68, %c0_69] : memref<2x1x32xf32, #tpu.memory_space<vmem>>, vector<1x1x32xf32>
    %154 = vector.shape_cast %153 : vector<1x1x32xf32> to vector<1x32xf32>
    %155 = vector.broadcast %154 : vector<1x32xf32> to vector<8x32xf32>
    %156 = arith.addf %152, %155 : vector<8x32xf32>
    %c0_70 = arith.constant 0 : index
    %c0_71 = arith.constant 0 : index
    %c0_72 = arith.constant 0 : index
    %157 = vector.load %arg11[%c0_70, %c0_71, %c0_72] : memref<2x32x64xf32, #tpu.memory_space<vmem>>, vector<1x32x64xf32>
    %158 = vector.shape_cast %157 : vector<1x32x64xf32> to vector<32x64xf32>
    %cst_73 = arith.constant dense<0.000000e+00> : vector<8x64xf32>
    %159 = tpu.matmul %3, %158, %cst_73 {dimension_numbers = #tpu.dot_dimension_numbers<[1], [0], [0], [1], [0, 0, 1, 1], [], []>} : vector<8x32xf32>, vector<32x64xf32>, vector<8x64xf32> -> vector<8x64xf32>
    %c0_74 = arith.constant 0 : index
    %c0_75 = arith.constant 0 : index
    %c0_76 = arith.constant 0 : index
    %160 = vector.load %arg12[%c0_74, %c0_75, %c0_76] : memref<2x1x64xf32, #tpu.memory_space<vmem>>, vector<1x1x64xf32>
    %161 = vector.shape_cast %160 : vector<1x1x64xf32> to vector<1x64xf32>
    %162 = vector.broadcast %161 : vector<1x64xf32> to vector<8x64xf32>
    %163 = arith.addf %159, %162 : vector<8x64xf32>
    %164 = vector.extract_strided_slice %163 {offsets = [0, 0], sizes = [8, 32], strides = [1, 1]} : vector<8x64xf32> to vector<8x32xf32>
    %165 = vector.extract_strided_slice %163 {offsets = [0, 32], sizes = [8, 32], strides = [1, 1]} : vector<8x64xf32> to vector<8x32xf32>
    %c0_77 = arith.constant 0 : index
    %c0_78 = arith.constant 0 : index
    %c0_79 = arith.constant 0 : index
    %166 = vector.load %arg13[%c0_77, %c0_78, %c0_79] : memref<2x32x32xf32, #tpu.memory_space<vmem>>, vector<1x32x32xf32>
    %167 = vector.shape_cast %166 : vector<1x32x32xf32> to vector<32x32xf32>
    %cst_80 = arith.constant 0.000000e+00 : f32
    %168 = vector.broadcast %cst_80 : f32 to vector<8x32xf32>
    %169 = vector.extract_strided_slice %156 {offsets = [0, 0], sizes = [8, 8], strides = [1, 1]} : vector<8x32xf32> to vector<8x8xf32>
    %170 = vector.extract_strided_slice %164 {offsets = [0, 0], sizes = [8, 8], strides = [1, 1]} : vector<8x32xf32> to vector<8x8xf32>
    %171 = vector.extract_strided_slice %165 {offsets = [0, 0], sizes = [8, 8], strides = [1, 1]} : vector<8x32xf32> to vector<8x8xf32>
    %cst_81 = arith.constant dense<0.000000e+00> : vector<8x8xf32>
    %172 = tpu.matmul %169, %170, %cst_81 {dimension_numbers = #tpu.dot_dimension_numbers<[1], [1], [0], [0], [0, 0, 1, 0], [], []>} : vector<8x8xf32>, vector<8x8xf32>, vector<8x8xf32> -> vector<8x8xf32>
    %cst_82 = arith.constant 0.353553385 : f32
    %173 = vector.broadcast %cst_82 : f32 to vector<8x8xf32>
    %174 = arith.mulf %172, %173 : vector<8x8xf32>
    %175 = arith.addf %174, %15 : vector<8x8xf32>
    %cst_83 = arith.constant dense<0xFF800000> : vector<8xf32>
    %176 = vector.multi_reduction <maximumf>, %175, %cst_83 [1] : vector<8x8xf32> to vector<8xf32>
    %177 = vector.shape_cast %176 : vector<8xf32> to vector<8x1xf32>
    %178 = vector.broadcast %177 : vector<8x1xf32> to vector<8x8xf32>
    %179 = arith.subf %175, %178 : vector<8x8xf32>
    %180 = math.exp %179 : vector<8x8xf32>
    %cst_84 = arith.constant dense<0.000000e+00> : vector<8xf32>
    %181 = vector.multi_reduction <add>, %180, %cst_84 [1] : vector<8x8xf32> to vector<8xf32>
    %182 = vector.shape_cast %181 : vector<8xf32> to vector<8x1xf32>
    %183 = tpu.reciprocal %182 {approx = true} : vector<8x1xf32> -> vector<8x1xf32>
    %184 = vector.broadcast %183 : vector<8x1xf32> to vector<8x8xf32>
    %185 = arith.mulf %180, %184 : vector<8x8xf32>
    %cst_85 = arith.constant dense<0.000000e+00> : vector<8x8xf32>
    %186 = tpu.matmul %185, %171, %cst_85 {dimension_numbers = #tpu.dot_dimension_numbers<[1], [0], [0], [1], [0, 0, 1, 1], [], []>} : vector<8x8xf32>, vector<8x8xf32>, vector<8x8xf32> -> vector<8x8xf32>
    %187 = vector.extract_strided_slice %167 {offsets = [0, 0], sizes = [8, 32], strides = [1, 1]} : vector<32x32xf32> to vector<8x32xf32>
    %cst_86 = arith.constant dense<0.000000e+00> : vector<8x32xf32>
    %188 = tpu.matmul %186, %187, %cst_86 {dimension_numbers = #tpu.dot_dimension_numbers<[1], [0], [0], [1], [0, 0, 1, 1], [], []>} : vector<8x8xf32>, vector<8x32xf32>, vector<8x32xf32> -> vector<8x32xf32>
    %189 = arith.addf %168, %188 : vector<8x32xf32>
    %190 = vector.extract_strided_slice %156 {offsets = [0, 8], sizes = [8, 8], strides = [1, 1]} : vector<8x32xf32> to vector<8x8xf32>
    %191 = vector.extract_strided_slice %164 {offsets = [0, 8], sizes = [8, 8], strides = [1, 1]} : vector<8x32xf32> to vector<8x8xf32>
    %192 = vector.extract_strided_slice %165 {offsets = [0, 8], sizes = [8, 8], strides = [1, 1]} : vector<8x32xf32> to vector<8x8xf32>
    %cst_87 = arith.constant dense<0.000000e+00> : vector<8x8xf32>
    %193 = tpu.matmul %190, %191, %cst_87 {dimension_numbers = #tpu.dot_dimension_numbers<[1], [1], [0], [0], [0, 0, 1, 0], [], []>} : vector<8x8xf32>, vector<8x8xf32>, vector<8x8xf32> -> vector<8x8xf32>
    %cst_88 = arith.constant 0.353553385 : f32
    %194 = vector.broadcast %cst_88 : f32 to vector<8x8xf32>
    %195 = arith.mulf %193, %194 : vector<8x8xf32>
    %196 = arith.addf %195, %15 : vector<8x8xf32>
    %cst_89 = arith.constant dense<0xFF800000> : vector<8xf32>
    %197 = vector.multi_reduction <maximumf>, %196, %cst_89 [1] : vector<8x8xf32> to vector<8xf32>
    %198 = vector.shape_cast %197 : vector<8xf32> to vector<8x1xf32>
    %199 = vector.broadcast %198 : vector<8x1xf32> to vector<8x8xf32>
    %200 = arith.subf %196, %199 : vector<8x8xf32>
    %201 = math.exp %200 : vector<8x8xf32>
    %cst_90 = arith.constant dense<0.000000e+00> : vector<8xf32>
    %202 = vector.multi_reduction <add>, %201, %cst_90 [1] : vector<8x8xf32> to vector<8xf32>
    %203 = vector.shape_cast %202 : vector<8xf32> to vector<8x1xf32>
    %204 = tpu.reciprocal %203 {approx = true} : vector<8x1xf32> -> vector<8x1xf32>
    %205 = vector.broadcast %204 : vector<8x1xf32> to vector<8x8xf32>
    %206 = arith.mulf %201, %205 : vector<8x8xf32>
    %cst_91 = arith.constant dense<0.000000e+00> : vector<8x8xf32>
    %207 = tpu.matmul %206, %192, %cst_91 {dimension_numbers = #tpu.dot_dimension_numbers<[1], [0], [0], [1], [0, 0, 1, 1], [], []>} : vector<8x8xf32>, vector<8x8xf32>, vector<8x8xf32> -> vector<8x8xf32>
    %208 = vector.extract_strided_slice %167 {offsets = [8, 0], sizes = [8, 32], strides = [1, 1]} : vector<32x32xf32> to vector<8x32xf32>
    %cst_92 = arith.constant dense<0.000000e+00> : vector<8x32xf32>
    %209 = tpu.matmul %207, %208, %cst_92 {dimension_numbers = #tpu.dot_dimension_numbers<[1], [0], [0], [1], [0, 0, 1, 1], [], []>} : vector<8x8xf32>, vector<8x32xf32>, vector<8x32xf32> -> vector<8x32xf32>
    %210 = arith.addf %189, %209 : vector<8x32xf32>
    %211 = vector.extract_strided_slice %156 {offsets = [0, 16], sizes = [8, 8], strides = [1, 1]} : vector<8x32xf32> to vector<8x8xf32>
    %212 = vector.extract_strided_slice %164 {offsets = [0, 16], sizes = [8, 8], strides = [1, 1]} : vector<8x32xf32> to vector<8x8xf32>
    %213 = vector.extract_strided_slice %165 {offsets = [0, 16], sizes = [8, 8], strides = [1, 1]} : vector<8x32xf32> to vector<8x8xf32>
    %cst_93 = arith.constant dense<0.000000e+00> : vector<8x8xf32>
    %214 = tpu.matmul %211, %212, %cst_93 {dimension_numbers = #tpu.dot_dimension_numbers<[1], [1], [0], [0], [0, 0, 1, 0], [], []>} : vector<8x8xf32>, vector<8x8xf32>, vector<8x8xf32> -> vector<8x8xf32>
    %cst_94 = arith.constant 0.353553385 : f32
    %215 = vector.broadcast %cst_94 : f32 to vector<8x8xf32>
    %216 = arith.mulf %214, %215 : vector<8x8xf32>
    %217 = arith.addf %216, %15 : vector<8x8xf32>
    %cst_95 = arith.constant dense<0xFF800000> : vector<8xf32>
    %218 = vector.multi_reduction <maximumf>, %217, %cst_95 [1] : vector<8x8xf32> to vector<8xf32>
    %219 = vector.shape_cast %218 : vector<8xf32> to vector<8x1xf32>
    %220 = vector.broadcast %219 : vector<8x1xf32> to vector<8x8xf32>
    %221 = arith.subf %217, %220 : vector<8x8xf32>
    %222 = math.exp %221 : vector<8x8xf32>
    %cst_96 = arith.constant dense<0.000000e+00> : vector<8xf32>
    %223 = vector.multi_reduction <add>, %222, %cst_96 [1] : vector<8x8xf32> to vector<8xf32>
    %224 = vector.shape_cast %223 : vector<8xf32> to vector<8x1xf32>
    %225 = tpu.reciprocal %224 {approx = true} : vector<8x1xf32> -> vector<8x1xf32>
    %226 = vector.broadcast %225 : vector<8x1xf32> to vector<8x8xf32>
    %227 = arith.mulf %222, %226 : vector<8x8xf32>
    %cst_97 = arith.constant dense<0.000000e+00> : vector<8x8xf32>
    %228 = tpu.matmul %227, %213, %cst_97 {dimension_numbers = #tpu.dot_dimension_numbers<[1], [0], [0], [1], [0, 0, 1, 1], [], []>} : vector<8x8xf32>, vector<8x8xf32>, vector<8x8xf32> -> vector<8x8xf32>
    %229 = vector.extract_strided_slice %167 {offsets = [16, 0], sizes = [8, 32], strides = [1, 1]} : vector<32x32xf32> to vector<8x32xf32>
    %cst_98 = arith.constant dense<0.000000e+00> : vector<8x32xf32>
    %230 = tpu.matmul %228, %229, %cst_98 {dimension_numbers = #tpu.dot_dimension_numbers<[1], [0], [0], [1], [0, 0, 1, 1], [], []>} : vector<8x8xf32>, vector<8x32xf32>, vector<8x32xf32> -> vector<8x32xf32>
    %231 = arith.addf %210, %230 : vector<8x32xf32>
    %232 = vector.extract_strided_slice %156 {offsets = [0, 24], sizes = [8, 8], strides = [1, 1]} : vector<8x32xf32> to vector<8x8xf32>
    %233 = vector.extract_strided_slice %164 {offsets = [0, 24], sizes = [8, 8], strides = [1, 1]} : vector<8x32xf32> to vector<8x8xf32>
    %234 = vector.extract_strided_slice %165 {offsets = [0, 24], sizes = [8, 8], strides = [1, 1]} : vector<8x32xf32> to vector<8x8xf32>
    %cst_99 = arith.constant dense<0.000000e+00> : vector<8x8xf32>
    %235 = tpu.matmul %232, %233, %cst_99 {dimension_numbers = #tpu.dot_dimension_numbers<[1], [1], [0], [0], [0, 0, 1, 0], [], []>} : vector<8x8xf32>, vector<8x8xf32>, vector<8x8xf32> -> vector<8x8xf32>
    %cst_100 = arith.constant 0.353553385 : f32
    %236 = vector.broadcast %cst_100 : f32 to vector<8x8xf32>
    %237 = arith.mulf %235, %236 : vector<8x8xf32>
    %238 = arith.addf %237, %15 : vector<8x8xf32>
    %cst_101 = arith.constant dense<0xFF800000> : vector<8xf32>
    %239 = vector.multi_reduction <maximumf>, %238, %cst_101 [1] : vector<8x8xf32> to vector<8xf32>
    %240 = vector.shape_cast %239 : vector<8xf32> to vector<8x1xf32>
    %241 = vector.broadcast %240 : vector<8x1xf32> to vector<8x8xf32>
    %242 = arith.subf %238, %241 : vector<8x8xf32>
    %243 = math.exp %242 : vector<8x8xf32>
    %cst_102 = arith.constant dense<0.000000e+00> : vector<8xf32>
    %244 = vector.multi_reduction <add>, %243, %cst_102 [1] : vector<8x8xf32> to vector<8xf32>
    %245 = vector.shape_cast %244 : vector<8xf32> to vector<8x1xf32>
    %246 = tpu.reciprocal %245 {approx = true} : vector<8x1xf32> -> vector<8x1xf32>
    %247 = vector.broadcast %246 : vector<8x1xf32> to vector<8x8xf32>
    %248 = arith.mulf %243, %247 : vector<8x8xf32>
    %cst_103 = arith.constant dense<0.000000e+00> : vector<8x8xf32>
    %249 = tpu.matmul %248, %234, %cst_103 {dimension_numbers = #tpu.dot_dimension_numbers<[1], [0], [0], [1], [0, 0, 1, 1], [], []>} : vector<8x8xf32>, vector<8x8xf32>, vector<8x8xf32> -> vector<8x8xf32>
    %250 = vector.extract_strided_slice %167 {offsets = [24, 0], sizes = [8, 32], strides = [1, 1]} : vector<32x32xf32> to vector<8x32xf32>
    %cst_104 = arith.constant dense<0.000000e+00> : vector<8x32xf32>
    %251 = tpu.matmul %249, %250, %cst_104 {dimension_numbers = #tpu.dot_dimension_numbers<[1], [0], [0], [1], [0, 0, 1, 1], [], []>} : vector<8x8xf32>, vector<8x32xf32>, vector<8x32xf32> -> vector<8x32xf32>
    %252 = arith.addf %231, %251 : vector<8x32xf32>
    %c0_105 = arith.constant 0 : index
    %c0_106 = arith.constant 0 : index
    %c0_107 = arith.constant 0 : index
    %253 = vector.load %arg14[%c0_105, %c0_106, %c0_107] : memref<2x1x32xf32, #tpu.memory_space<vmem>>, vector<1x1x32xf32>
    %254 = vector.shape_cast %253 : vector<1x1x32xf32> to vector<1x32xf32>
    %255 = vector.broadcast %254 : vector<1x32xf32> to vector<8x32xf32>
    %256 = arith.addf %252, %255 : vector<8x32xf32>
    %257 = arith.addf %256, %149 : vector<8x32xf32>
    %258 = vector.extract_strided_slice %17 {offsets = [1, 0], sizes = [1, 32], strides = [1, 1]} : vector<3x32xf32> to vector<1x32xf32>
    %259 = vector.shape_cast %258 : vector<1x32xf32> to vector<32xf32>
    %260 = vector.extract_strided_slice %19 {offsets = [1, 0], sizes = [1, 32], strides = [1, 1]} : vector<3x32xf32> to vector<1x32xf32>
    %261 = vector.shape_cast %260 : vector<1x32xf32> to vector<32xf32>
    %cst_108 = arith.constant dense<0.000000e+00> : vector<8xf32>
    %262 = vector.multi_reduction <add>, %257, %cst_108 [1] : vector<8x32xf32> to vector<8xf32>
    %263 = vector.shape_cast %262 : vector<8xf32> to vector<8x1xf32>
    %cst_109 = arith.constant 3.200000e+01 : f32
    %264 = vector.broadcast %cst_109 : f32 to vector<8x1xf32>
    %265 = arith.divf %263, %264 : vector<8x1xf32>
    %266 = vector.broadcast %265 : vector<8x1xf32> to vector<8x32xf32>
    %267 = arith.subf %257, %266 : vector<8x32xf32>
    %268 = arith.mulf %267, %267 : vector<8x32xf32>
    %cst_110 = arith.constant dense<0.000000e+00> : vector<8xf32>
    %269 = vector.multi_reduction <add>, %268, %cst_110 [1] : vector<8x32xf32> to vector<8xf32>
    %270 = vector.shape_cast %269 : vector<8xf32> to vector<8x1xf32>
    %cst_111 = arith.constant 3.200000e+01 : f32
    %271 = vector.broadcast %cst_111 : f32 to vector<8x1xf32>
    %272 = arith.divf %270, %271 : vector<8x1xf32>
    %273 = vector.broadcast %265 : vector<8x1xf32> to vector<8x32xf32>
    %274 = arith.subf %257, %273 : vector<8x32xf32>
    %cst_112 = arith.constant 9.99999974E-6 : f32
    %275 = vector.broadcast %cst_112 : f32 to vector<8x1xf32>
    %276 = arith.addf %272, %275 : vector<8x1xf32>
    %277 = math.rsqrt %276 : vector<8x1xf32>
    %278 = vector.broadcast %277 : vector<8x1xf32> to vector<8x32xf32>
    %279 = arith.mulf %274, %278 : vector<8x32xf32>
    %280 = vector.shape_cast %259 : vector<32xf32> to vector<1x32xf32>
    %281 = vector.broadcast %280 : vector<1x32xf32> to vector<8x32xf32>
    %282 = arith.mulf %279, %281 : vector<8x32xf32>
    %283 = vector.shape_cast %261 : vector<32xf32> to vector<1x32xf32>
    %284 = vector.broadcast %283 : vector<1x32xf32> to vector<8x32xf32>
    %285 = arith.addf %282, %284 : vector<8x32xf32>
    %c0_113 = arith.constant 0 : index
    %c0_114 = arith.constant 0 : index
    %c0_115 = arith.constant 0 : index
    %286 = vector.load %arg17[%c0_113, %c0_114, %c0_115] : memref<2x32x64xf32, #tpu.memory_space<vmem>>, vector<1x32x64xf32>
    %287 = vector.shape_cast %286 : vector<1x32x64xf32> to vector<32x64xf32>
    %cst_116 = arith.constant dense<0.000000e+00> : vector<8x64xf32>
    %288 = tpu.matmul %285, %287, %cst_116 {dimension_numbers = #tpu.dot_dimension_numbers<[1], [0], [0], [1], [0, 0, 1, 1], [], []>} : vector<8x32xf32>, vector<32x64xf32>, vector<8x64xf32> -> vector<8x64xf32>
    %c0_117 = arith.constant 0 : index
    %c0_118 = arith.constant 0 : index
    %c0_119 = arith.constant 0 : index
    %289 = vector.load %arg18[%c0_117, %c0_118, %c0_119] : memref<2x1x64xf32, #tpu.memory_space<vmem>>, vector<1x1x64xf32>
    %290 = vector.shape_cast %289 : vector<1x1x64xf32> to vector<1x64xf32>
    %291 = vector.broadcast %290 : vector<1x64xf32> to vector<8x64xf32>
    %292 = arith.addf %288, %291 : vector<8x64xf32>
    %cst_120 = arith.constant 0.000000e+00 : f32
    %293 = vector.broadcast %cst_120 : f32 to vector<8x64xf32>
    %294 = arith.maximumf %292, %293 : vector<8x64xf32>
    %c0_121 = arith.constant 0 : index
    %c0_122 = arith.constant 0 : index
    %c0_123 = arith.constant 0 : index
    %295 = vector.load %arg19[%c0_121, %c0_122, %c0_123] : memref<2x64x32xf32, #tpu.memory_space<vmem>>, vector<1x64x32xf32>
    %296 = vector.shape_cast %295 : vector<1x64x32xf32> to vector<64x32xf32>
    %cst_124 = arith.constant dense<0.000000e+00> : vector<8x32xf32>
    %297 = tpu.matmul %294, %296, %cst_124 {dimension_numbers = #tpu.dot_dimension_numbers<[1], [0], [0], [1], [0, 0, 1, 1], [], []>} : vector<8x64xf32>, vector<64x32xf32>, vector<8x32xf32> -> vector<8x32xf32>
    %c0_125 = arith.constant 0 : index
    %c0_126 = arith.constant 0 : index
    %c0_127 = arith.constant 0 : index
    %298 = vector.load %arg20[%c0_125, %c0_126, %c0_127] : memref<2x1x32xf32, #tpu.memory_space<vmem>>, vector<1x1x32xf32>
    %299 = vector.shape_cast %298 : vector<1x1x32xf32> to vector<1x32xf32>
    %300 = vector.broadcast %299 : vector<1x32xf32> to vector<8x32xf32>
    %301 = arith.addf %297, %300 : vector<8x32xf32>
    %302 = arith.addf %301, %285 : vector<8x32xf32>
    %303 = vector.extract_strided_slice %17 {offsets = [2, 0], sizes = [1, 32], strides = [1, 1]} : vector<3x32xf32> to vector<1x32xf32>
    %304 = vector.shape_cast %303 : vector<1x32xf32> to vector<32xf32>
    %305 = vector.extract_strided_slice %19 {offsets = [2, 0], sizes = [1, 32], strides = [1, 1]} : vector<3x32xf32> to vector<1x32xf32>
    %306 = vector.shape_cast %305 : vector<1x32xf32> to vector<32xf32>
    %cst_128 = arith.constant dense<0.000000e+00> : vector<8xf32>
    %307 = vector.multi_reduction <add>, %302, %cst_128 [1] : vector<8x32xf32> to vector<8xf32>
    %308 = vector.shape_cast %307 : vector<8xf32> to vector<8x1xf32>
    %cst_129 = arith.constant 3.200000e+01 : f32
    %309 = vector.broadcast %cst_129 : f32 to vector<8x1xf32>
    %310 = arith.divf %308, %309 : vector<8x1xf32>
    %311 = vector.broadcast %310 : vector<8x1xf32> to vector<8x32xf32>
    %312 = arith.subf %302, %311 : vector<8x32xf32>
    %313 = arith.mulf %312, %312 : vector<8x32xf32>
    %cst_130 = arith.constant dense<0.000000e+00> : vector<8xf32>
    %314 = vector.multi_reduction <add>, %313, %cst_130 [1] : vector<8x32xf32> to vector<8xf32>
    %315 = vector.shape_cast %314 : vector<8xf32> to vector<8x1xf32>
    %cst_131 = arith.constant 3.200000e+01 : f32
    %316 = vector.broadcast %cst_131 : f32 to vector<8x1xf32>
    %317 = arith.divf %315, %316 : vector<8x1xf32>
    %318 = vector.broadcast %310 : vector<8x1xf32> to vector<8x32xf32>
    %319 = arith.subf %302, %318 : vector<8x32xf32>
    %cst_132 = arith.constant 9.99999974E-6 : f32
    %320 = vector.broadcast %cst_132 : f32 to vector<8x1xf32>
    %321 = arith.addf %317, %320 : vector<8x1xf32>
    %322 = math.rsqrt %321 : vector<8x1xf32>
    %323 = vector.broadcast %322 : vector<8x1xf32> to vector<8x32xf32>
    %324 = arith.mulf %319, %323 : vector<8x32xf32>
    %325 = vector.shape_cast %304 : vector<32xf32> to vector<1x32xf32>
    %326 = vector.broadcast %325 : vector<1x32xf32> to vector<8x32xf32>
    %327 = arith.mulf %324, %326 : vector<8x32xf32>
    %328 = vector.shape_cast %306 : vector<32xf32> to vector<1x32xf32>
    %329 = vector.broadcast %328 : vector<1x32xf32> to vector<8x32xf32>
    %330 = arith.addf %327, %329 : vector<8x32xf32>
    %c1 = arith.constant 1 : index
    %c0_133 = arith.constant 0 : index
    %c0_134 = arith.constant 0 : index
    %331 = vector.load %arg15[%c1, %c0_133, %c0_134] : memref<2x3x32xf32, #tpu.memory_space<vmem>>, vector<1x3x32xf32>
    %332 = vector.shape_cast %331 : vector<1x3x32xf32> to vector<3x32xf32>
    %c1_135 = arith.constant 1 : index
    %c0_136 = arith.constant 0 : index
    %c0_137 = arith.constant 0 : index
    %333 = vector.load %arg16[%c1_135, %c0_136, %c0_137] : memref<2x3x32xf32, #tpu.memory_space<vmem>>, vector<1x3x32xf32>
    %334 = vector.shape_cast %333 : vector<1x3x32xf32> to vector<3x32xf32>
    %c1_138 = arith.constant 1 : index
    %c0_139 = arith.constant 0 : index
    %c0_140 = arith.constant 0 : index
    %335 = vector.load %arg5[%c1_138, %c0_139, %c0_140] : memref<2x32x96xf32, #tpu.memory_space<vmem>>, vector<1x32x96xf32>
    %336 = vector.shape_cast %335 : vector<1x32x96xf32> to vector<32x96xf32>
    %cst_141 = arith.constant dense<0.000000e+00> : vector<8x96xf32>
    %337 = tpu.matmul %330, %336, %cst_141 {dimension_numbers = #tpu.dot_dimension_numbers<[1], [0], [0], [1], [0, 0, 1, 1], [], []>} : vector<8x32xf32>, vector<32x96xf32>, vector<8x96xf32> -> vector<8x96xf32>
    %c1_142 = arith.constant 1 : index
    %c0_143 = arith.constant 0 : index
    %c0_144 = arith.constant 0 : index
    %338 = vector.load %arg6[%c1_142, %c0_143, %c0_144] : memref<2x1x96xf32, #tpu.memory_space<vmem>>, vector<1x1x96xf32>
    %339 = vector.shape_cast %338 : vector<1x1x96xf32> to vector<1x96xf32>
    %340 = vector.broadcast %339 : vector<1x96xf32> to vector<8x96xf32>
    %341 = arith.addf %337, %340 : vector<8x96xf32>
    %342 = vector.extract_strided_slice %341 {offsets = [0, 0], sizes = [8, 32], strides = [1, 1]} : vector<8x96xf32> to vector<8x32xf32>
    %343 = vector.extract_strided_slice %341 {offsets = [0, 32], sizes = [8, 32], strides = [1, 1]} : vector<8x96xf32> to vector<8x32xf32>
    %344 = vector.extract_strided_slice %341 {offsets = [0, 64], sizes = [8, 32], strides = [1, 1]} : vector<8x96xf32> to vector<8x32xf32>
    %c1_145 = arith.constant 1 : index
    %c0_146 = arith.constant 0 : index
    %c0_147 = arith.constant 0 : index
    %345 = vector.load %arg7[%c1_145, %c0_146, %c0_147] : memref<2x32x32xf32, #tpu.memory_space<vmem>>, vector<1x32x32xf32>
    %346 = vector.shape_cast %345 : vector<1x32x32xf32> to vector<32x32xf32>
    %cst_148 = arith.constant 0.000000e+00 : f32
    %347 = vector.broadcast %cst_148 : f32 to vector<8x32xf32>
    %348 = vector.extract_strided_slice %342 {offsets = [0, 0], sizes = [8, 8], strides = [1, 1]} : vector<8x32xf32> to vector<8x8xf32>
    %349 = vector.extract_strided_slice %343 {offsets = [0, 0], sizes = [8, 8], strides = [1, 1]} : vector<8x32xf32> to vector<8x8xf32>
    %350 = vector.extract_strided_slice %344 {offsets = [0, 0], sizes = [8, 8], strides = [1, 1]} : vector<8x32xf32> to vector<8x8xf32>
    %cst_149 = arith.constant dense<0.000000e+00> : vector<8x8xf32>
    %351 = tpu.matmul %348, %349, %cst_149 {dimension_numbers = #tpu.dot_dimension_numbers<[1], [1], [0], [0], [0, 0, 1, 0], [], []>} : vector<8x8xf32>, vector<8x8xf32>, vector<8x8xf32> -> vector<8x8xf32>
    %cst_150 = arith.constant 0.353553385 : f32
    %352 = vector.broadcast %cst_150 : f32 to vector<8x8xf32>
    %353 = arith.mulf %351, %352 : vector<8x8xf32>
    %354 = arith.addf %353, %9 : vector<8x8xf32>
    %cst_151 = arith.constant dense<0xFF800000> : vector<8xf32>
    %355 = vector.multi_reduction <maximumf>, %354, %cst_151 [1] : vector<8x8xf32> to vector<8xf32>
    %356 = vector.shape_cast %355 : vector<8xf32> to vector<8x1xf32>
    %357 = vector.broadcast %356 : vector<8x1xf32> to vector<8x8xf32>
    %358 = arith.subf %354, %357 : vector<8x8xf32>
    %359 = math.exp %358 : vector<8x8xf32>
    %cst_152 = arith.constant dense<0.000000e+00> : vector<8xf32>
    %360 = vector.multi_reduction <add>, %359, %cst_152 [1] : vector<8x8xf32> to vector<8xf32>
    %361 = vector.shape_cast %360 : vector<8xf32> to vector<8x1xf32>
    %362 = tpu.reciprocal %361 {approx = true} : vector<8x1xf32> -> vector<8x1xf32>
    %363 = vector.broadcast %362 : vector<8x1xf32> to vector<8x8xf32>
    %364 = arith.mulf %359, %363 : vector<8x8xf32>
    %cst_153 = arith.constant dense<0.000000e+00> : vector<8x8xf32>
    %365 = tpu.matmul %364, %350, %cst_153 {dimension_numbers = #tpu.dot_dimension_numbers<[1], [0], [0], [1], [0, 0, 1, 1], [], []>} : vector<8x8xf32>, vector<8x8xf32>, vector<8x8xf32> -> vector<8x8xf32>
    %366 = vector.extract_strided_slice %346 {offsets = [0, 0], sizes = [8, 32], strides = [1, 1]} : vector<32x32xf32> to vector<8x32xf32>
    %cst_154 = arith.constant dense<0.000000e+00> : vector<8x32xf32>
    %367 = tpu.matmul %365, %366, %cst_154 {dimension_numbers = #tpu.dot_dimension_numbers<[1], [0], [0], [1], [0, 0, 1, 1], [], []>} : vector<8x8xf32>, vector<8x32xf32>, vector<8x32xf32> -> vector<8x32xf32>
    %368 = arith.addf %347, %367 : vector<8x32xf32>
    %369 = vector.extract_strided_slice %342 {offsets = [0, 8], sizes = [8, 8], strides = [1, 1]} : vector<8x32xf32> to vector<8x8xf32>
    %370 = vector.extract_strided_slice %343 {offsets = [0, 8], sizes = [8, 8], strides = [1, 1]} : vector<8x32xf32> to vector<8x8xf32>
    %371 = vector.extract_strided_slice %344 {offsets = [0, 8], sizes = [8, 8], strides = [1, 1]} : vector<8x32xf32> to vector<8x8xf32>
    %cst_155 = arith.constant dense<0.000000e+00> : vector<8x8xf32>
    %372 = tpu.matmul %369, %370, %cst_155 {dimension_numbers = #tpu.dot_dimension_numbers<[1], [1], [0], [0], [0, 0, 1, 0], [], []>} : vector<8x8xf32>, vector<8x8xf32>, vector<8x8xf32> -> vector<8x8xf32>
    %cst_156 = arith.constant 0.353553385 : f32
    %373 = vector.broadcast %cst_156 : f32 to vector<8x8xf32>
    %374 = arith.mulf %372, %373 : vector<8x8xf32>
    %375 = arith.addf %374, %9 : vector<8x8xf32>
    %cst_157 = arith.constant dense<0xFF800000> : vector<8xf32>
    %376 = vector.multi_reduction <maximumf>, %375, %cst_157 [1] : vector<8x8xf32> to vector<8xf32>
    %377 = vector.shape_cast %376 : vector<8xf32> to vector<8x1xf32>
    %378 = vector.broadcast %377 : vector<8x1xf32> to vector<8x8xf32>
    %379 = arith.subf %375, %378 : vector<8x8xf32>
    %380 = math.exp %379 : vector<8x8xf32>
    %cst_158 = arith.constant dense<0.000000e+00> : vector<8xf32>
    %381 = vector.multi_reduction <add>, %380, %cst_158 [1] : vector<8x8xf32> to vector<8xf32>
    %382 = vector.shape_cast %381 : vector<8xf32> to vector<8x1xf32>
    %383 = tpu.reciprocal %382 {approx = true} : vector<8x1xf32> -> vector<8x1xf32>
    %384 = vector.broadcast %383 : vector<8x1xf32> to vector<8x8xf32>
    %385 = arith.mulf %380, %384 : vector<8x8xf32>
    %cst_159 = arith.constant dense<0.000000e+00> : vector<8x8xf32>
    %386 = tpu.matmul %385, %371, %cst_159 {dimension_numbers = #tpu.dot_dimension_numbers<[1], [0], [0], [1], [0, 0, 1, 1], [], []>} : vector<8x8xf32>, vector<8x8xf32>, vector<8x8xf32> -> vector<8x8xf32>
    %387 = vector.extract_strided_slice %346 {offsets = [8, 0], sizes = [8, 32], strides = [1, 1]} : vector<32x32xf32> to vector<8x32xf32>
    %cst_160 = arith.constant dense<0.000000e+00> : vector<8x32xf32>
    %388 = tpu.matmul %386, %387, %cst_160 {dimension_numbers = #tpu.dot_dimension_numbers<[1], [0], [0], [1], [0, 0, 1, 1], [], []>} : vector<8x8xf32>, vector<8x32xf32>, vector<8x32xf32> -> vector<8x32xf32>
    %389 = arith.addf %368, %388 : vector<8x32xf32>
    %390 = vector.extract_strided_slice %342 {offsets = [0, 16], sizes = [8, 8], strides = [1, 1]} : vector<8x32xf32> to vector<8x8xf32>
    %391 = vector.extract_strided_slice %343 {offsets = [0, 16], sizes = [8, 8], strides = [1, 1]} : vector<8x32xf32> to vector<8x8xf32>
    %392 = vector.extract_strided_slice %344 {offsets = [0, 16], sizes = [8, 8], strides = [1, 1]} : vector<8x32xf32> to vector<8x8xf32>
    %cst_161 = arith.constant dense<0.000000e+00> : vector<8x8xf32>
    %393 = tpu.matmul %390, %391, %cst_161 {dimension_numbers = #tpu.dot_dimension_numbers<[1], [1], [0], [0], [0, 0, 1, 0], [], []>} : vector<8x8xf32>, vector<8x8xf32>, vector<8x8xf32> -> vector<8x8xf32>
    %cst_162 = arith.constant 0.353553385 : f32
    %394 = vector.broadcast %cst_162 : f32 to vector<8x8xf32>
    %395 = arith.mulf %393, %394 : vector<8x8xf32>
    %396 = arith.addf %395, %9 : vector<8x8xf32>
    %cst_163 = arith.constant dense<0xFF800000> : vector<8xf32>
    %397 = vector.multi_reduction <maximumf>, %396, %cst_163 [1] : vector<8x8xf32> to vector<8xf32>
    %398 = vector.shape_cast %397 : vector<8xf32> to vector<8x1xf32>
    %399 = vector.broadcast %398 : vector<8x1xf32> to vector<8x8xf32>
    %400 = arith.subf %396, %399 : vector<8x8xf32>
    %401 = math.exp %400 : vector<8x8xf32>
    %cst_164 = arith.constant dense<0.000000e+00> : vector<8xf32>
    %402 = vector.multi_reduction <add>, %401, %cst_164 [1] : vector<8x8xf32> to vector<8xf32>
    %403 = vector.shape_cast %402 : vector<8xf32> to vector<8x1xf32>
    %404 = tpu.reciprocal %403 {approx = true} : vector<8x1xf32> -> vector<8x1xf32>
    %405 = vector.broadcast %404 : vector<8x1xf32> to vector<8x8xf32>
    %406 = arith.mulf %401, %405 : vector<8x8xf32>
    %cst_165 = arith.constant dense<0.000000e+00> : vector<8x8xf32>
    %407 = tpu.matmul %406, %392, %cst_165 {dimension_numbers = #tpu.dot_dimension_numbers<[1], [0], [0], [1], [0, 0, 1, 1], [], []>} : vector<8x8xf32>, vector<8x8xf32>, vector<8x8xf32> -> vector<8x8xf32>
    %408 = vector.extract_strided_slice %346 {offsets = [16, 0], sizes = [8, 32], strides = [1, 1]} : vector<32x32xf32> to vector<8x32xf32>
    %cst_166 = arith.constant dense<0.000000e+00> : vector<8x32xf32>
    %409 = tpu.matmul %407, %408, %cst_166 {dimension_numbers = #tpu.dot_dimension_numbers<[1], [0], [0], [1], [0, 0, 1, 1], [], []>} : vector<8x8xf32>, vector<8x32xf32>, vector<8x32xf32> -> vector<8x32xf32>
    %410 = arith.addf %389, %409 : vector<8x32xf32>
    %411 = vector.extract_strided_slice %342 {offsets = [0, 24], sizes = [8, 8], strides = [1, 1]} : vector<8x32xf32> to vector<8x8xf32>
    %412 = vector.extract_strided_slice %343 {offsets = [0, 24], sizes = [8, 8], strides = [1, 1]} : vector<8x32xf32> to vector<8x8xf32>
    %413 = vector.extract_strided_slice %344 {offsets = [0, 24], sizes = [8, 8], strides = [1, 1]} : vector<8x32xf32> to vector<8x8xf32>
    %cst_167 = arith.constant dense<0.000000e+00> : vector<8x8xf32>
    %414 = tpu.matmul %411, %412, %cst_167 {dimension_numbers = #tpu.dot_dimension_numbers<[1], [1], [0], [0], [0, 0, 1, 0], [], []>} : vector<8x8xf32>, vector<8x8xf32>, vector<8x8xf32> -> vector<8x8xf32>
    %cst_168 = arith.constant 0.353553385 : f32
    %415 = vector.broadcast %cst_168 : f32 to vector<8x8xf32>
    %416 = arith.mulf %414, %415 : vector<8x8xf32>
    %417 = arith.addf %416, %9 : vector<8x8xf32>
    %cst_169 = arith.constant dense<0xFF800000> : vector<8xf32>
    %418 = vector.multi_reduction <maximumf>, %417, %cst_169 [1] : vector<8x8xf32> to vector<8xf32>
    %419 = vector.shape_cast %418 : vector<8xf32> to vector<8x1xf32>
    %420 = vector.broadcast %419 : vector<8x1xf32> to vector<8x8xf32>
    %421 = arith.subf %417, %420 : vector<8x8xf32>
    %422 = math.exp %421 : vector<8x8xf32>
    %cst_170 = arith.constant dense<0.000000e+00> : vector<8xf32>
    %423 = vector.multi_reduction <add>, %422, %cst_170 [1] : vector<8x8xf32> to vector<8xf32>
    %424 = vector.shape_cast %423 : vector<8xf32> to vector<8x1xf32>
    %425 = tpu.reciprocal %424 {approx = true} : vector<8x1xf32> -> vector<8x1xf32>
    %426 = vector.broadcast %425 : vector<8x1xf32> to vector<8x8xf32>
    %427 = arith.mulf %422, %426 : vector<8x8xf32>
    %cst_171 = arith.constant dense<0.000000e+00> : vector<8x8xf32>
    %428 = tpu.matmul %427, %413, %cst_171 {dimension_numbers = #tpu.dot_dimension_numbers<[1], [0], [0], [1], [0, 0, 1, 1], [], []>} : vector<8x8xf32>, vector<8x8xf32>, vector<8x8xf32> -> vector<8x8xf32>
    %429 = vector.extract_strided_slice %346 {offsets = [24, 0], sizes = [8, 32], strides = [1, 1]} : vector<32x32xf32> to vector<8x32xf32>
    %cst_172 = arith.constant dense<0.000000e+00> : vector<8x32xf32>
    %430 = tpu.matmul %428, %429, %cst_172 {dimension_numbers = #tpu.dot_dimension_numbers<[1], [0], [0], [1], [0, 0, 1, 1], [], []>} : vector<8x8xf32>, vector<8x32xf32>, vector<8x32xf32> -> vector<8x32xf32>
    %431 = arith.addf %410, %430 : vector<8x32xf32>
    %c1_173 = arith.constant 1 : index
    %c0_174 = arith.constant 0 : index
    %c0_175 = arith.constant 0 : index
    %432 = vector.load %arg8[%c1_173, %c0_174, %c0_175] : memref<2x1x32xf32, #tpu.memory_space<vmem>>, vector<1x1x32xf32>
    %433 = vector.shape_cast %432 : vector<1x1x32xf32> to vector<1x32xf32>
    %434 = vector.broadcast %433 : vector<1x32xf32> to vector<8x32xf32>
    %435 = arith.addf %431, %434 : vector<8x32xf32>
    %436 = arith.addf %435, %330 : vector<8x32xf32>
    %437 = vector.extract_strided_slice %332 {offsets = [0, 0], sizes = [1, 32], strides = [1, 1]} : vector<3x32xf32> to vector<1x32xf32>
    %438 = vector.shape_cast %437 : vector<1x32xf32> to vector<32xf32>
    %439 = vector.extract_strided_slice %334 {offsets = [0, 0], sizes = [1, 32], strides = [1, 1]} : vector<3x32xf32> to vector<1x32xf32>
    %440 = vector.shape_cast %439 : vector<1x32xf32> to vector<32xf32>
    %cst_176 = arith.constant dense<0.000000e+00> : vector<8xf32>
    %441 = vector.multi_reduction <add>, %436, %cst_176 [1] : vector<8x32xf32> to vector<8xf32>
    %442 = vector.shape_cast %441 : vector<8xf32> to vector<8x1xf32>
    %cst_177 = arith.constant 3.200000e+01 : f32
    %443 = vector.broadcast %cst_177 : f32 to vector<8x1xf32>
    %444 = arith.divf %442, %443 : vector<8x1xf32>
    %445 = vector.broadcast %444 : vector<8x1xf32> to vector<8x32xf32>
    %446 = arith.subf %436, %445 : vector<8x32xf32>
    %447 = arith.mulf %446, %446 : vector<8x32xf32>
    %cst_178 = arith.constant dense<0.000000e+00> : vector<8xf32>
    %448 = vector.multi_reduction <add>, %447, %cst_178 [1] : vector<8x32xf32> to vector<8xf32>
    %449 = vector.shape_cast %448 : vector<8xf32> to vector<8x1xf32>
    %cst_179 = arith.constant 3.200000e+01 : f32
    %450 = vector.broadcast %cst_179 : f32 to vector<8x1xf32>
    %451 = arith.divf %449, %450 : vector<8x1xf32>
    %452 = vector.broadcast %444 : vector<8x1xf32> to vector<8x32xf32>
    %453 = arith.subf %436, %452 : vector<8x32xf32>
    %cst_180 = arith.constant 9.99999974E-6 : f32
    %454 = vector.broadcast %cst_180 : f32 to vector<8x1xf32>
    %455 = arith.addf %451, %454 : vector<8x1xf32>
    %456 = math.rsqrt %455 : vector<8x1xf32>
    %457 = vector.broadcast %456 : vector<8x1xf32> to vector<8x32xf32>
    %458 = arith.mulf %453, %457 : vector<8x32xf32>
    %459 = vector.shape_cast %438 : vector<32xf32> to vector<1x32xf32>
    %460 = vector.broadcast %459 : vector<1x32xf32> to vector<8x32xf32>
    %461 = arith.mulf %458, %460 : vector<8x32xf32>
    %462 = vector.shape_cast %440 : vector<32xf32> to vector<1x32xf32>
    %463 = vector.broadcast %462 : vector<1x32xf32> to vector<8x32xf32>
    %464 = arith.addf %461, %463 : vector<8x32xf32>
    %c1_181 = arith.constant 1 : index
    %c0_182 = arith.constant 0 : index
    %c0_183 = arith.constant 0 : index
    %465 = vector.load %arg9[%c1_181, %c0_182, %c0_183] : memref<2x32x32xf32, #tpu.memory_space<vmem>>, vector<1x32x32xf32>
    %466 = vector.shape_cast %465 : vector<1x32x32xf32> to vector<32x32xf32>
    %cst_184 = arith.constant dense<0.000000e+00> : vector<8x32xf32>
    %467 = tpu.matmul %464, %466, %cst_184 {dimension_numbers = #tpu.dot_dimension_numbers<[1], [0], [0], [1], [0, 0, 1, 1], [], []>} : vector<8x32xf32>, vector<32x32xf32>, vector<8x32xf32> -> vector<8x32xf32>
    %c1_185 = arith.constant 1 : index
    %c0_186 = arith.constant 0 : index
    %c0_187 = arith.constant 0 : index
    %468 = vector.load %arg10[%c1_185, %c0_186, %c0_187] : memref<2x1x32xf32, #tpu.memory_space<vmem>>, vector<1x1x32xf32>
    %469 = vector.shape_cast %468 : vector<1x1x32xf32> to vector<1x32xf32>
    %470 = vector.broadcast %469 : vector<1x32xf32> to vector<8x32xf32>
    %471 = arith.addf %467, %470 : vector<8x32xf32>
    %c1_188 = arith.constant 1 : index
    %c0_189 = arith.constant 0 : index
    %c0_190 = arith.constant 0 : index
    %472 = vector.load %arg11[%c1_188, %c0_189, %c0_190] : memref<2x32x64xf32, #tpu.memory_space<vmem>>, vector<1x32x64xf32>
    %473 = vector.shape_cast %472 : vector<1x32x64xf32> to vector<32x64xf32>
    %cst_191 = arith.constant dense<0.000000e+00> : vector<8x64xf32>
    %474 = tpu.matmul %3, %473, %cst_191 {dimension_numbers = #tpu.dot_dimension_numbers<[1], [0], [0], [1], [0, 0, 1, 1], [], []>} : vector<8x32xf32>, vector<32x64xf32>, vector<8x64xf32> -> vector<8x64xf32>
    %c1_192 = arith.constant 1 : index
    %c0_193 = arith.constant 0 : index
    %c0_194 = arith.constant 0 : index
    %475 = vector.load %arg12[%c1_192, %c0_193, %c0_194] : memref<2x1x64xf32, #tpu.memory_space<vmem>>, vector<1x1x64xf32>
    %476 = vector.shape_cast %475 : vector<1x1x64xf32> to vector<1x64xf32>
    %477 = vector.broadcast %476 : vector<1x64xf32> to vector<8x64xf32>
    %478 = arith.addf %474, %477 : vector<8x64xf32>
    %479 = vector.extract_strided_slice %478 {offsets = [0, 0], sizes = [8, 32], strides = [1, 1]} : vector<8x64xf32> to vector<8x32xf32>
    %480 = vector.extract_strided_slice %478 {offsets = [0, 32], sizes = [8, 32], strides = [1, 1]} : vector<8x64xf32> to vector<8x32xf32>
    %c1_195 = arith.constant 1 : index
    %c0_196 = arith.constant 0 : index
    %c0_197 = arith.constant 0 : index
    %481 = vector.load %arg13[%c1_195, %c0_196, %c0_197] : memref<2x32x32xf32, #tpu.memory_space<vmem>>, vector<1x32x32xf32>
    %482 = vector.shape_cast %481 : vector<1x32x32xf32> to vector<32x32xf32>
    %cst_198 = arith.constant 0.000000e+00 : f32
    %483 = vector.broadcast %cst_198 : f32 to vector<8x32xf32>
    %484 = vector.extract_strided_slice %471 {offsets = [0, 0], sizes = [8, 8], strides = [1, 1]} : vector<8x32xf32> to vector<8x8xf32>
    %485 = vector.extract_strided_slice %479 {offsets = [0, 0], sizes = [8, 8], strides = [1, 1]} : vector<8x32xf32> to vector<8x8xf32>
    %486 = vector.extract_strided_slice %480 {offsets = [0, 0], sizes = [8, 8], strides = [1, 1]} : vector<8x32xf32> to vector<8x8xf32>
    %cst_199 = arith.constant dense<0.000000e+00> : vector<8x8xf32>
    %487 = tpu.matmul %484, %485, %cst_199 {dimension_numbers = #tpu.dot_dimension_numbers<[1], [1], [0], [0], [0, 0, 1, 0], [], []>} : vector<8x8xf32>, vector<8x8xf32>, vector<8x8xf32> -> vector<8x8xf32>
    %cst_200 = arith.constant 0.353553385 : f32
    %488 = vector.broadcast %cst_200 : f32 to vector<8x8xf32>
    %489 = arith.mulf %487, %488 : vector<8x8xf32>
    %490 = arith.addf %489, %15 : vector<8x8xf32>
    %cst_201 = arith.constant dense<0xFF800000> : vector<8xf32>
    %491 = vector.multi_reduction <maximumf>, %490, %cst_201 [1] : vector<8x8xf32> to vector<8xf32>
    %492 = vector.shape_cast %491 : vector<8xf32> to vector<8x1xf32>
    %493 = vector.broadcast %492 : vector<8x1xf32> to vector<8x8xf32>
    %494 = arith.subf %490, %493 : vector<8x8xf32>
    %495 = math.exp %494 : vector<8x8xf32>
    %cst_202 = arith.constant dense<0.000000e+00> : vector<8xf32>
    %496 = vector.multi_reduction <add>, %495, %cst_202 [1] : vector<8x8xf32> to vector<8xf32>
    %497 = vector.shape_cast %496 : vector<8xf32> to vector<8x1xf32>
    %498 = tpu.reciprocal %497 {approx = true} : vector<8x1xf32> -> vector<8x1xf32>
    %499 = vector.broadcast %498 : vector<8x1xf32> to vector<8x8xf32>
    %500 = arith.mulf %495, %499 : vector<8x8xf32>
    %cst_203 = arith.constant dense<0.000000e+00> : vector<8x8xf32>
    %501 = tpu.matmul %500, %486, %cst_203 {dimension_numbers = #tpu.dot_dimension_numbers<[1], [0], [0], [1], [0, 0, 1, 1], [], []>} : vector<8x8xf32>, vector<8x8xf32>, vector<8x8xf32> -> vector<8x8xf32>
    %502 = vector.extract_strided_slice %482 {offsets = [0, 0], sizes = [8, 32], strides = [1, 1]} : vector<32x32xf32> to vector<8x32xf32>
    %cst_204 = arith.constant dense<0.000000e+00> : vector<8x32xf32>
    %503 = tpu.matmul %501, %502, %cst_204 {dimension_numbers = #tpu.dot_dimension_numbers<[1], [0], [0], [1], [0, 0, 1, 1], [], []>} : vector<8x8xf32>, vector<8x32xf32>, vector<8x32xf32> -> vector<8x32xf32>
    %504 = arith.addf %483, %503 : vector<8x32xf32>
    %505 = vector.extract_strided_slice %471 {offsets = [0, 8], sizes = [8, 8], strides = [1, 1]} : vector<8x32xf32> to vector<8x8xf32>
    %506 = vector.extract_strided_slice %479 {offsets = [0, 8], sizes = [8, 8], strides = [1, 1]} : vector<8x32xf32> to vector<8x8xf32>
    %507 = vector.extract_strided_slice %480 {offsets = [0, 8], sizes = [8, 8], strides = [1, 1]} : vector<8x32xf32> to vector<8x8xf32>
    %cst_205 = arith.constant dense<0.000000e+00> : vector<8x8xf32>
    %508 = tpu.matmul %505, %506, %cst_205 {dimension_numbers = #tpu.dot_dimension_numbers<[1], [1], [0], [0], [0, 0, 1, 0], [], []>} : vector<8x8xf32>, vector<8x8xf32>, vector<8x8xf32> -> vector<8x8xf32>
    %cst_206 = arith.constant 0.353553385 : f32
    %509 = vector.broadcast %cst_206 : f32 to vector<8x8xf32>
    %510 = arith.mulf %508, %509 : vector<8x8xf32>
    %511 = arith.addf %510, %15 : vector<8x8xf32>
    %cst_207 = arith.constant dense<0xFF800000> : vector<8xf32>
    %512 = vector.multi_reduction <maximumf>, %511, %cst_207 [1] : vector<8x8xf32> to vector<8xf32>
    %513 = vector.shape_cast %512 : vector<8xf32> to vector<8x1xf32>
    %514 = vector.broadcast %513 : vector<8x1xf32> to vector<8x8xf32>
    %515 = arith.subf %511, %514 : vector<8x8xf32>
    %516 = math.exp %515 : vector<8x8xf32>
    %cst_208 = arith.constant dense<0.000000e+00> : vector<8xf32>
    %517 = vector.multi_reduction <add>, %516, %cst_208 [1] : vector<8x8xf32> to vector<8xf32>
    %518 = vector.shape_cast %517 : vector<8xf32> to vector<8x1xf32>
    %519 = tpu.reciprocal %518 {approx = true} : vector<8x1xf32> -> vector<8x1xf32>
    %520 = vector.broadcast %519 : vector<8x1xf32> to vector<8x8xf32>
    %521 = arith.mulf %516, %520 : vector<8x8xf32>
    %cst_209 = arith.constant dense<0.000000e+00> : vector<8x8xf32>
    %522 = tpu.matmul %521, %507, %cst_209 {dimension_numbers = #tpu.dot_dimension_numbers<[1], [0], [0], [1], [0, 0, 1, 1], [], []>} : vector<8x8xf32>, vector<8x8xf32>, vector<8x8xf32> -> vector<8x8xf32>
    %523 = vector.extract_strided_slice %482 {offsets = [8, 0], sizes = [8, 32], strides = [1, 1]} : vector<32x32xf32> to vector<8x32xf32>
    %cst_210 = arith.constant dense<0.000000e+00> : vector<8x32xf32>
    %524 = tpu.matmul %522, %523, %cst_210 {dimension_numbers = #tpu.dot_dimension_numbers<[1], [0], [0], [1], [0, 0, 1, 1], [], []>} : vector<8x8xf32>, vector<8x32xf32>, vector<8x32xf32> -> vector<8x32xf32>
    %525 = arith.addf %504, %524 : vector<8x32xf32>
    %526 = vector.extract_strided_slice %471 {offsets = [0, 16], sizes = [8, 8], strides = [1, 1]} : vector<8x32xf32> to vector<8x8xf32>
    %527 = vector.extract_strided_slice %479 {offsets = [0, 16], sizes = [8, 8], strides = [1, 1]} : vector<8x32xf32> to vector<8x8xf32>
    %528 = vector.extract_strided_slice %480 {offsets = [0, 16], sizes = [8, 8], strides = [1, 1]} : vector<8x32xf32> to vector<8x8xf32>
    %cst_211 = arith.constant dense<0.000000e+00> : vector<8x8xf32>
    %529 = tpu.matmul %526, %527, %cst_211 {dimension_numbers = #tpu.dot_dimension_numbers<[1], [1], [0], [0], [0, 0, 1, 0], [], []>} : vector<8x8xf32>, vector<8x8xf32>, vector<8x8xf32> -> vector<8x8xf32>
    %cst_212 = arith.constant 0.353553385 : f32
    %530 = vector.broadcast %cst_212 : f32 to vector<8x8xf32>
    %531 = arith.mulf %529, %530 : vector<8x8xf32>
    %532 = arith.addf %531, %15 : vector<8x8xf32>
    %cst_213 = arith.constant dense<0xFF800000> : vector<8xf32>
    %533 = vector.multi_reduction <maximumf>, %532, %cst_213 [1] : vector<8x8xf32> to vector<8xf32>
    %534 = vector.shape_cast %533 : vector<8xf32> to vector<8x1xf32>
    %535 = vector.broadcast %534 : vector<8x1xf32> to vector<8x8xf32>
    %536 = arith.subf %532, %535 : vector<8x8xf32>
    %537 = math.exp %536 : vector<8x8xf32>
    %cst_214 = arith.constant dense<0.000000e+00> : vector<8xf32>
    %538 = vector.multi_reduction <add>, %537, %cst_214 [1] : vector<8x8xf32> to vector<8xf32>
    %539 = vector.shape_cast %538 : vector<8xf32> to vector<8x1xf32>
    %540 = tpu.reciprocal %539 {approx = true} : vector<8x1xf32> -> vector<8x1xf32>
    %541 = vector.broadcast %540 : vector<8x1xf32> to vector<8x8xf32>
    %542 = arith.mulf %537, %541 : vector<8x8xf32>
    %cst_215 = arith.constant dense<0.000000e+00> : vector<8x8xf32>
    %543 = tpu.matmul %542, %528, %cst_215 {dimension_numbers = #tpu.dot_dimension_numbers<[1], [0], [0], [1], [0, 0, 1, 1], [], []>} : vector<8x8xf32>, vector<8x8xf32>, vector<8x8xf32> -> vector<8x8xf32>
    %544 = vector.extract_strided_slice %482 {offsets = [16, 0], sizes = [8, 32], strides = [1, 1]} : vector<32x32xf32> to vector<8x32xf32>
    %cst_216 = arith.constant dense<0.000000e+00> : vector<8x32xf32>
    %545 = tpu.matmul %543, %544, %cst_216 {dimension_numbers = #tpu.dot_dimension_numbers<[1], [0], [0], [1], [0, 0, 1, 1], [], []>} : vector<8x8xf32>, vector<8x32xf32>, vector<8x32xf32> -> vector<8x32xf32>
    %546 = arith.addf %525, %545 : vector<8x32xf32>
    %547 = vector.extract_strided_slice %471 {offsets = [0, 24], sizes = [8, 8], strides = [1, 1]} : vector<8x32xf32> to vector<8x8xf32>
    %548 = vector.extract_strided_slice %479 {offsets = [0, 24], sizes = [8, 8], strides = [1, 1]} : vector<8x32xf32> to vector<8x8xf32>
    %549 = vector.extract_strided_slice %480 {offsets = [0, 24], sizes = [8, 8], strides = [1, 1]} : vector<8x32xf32> to vector<8x8xf32>
    %cst_217 = arith.constant dense<0.000000e+00> : vector<8x8xf32>
    %550 = tpu.matmul %547, %548, %cst_217 {dimension_numbers = #tpu.dot_dimension_numbers<[1], [1], [0], [0], [0, 0, 1, 0], [], []>} : vector<8x8xf32>, vector<8x8xf32>, vector<8x8xf32> -> vector<8x8xf32>
    %cst_218 = arith.constant 0.353553385 : f32
    %551 = vector.broadcast %cst_218 : f32 to vector<8x8xf32>
    %552 = arith.mulf %550, %551 : vector<8x8xf32>
    %553 = arith.addf %552, %15 : vector<8x8xf32>
    %cst_219 = arith.constant dense<0xFF800000> : vector<8xf32>
    %554 = vector.multi_reduction <maximumf>, %553, %cst_219 [1] : vector<8x8xf32> to vector<8xf32>
    %555 = vector.shape_cast %554 : vector<8xf32> to vector<8x1xf32>
    %556 = vector.broadcast %555 : vector<8x1xf32> to vector<8x8xf32>
    %557 = arith.subf %553, %556 : vector<8x8xf32>
    %558 = math.exp %557 : vector<8x8xf32>
    %cst_220 = arith.constant dense<0.000000e+00> : vector<8xf32>
    %559 = vector.multi_reduction <add>, %558, %cst_220 [1] : vector<8x8xf32> to vector<8xf32>
    %560 = vector.shape_cast %559 : vector<8xf32> to vector<8x1xf32>
    %561 = tpu.reciprocal %560 {approx = true} : vector<8x1xf32> -> vector<8x1xf32>
    %562 = vector.broadcast %561 : vector<8x1xf32> to vector<8x8xf32>
    %563 = arith.mulf %558, %562 : vector<8x8xf32>
    %cst_221 = arith.constant dense<0.000000e+00> : vector<8x8xf32>
    %564 = tpu.matmul %563, %549, %cst_221 {dimension_numbers = #tpu.dot_dimension_numbers<[1], [0], [0], [1], [0, 0, 1, 1], [], []>} : vector<8x8xf32>, vector<8x8xf32>, vector<8x8xf32> -> vector<8x8xf32>
    %565 = vector.extract_strided_slice %482 {offsets = [24, 0], sizes = [8, 32], strides = [1, 1]} : vector<32x32xf32> to vector<8x32xf32>
    %cst_222 = arith.constant dense<0.000000e+00> : vector<8x32xf32>
    %566 = tpu.matmul %564, %565, %cst_222 {dimension_numbers = #tpu.dot_dimension_numbers<[1], [0], [0], [1], [0, 0, 1, 1], [], []>} : vector<8x8xf32>, vector<8x32xf32>, vector<8x32xf32> -> vector<8x32xf32>
    %567 = arith.addf %546, %566 : vector<8x32xf32>
    %c1_223 = arith.constant 1 : index
    %c0_224 = arith.constant 0 : index
    %c0_225 = arith.constant 0 : index
    %568 = vector.load %arg14[%c1_223, %c0_224, %c0_225] : memref<2x1x32xf32, #tpu.memory_space<vmem>>, vector<1x1x32xf32>
    %569 = vector.shape_cast %568 : vector<1x1x32xf32> to vector<1x32xf32>
    %570 = vector.broadcast %569 : vector<1x32xf32> to vector<8x32xf32>
    %571 = arith.addf %567, %570 : vector<8x32xf32>
    %572 = arith.addf %571, %464 : vector<8x32xf32>
    %573 = vector.extract_strided_slice %332 {offsets = [1, 0], sizes = [1, 32], strides = [1, 1]} : vector<3x32xf32> to vector<1x32xf32>
    %574 = vector.shape_cast %573 : vector<1x32xf32> to vector<32xf32>
    %575 = vector.extract_strided_slice %334 {offsets = [1, 0], sizes = [1, 32], strides = [1, 1]} : vector<3x32xf32> to vector<1x32xf32>
    %576 = vector.shape_cast %575 : vector<1x32xf32> to vector<32xf32>
    %cst_226 = arith.constant dense<0.000000e+00> : vector<8xf32>
    %577 = vector.multi_reduction <add>, %572, %cst_226 [1] : vector<8x32xf32> to vector<8xf32>
    %578 = vector.shape_cast %577 : vector<8xf32> to vector<8x1xf32>
    %cst_227 = arith.constant 3.200000e+01 : f32
    %579 = vector.broadcast %cst_227 : f32 to vector<8x1xf32>
    %580 = arith.divf %578, %579 : vector<8x1xf32>
    %581 = vector.broadcast %580 : vector<8x1xf32> to vector<8x32xf32>
    %582 = arith.subf %572, %581 : vector<8x32xf32>
    %583 = arith.mulf %582, %582 : vector<8x32xf32>
    %cst_228 = arith.constant dense<0.000000e+00> : vector<8xf32>
    %584 = vector.multi_reduction <add>, %583, %cst_228 [1] : vector<8x32xf32> to vector<8xf32>
    %585 = vector.shape_cast %584 : vector<8xf32> to vector<8x1xf32>
    %cst_229 = arith.constant 3.200000e+01 : f32
    %586 = vector.broadcast %cst_229 : f32 to vector<8x1xf32>
    %587 = arith.divf %585, %586 : vector<8x1xf32>
    %588 = vector.broadcast %580 : vector<8x1xf32> to vector<8x32xf32>
    %589 = arith.subf %572, %588 : vector<8x32xf32>
    %cst_230 = arith.constant 9.99999974E-6 : f32
    %590 = vector.broadcast %cst_230 : f32 to vector<8x1xf32>
    %591 = arith.addf %587, %590 : vector<8x1xf32>
    %592 = math.rsqrt %591 : vector<8x1xf32>
    %593 = vector.broadcast %592 : vector<8x1xf32> to vector<8x32xf32>
    %594 = arith.mulf %589, %593 : vector<8x32xf32>
    %595 = vector.shape_cast %574 : vector<32xf32> to vector<1x32xf32>
    %596 = vector.broadcast %595 : vector<1x32xf32> to vector<8x32xf32>
    %597 = arith.mulf %594, %596 : vector<8x32xf32>
    %598 = vector.shape_cast %576 : vector<32xf32> to vector<1x32xf32>
    %599 = vector.broadcast %598 : vector<1x32xf32> to vector<8x32xf32>
    %600 = arith.addf %597, %599 : vector<8x32xf32>
    %c1_231 = arith.constant 1 : index
    %c0_232 = arith.constant 0 : index
    %c0_233 = arith.constant 0 : index
    %601 = vector.load %arg17[%c1_231, %c0_232, %c0_233] : memref<2x32x64xf32, #tpu.memory_space<vmem>>, vector<1x32x64xf32>
    %602 = vector.shape_cast %601 : vector<1x32x64xf32> to vector<32x64xf32>
    %cst_234 = arith.constant dense<0.000000e+00> : vector<8x64xf32>
    %603 = tpu.matmul %600, %602, %cst_234 {dimension_numbers = #tpu.dot_dimension_numbers<[1], [0], [0], [1], [0, 0, 1, 1], [], []>} : vector<8x32xf32>, vector<32x64xf32>, vector<8x64xf32> -> vector<8x64xf32>
    %c1_235 = arith.constant 1 : index
    %c0_236 = arith.constant 0 : index
    %c0_237 = arith.constant 0 : index
    %604 = vector.load %arg18[%c1_235, %c0_236, %c0_237] : memref<2x1x64xf32, #tpu.memory_space<vmem>>, vector<1x1x64xf32>
    %605 = vector.shape_cast %604 : vector<1x1x64xf32> to vector<1x64xf32>
    %606 = vector.broadcast %605 : vector<1x64xf32> to vector<8x64xf32>
    %607 = arith.addf %603, %606 : vector<8x64xf32>
    %cst_238 = arith.constant 0.000000e+00 : f32
    %608 = vector.broadcast %cst_238 : f32 to vector<8x64xf32>
    %609 = arith.maximumf %607, %608 : vector<8x64xf32>
    %c1_239 = arith.constant 1 : index
    %c0_240 = arith.constant 0 : index
    %c0_241 = arith.constant 0 : index
    %610 = vector.load %arg19[%c1_239, %c0_240, %c0_241] : memref<2x64x32xf32, #tpu.memory_space<vmem>>, vector<1x64x32xf32>
    %611 = vector.shape_cast %610 : vector<1x64x32xf32> to vector<64x32xf32>
    %cst_242 = arith.constant dense<0.000000e+00> : vector<8x32xf32>
    %612 = tpu.matmul %609, %611, %cst_242 {dimension_numbers = #tpu.dot_dimension_numbers<[1], [0], [0], [1], [0, 0, 1, 1], [], []>} : vector<8x64xf32>, vector<64x32xf32>, vector<8x32xf32> -> vector<8x32xf32>
    %c1_243 = arith.constant 1 : index
    %c0_244 = arith.constant 0 : index
    %c0_245 = arith.constant 0 : index
    %613 = vector.load %arg20[%c1_243, %c0_244, %c0_245] : memref<2x1x32xf32, #tpu.memory_space<vmem>>, vector<1x1x32xf32>
    %614 = vector.shape_cast %613 : vector<1x1x32xf32> to vector<1x32xf32>
    %615 = vector.broadcast %614 : vector<1x32xf32> to vector<8x32xf32>
    %616 = arith.addf %612, %615 : vector<8x32xf32>
    %617 = arith.addf %616, %600 : vector<8x32xf32>
    %618 = vector.extract_strided_slice %332 {offsets = [2, 0], sizes = [1, 32], strides = [1, 1]} : vector<3x32xf32> to vector<1x32xf32>
    %619 = vector.shape_cast %618 : vector<1x32xf32> to vector<32xf32>
    %620 = vector.extract_strided_slice %334 {offsets = [2, 0], sizes = [1, 32], strides = [1, 1]} : vector<3x32xf32> to vector<1x32xf32>
    %621 = vector.shape_cast %620 : vector<1x32xf32> to vector<32xf32>
    %cst_246 = arith.constant dense<0.000000e+00> : vector<8xf32>
    %622 = vector.multi_reduction <add>, %617, %cst_246 [1] : vector<8x32xf32> to vector<8xf32>
    %623 = vector.shape_cast %622 : vector<8xf32> to vector<8x1xf32>
    %cst_247 = arith.constant 3.200000e+01 : f32
    %624 = vector.broadcast %cst_247 : f32 to vector<8x1xf32>
    %625 = arith.divf %623, %624 : vector<8x1xf32>
    %626 = vector.broadcast %625 : vector<8x1xf32> to vector<8x32xf32>
    %627 = arith.subf %617, %626 : vector<8x32xf32>
    %628 = arith.mulf %627, %627 : vector<8x32xf32>
    %cst_248 = arith.constant dense<0.000000e+00> : vector<8xf32>
    %629 = vector.multi_reduction <add>, %628, %cst_248 [1] : vector<8x32xf32> to vector<8xf32>
    %630 = vector.shape_cast %629 : vector<8xf32> to vector<8x1xf32>
    %cst_249 = arith.constant 3.200000e+01 : f32
    %631 = vector.broadcast %cst_249 : f32 to vector<8x1xf32>
    %632 = arith.divf %630, %631 : vector<8x1xf32>
    %633 = vector.broadcast %625 : vector<8x1xf32> to vector<8x32xf32>
    %634 = arith.subf %617, %633 : vector<8x32xf32>
    %cst_250 = arith.constant 9.99999974E-6 : f32
    %635 = vector.broadcast %cst_250 : f32 to vector<8x1xf32>
    %636 = arith.addf %632, %635 : vector<8x1xf32>
    %637 = math.rsqrt %636 : vector<8x1xf32>
    %638 = vector.broadcast %637 : vector<8x1xf32> to vector<8x32xf32>
    %639 = arith.mulf %634, %638 : vector<8x32xf32>
    %640 = vector.shape_cast %619 : vector<32xf32> to vector<1x32xf32>
    %641 = vector.broadcast %640 : vector<1x32xf32> to vector<8x32xf32>
    %642 = arith.mulf %639, %641 : vector<8x32xf32>
    %643 = vector.shape_cast %621 : vector<32xf32> to vector<1x32xf32>
    %644 = vector.broadcast %643 : vector<1x32xf32> to vector<8x32xf32>
    %645 = arith.addf %642, %644 : vector<8x32xf32>
    %c0_251 = arith.constant 0 : index
    %c0_252 = arith.constant 0 : index
    %c0_253 = arith.constant 0 : index
    %646 = vector.load %arg21[%c0_251, %c0_252, %c0_253] : memref<1x8x32xf32, #tpu.memory_space<vmem>>, vector<1x8x32xf32>
    %647 = vector.shape_cast %646 : vector<1x8x32xf32> to vector<8x32xf32>
    %648 = vector.shape_cast %645 : vector<8x32xf32> to vector<1x8x32xf32>
    tpu.vector_store %arg21[%c0_251, %c0_252, %c0_253], %648 {strides = array<i32>} : memref<1x8x32xf32, #tpu.memory_space<vmem>>, vector<1x8x32xf32>,
    return
  }
  func.func @transform_0(%arg0: i32) -> (i32, i32, i32) {
    %c0_i32 = arith.constant 0 : i32
    %c0_i32_0 = arith.constant 0 : i32
    %c0_i32_1 = arith.constant 0 : i32
    return %arg0, %c0_i32, %c0_i32_0 : i32, i32, i32
  }
  func.func @transform_1(%arg0: i32) -> (i32, i32, i32) {
    %c0_i32 = arith.constant 0 : i32
    %c0_i32_0 = arith.constant 0 : i32
    %c0_i32_1 = arith.constant 0 : i32
    return %arg0, %c0_i32, %c0_i32_0 : i32, i32, i32
  }
  func.func @transform_2(%arg0: i32) -> (i32, i32) {
    %c0_i32 = arith.constant 0 : i32
    %c0_i32_0 = arith.constant 0 : i32
    %c0_i32_1 = arith.constant 0 : i32
    return %c0_i32, %c0_i32_0 : i32, i32
  }
  func.func @transform_3(%arg0: i32) -> (i32, i32) {
    %c0_i32 = arith.constant 0 : i32
    %c0_i32_0 = arith.constant 0 : i32
    %c0_i32_1 = arith.constant 0 : i32
    return %c0_i32, %c0_i32_0 : i32, i32
  }
  func.func @transform_4(%arg0: i32) -> (i32, i32, i32) {
    %c0_i32 = arith.constant 0 : i32
    %c0_i32_0 = arith.constant 0 : i32
    %c0_i32_1 = arith.constant 0 : i32
    %c0_i32_2 = arith.constant 0 : i32
    return %c0_i32, %c0_i32_0, %c0_i32_1 : i32, i32, i32
  }
  func.func @transform_5(%arg0: i32) -> (i32, i32, i32) {
    %c0_i32 = arith.constant 0 : i32
    %c0_i32_0 = arith.constant 0 : i32
    %c0_i32_1 = arith.constant 0 : i32
    %c0_i32_2 = arith.constant 0 : i32
    return %c0_i32, %c0_i32_0, %c0_i32_1 : i32, i32, i32
  }
  func.func @transform_6(%arg0: i32) -> (i32, i32, i32) {
    %c0_i32 = arith.constant 0 : i32
    %c0_i32_0 = arith.constant 0 : i32
    %c0_i32_1 = arith.constant 0 : i32
    %c0_i32_2 = arith.constant 0 : i32
    return %c0_i32, %c0_i32_0, %c0_i32_1 : i32, i32, i32
  }
  func.func @transform_7(%arg0: i32) -> (i32, i32, i32) {
    %c0_i32 = arith.constant 0 : i32
    %c0_i32_0 = arith.constant 0 : i32
    %c0_i32_1 = arith.constant 0 : i32
    %c0_i32_2 = arith.constant 0 : i32
    return %c0_i32, %c0_i32_0, %c0_i32_1 : i32, i32, i32
  }
  func.func @transform_8(%arg0: i32) -> (i32, i32, i32) {
    %c0_i32 = arith.constant 0 : i32
    %c0_i32_0 = arith.constant 0 : i32
    %c0_i32_1 = arith.constant 0 : i32
    %c0_i32_2 = arith.constant 0 : i32
    return %c0_i32, %c0_i32_0, %c0_i32_1 : i32, i32, i32
  }
  func.func @transform_9(%arg0: i32) -> (i32, i32, i32) {
    %c0_i32 = arith.constant 0 : i32
    %c0_i32_0 = arith.constant 0 : i32
    %c0_i32_1 = arith.constant 0 : i32
    %c0_i32_2 = arith.constant 0 : i32
    return %c0_i32, %c0_i32_0, %c0_i32_1 : i32, i32, i32
  }
  func.func @transform_10(%arg0: i32) -> (i32, i32, i32) {
    %c0_i32 = arith.constant 0 : i32
    %c0_i32_0 = arith.constant 0 : i32
    %c0_i32_1 = arith.constant 0 : i32
    %c0_i32_2 = arith.constant 0 : i32
    return %c0_i32, %c0_i32_0, %c0_i32_1 : i32, i32, i32
  }
  func.func @transform_11(%arg0: i32) -> (i32, i32, i32) {
    %c0_i32 = arith.constant 0 : i32
    %c0_i32_0 = arith.constant 0 : i32
    %c0_i32_1 = arith.constant 0 : i32
    %c0_i32_2 = arith.constant 0 : i32
    return %c0_i32, %c0_i32_0, %c0_i32_1 : i32, i32, i32
  }
  func.func @transform_12(%arg0: i32) -> (i32, i32, i32) {
    %c0_i32 = arith.constant 0 : i32
    %c0_i32_0 = arith.constant 0 : i32
    %c0_i32_1 = arith.constant 0 : i32
    %c0_i32_2 = arith.constant 0 : i32
    return %c0_i32, %c0_i32_0, %c0_i32_1 : i32, i32, i32
  }
  func.func @transform_13(%arg0: i32) -> (i32, i32, i32) {
    %c0_i32 = arith.constant 0 : i32
    %c0_i32_0 = arith.constant 0 : i32
    %c0_i32_1 = arith.constant 0 : i32
    %c0_i32_2 = arith.constant 0 : i32
    return %c0_i32, %c0_i32_0, %c0_i32_1 : i32, i32, i32
  }
  func.func @transform_14(%arg0: i32) -> (i32, i32, i32) {
    %c0_i32 = arith.constant 0 : i32
    %c0_i32_0 = arith.constant 0 : i32
    %c0_i32_1 = arith.constant 0 : i32
    %c0_i32_2 = arith.constant 0 : i32
    return %c0_i32, %c0_i32_0, %c0_i32_1 : i32, i32, i32
  }
  func.func @transform_15(%arg0: i32) -> (i32, i32, i32) {
    %c0_i32 = arith.constant 0 : i32
    %c0_i32_0 = arith.constant 0 : i32
    %c0_i32_1 = arith.constant 0 : i32
    %c0_i32_2 = arith.constant 0 : i32
    return %c0_i32, %c0_i32_0, %c0_i32_1 : i32, i32, i32
  }
  func.func @transform_16(%arg0: i32) -> (i32, i32, i32) {
    %c0_i32 = arith.constant 0 : i32
    %c0_i32_0 = arith.constant 0 : i32
    %c0_i32_1 = arith.constant 0 : i32
    %c0_i32_2 = arith.constant 0 : i32
    return %c0_i32, %c0_i32_0, %c0_i32_1 : i32, i32, i32
  }
  func.func @transform_17(%arg0: i32) -> (i32, i32, i32) {
    %c0_i32 = arith.constant 0 : i32
    %c0_i32_0 = arith.constant 0 : i32
    %c0_i32_1 = arith.constant 0 : i32
    %c0_i32_2 = arith.constant 0 : i32
    return %c0_i32, %c0_i32_0, %c0_i32_1 : i32, i32, i32
  }
  func.func @transform_18(%arg0: i32) -> (i32, i32, i32) {
    %c0_i32 = arith.constant 0 : i32
    %c0_i32_0 = arith.constant 0 : i32
    %c0_i32_1 = arith.constant 0 : i32
    %c0_i32_2 = arith.constant 0 : i32
    return %c0_i32, %c0_i32_0, %c0_i32_1 : i32, i32, i32
  }
  func.func @transform_19(%arg0: i32) -> (i32, i32, i32) {
    %c0_i32 = arith.constant 0 : i32
    %c0_i32_0 = arith.constant 0 : i32
    %c0_i32_1 = arith.constant 0 : i32
    %c0_i32_2 = arith.constant 0 : i32
    return %c0_i32, %c0_i32_0, %c0_i32_1 : i32, i32, i32
  }
  func.func @transform_20(%arg0: i32) -> (i32, i32, i32) {
    %c0_i32 = arith.constant 0 : i32
    %c0_i32_0 = arith.constant 0 : i32
    %c0_i32_1 = arith.constant 0 : i32
    return %arg0, %c0_i32, %c0_i32_0 : i32, i32, i32
  }
}

</mosaic_0001>

<bundles_post_ra>
// kernel: tpu_custom_call.1
= control target key start
LH: loop header
LB: loop body
LE: loop exit
PB: predicated region body
PF: predicated region fallthrough
CT: control target
= control target key end

     0   :  { %s4460_s0 = inlined_call_operand.vmem [shape: f32[2,8,32], index: 0, kind: input, shape index: {}]   ;;  %s4461_s1 = inlined_call_operand.hbm [shape: f32[2,8,32], index: 1, kind: input, shape index: {}]   ;;  %s4462_s2 = inlined_call_operand.hbm [shape: f32[8,8], index: 2, kind: input, shape index: {}]   ;;  %s4463_s3 = inlined_call_operand.vmem [shape: f32[8,8], index: 3, kind: input, shape index: {}]   ;;  %s4464_s4 = inlined_call_operand.vmem [shape: f32[2,32,96], index: 4, kind: input, shape index: {}]   ;;  %s4465_s5 = inlined_call_operand.hbm [shape: f32[2,1,96], index: 5, kind: input, shape index: {}]   ;;  %s4466_s6 = inlined_call_operand.vmem [shape: f32[2,32,32], index: 6, kind: input, shape index: {}]   ;;  %s4467_s7 = inlined_call_operand.vmem [shape: f32[2,1,32], index: 7, kind: input, shape index: {}]   ;;  %s4468_s8 = inlined_call_operand.vmem [shape: f32[2,32,32], index: 8, kind: input, shape index: {}]   ;;  %s4469_s9 = inlined_call_operand.hbm [shape: f32[2,1,32], index: 9, kind: input, shape index: {}]   ;;  %s4470_s10 = inlined_call_operand.hbm [shape: f32[2,32,64], index: 10, kind: input, shape index: {}]   ;;  %s4471_s11 = inlined_call_operand.hbm [shape: f32[2,1,64], index: 11, kind: input, shape index: {}]   ;;  %s4472_s12 = inlined_call_operand.hbm [shape: f32[2,32,32], index: 12, kind: input, shape index: {}]   ;;  %s4473_s13 = inlined_call_operand.hbm [shape: f32[2,1,32], index: 13, kind: input, shape index: {}]   ;;  %s4474_s14 = inlined_call_operand.vmem [shape: f32[2,3,32], index: 14, kind: input, shape index: {}]   ;;  %s4475_s15 = inlined_call_operand.vmem [shape: f32[2,3,32], index: 15, kind: input, shape index: {}]   ;;  %s4476_s16 = inlined_call_operand.hbm [shape: f32[2,32,64], index: 16, kind: input, shape index: {}]   ;;  %s4477_s17 = inlined_call_operand.vmem [shape: f32[2,1,64], index: 17, kind: input, shape index: {}]   ;;  %s4478_s18 = inlined_call_operand.vmem [shape: f32[2,64,32], index: 18, kind: input, shape index: {}]   ;;  %s4479_s19 = inlined_call_operand.vmem [shape: f32[2,1,32], index: 19, kind: input, shape index: {}]   ;;  %s4480_s20 = inlined_call_operand.hbm [shape: f32[2,8,32], index: 20, kind: output, shape index: {}]  }
   0x1   :  { %4508 = sst [smem:[#allocation24_spill]] %s4460_s0 }
   0x2   :  { %4509 = sst [smem:[#allocation25_spill]] %s4461_s1 }
   0x3   :  { %4510 = sst [smem:[#allocation26_spill]] %s4462_s2 }
   0x4   :  { %4511 = sst [smem:[#allocation27_spill]] %s4463_s3 }
   0x5   :  { %4512 = sst [smem:[#allocation28_spill]] %s4464_s4 }
   0x6   :  { %4513 = sst [smem:[#allocation29_spill]] %s4465_s5 }
   0x7   :  { %4514 = sst [smem:[#allocation30_spill]] %s4466_s6 }
   0x8   :  { %4515 = sst [smem:[#allocation31_spill]] %s4467_s7 }
   0x9   :  { %4516 = sst [smem:[#allocation32_spill]] %s4469_s9 }
   0xa   :  { %4517 = sst [smem:[#allocation33_spill]] %s4470_s10 }
   0xb   :  { %4518 = sst [smem:[#allocation34_spill]] %s4471_s11 }
   0xc   :  { %4519 = sst [smem:[#allocation35_spill]] %s4472_s12 }
   0xd   :  { %4520 = sst [smem:[#allocation36_spill]] %s4473_s13 }
   0xe   :  { %4521 = sst [smem:[#allocation37_spill]] %s4474_s14 }
   0xf   :  { %4522 = sst [smem:[#allocation38_spill]] %s4475_s15 }
  0x10   :  { %4523 = sst [smem:[#allocation39_spill]] %s4477_s17 }
  0x11   :  { %4524 = sst [smem:[#allocation40_spill]] %s4478_s18 }
  0x12   :  { %4525 = sst [smem:[#allocation41_spill]] %s4479_s19 }
  0x13   :  { %4526 = sst [smem:[#allocation42_spill]] %s4480_s20 }
  0x14   :  { %25 = vsyncpa [#allocation3], 0 }
  0x15   :  { %27 = vsyncpa [#allocation3 + $0x1], 0 }
  0x16   :  { %28 = vsyncpa [#allocation6], 0 }
  0x17   :  { %29 = vsyncpa [#allocation9], 0 }
  0x18   :  { %30 = vsyncpa [#allocation12], 0 }
  0x19   :  { %31 = vsyncpa [#allocation15], 0 }
  0x1a   :  { %32 = vsyncpa [#allocation4], 0 }
  0x1b   :  { %34 = vsyncpa [#allocation4 + $0x1], 0  ;;  %s3812_s1 = smov 0   ;;  %s3814_s22 = smov 0  }
  0x1c   :  { %s3816_s23 = smov 0   ;;  %s3818_s24 = smov 0  }
  0x1d LB: > { %s4527_s3 = sld [smem:[#allocation26_spill]]  ;;  %s3836_s27 = sadd.s32 4294967295, %s3680_s24   ;;  %s3680_s24 = sphi %s3818_s24, %s4569_s24   ;;  %s3676_s23 = sphi %s3816_s23, %s4568_s23   ;;  %s3672_s22 = sphi %s3814_s22, %s4567_s22   ;;  %s3668_s1 = sphi %s3812_s1, %s4566_s1  }
  0x1e   : > { %p2965_p0 = scmp.ge.s32.totalorder %s3680_s24, 1  ;;  %p87_p1 = scmp.eq.s32.totalorder %s3836_s27, 0 }
  0x1f   : > { %p501_p2 = scmp.lt.s32.totalorder %s3680_s24, 3  ;;  %s3682_s4 = smov [#allocation5]  }
  0x20   : > { %s515_s29 = sshll.u32 %s3682_s4, 4  ;;  %s4529_s9 = sld [smem:[#allocation32_spill]]  ;;  %s516_s29 = int_to_ptr.vmem [resolvable:$true] %s515_s29 }
  0x21   : > { %p3841_p3 = pnand %p2965_p0, %p501_p2  ;;  %s4531_s11 = sld [smem:[#allocation34_spill]] }
  0x22   : > { %s3683_s20 = smov [#allocation8]   ;;  %s3684_s30 = smov 16  }
  0x23   : > { %s513_s26 = sshll.u32 %s4527_s3, 4  ;;  %p3128_p5 = pneg %p3841_p3  ;;  %s514_s26 = int_to_ptr.hbm [resolvable:$true] %s513_s26 }
  0x24   : > { %s555_s19 = sshll.u32 %s3683_s20, 4  ;;  %s3685_s0 = smov 1   ;;  %s556_s19 = int_to_ptr.vmem [resolvable:$true] %s555_s19 }
  0x25   : > { %p3853_p6 = pnand %p3128_p5, %p87_p1  ;;  %s4532_s13 = sld [smem:[#allocation36_spill]] }
  0x26   : > { %s553_s21 = sshll.u32 %s4529_s9, 4  ;;  %s3686_s15 = smov [#allocation11]   ;;  %s554_s21 = int_to_ptr.hbm [resolvable:$true] %s553_s21 }
  0x27   : > { %s581_s4 = sshll.u32 %s4531_s11, 4  ;;  %s583_s14 = sshll.u32 %s3686_s15, 4  ;;  %s582_s4 = int_to_ptr.hbm [resolvable:$true] %s581_s4  ;;  %s584_s14 = int_to_ptr.vmem [resolvable:$true] %s583_s14 }
  0x28   : > { %3131 = dma.hbm_to_vmem [thread:$0]  (!%p3853_p6), %s514_s26, 128, %s516_s29, [#allocation6]  }
  0x29   : > { %3137 = dma.hbm_to_vmem [thread:$0]  (!%p3853_p6), %s554_s21, 32, %s556_s19, [#allocation9], %s3684_s30, %s3684_s30, %s3685_s0  }
  0x2a   : > { %3143 = dma.hbm_to_vmem [thread:$0]  (!%p3853_p6), %s582_s4, 32, %s584_s14, [#allocation12], %s3684_s30, %s3684_s30, %s3685_s0  }
  0x2b   : > { %s609_s18 = sshll.u32 %s4532_s13, 4  ;;  %s3687_s20 = smov [#allocation14]   ;;  %s610_s18 = int_to_ptr.hbm [resolvable:$true] %s609_s18 }
  0x2c   : > { %s611_s26 = sshll.u32 %s3687_s20, 4  ;;  %s4533_s5 = sld [smem:[#allocation29_spill]]  ;;  %s612_s26 = int_to_ptr.vmem [resolvable:$true] %s611_s26 }
  0x2d   : > { %3149 = dma.hbm_to_vmem [thread:$0]  (!%p3853_p6), %s610_s18, 32, %s612_s26, [#allocation15], %s3684_s30, %s3684_s30, %s3685_s0  }
  0x2e   : > { %s4534_s10 = sld [smem:[#allocation33_spill]]  ;;  %s3688_s15 = smov [#allocation7]  }
  0x2f   : > { %s532_s21 = sshll.u32 %s3688_s15, 4  ;;  %s3689_s14 = smov [#allocation10]   ;;  %s533_s21 = int_to_ptr.vmem [resolvable:$true] %s532_s21 }
  0x30   : > { %s569_s4 = sshll.u32 %s3689_s14, 4  ;;  %s3690_s20 = smov 128   ;;  %s570_s4 = int_to_ptr.vmem [resolvable:$true] %s569_s4 }
  0x31   : > { %s3691_s29 = smov 8   ;;  %s4535_s12 = sld [smem:[#allocation35_spill]] }
  0x32   : > { %s530_s3 = sshll.u32 %s4533_s5, 4  ;;  %s629_s17 = sshll.u32 %s4476_s16, 4  ;;  %s531_s3 = int_to_ptr.hbm [resolvable:$true] %s530_s3  ;;  %s630_s17 = int_to_ptr.hbm [resolvable:$true] %s629_s17 }
  0x33   : > { %3134 = dma.hbm_to_vmem [thread:$0]  (!%p3853_p6), %s531_s3, 32, %s533_s21, [#allocation6], %s3684_s30, %s3684_s30, %s3685_s0  }
  0x34   : > { %s567_s19 = sshll.u32 %s4534_s10, 4  ;;  %s3692_s30 = smov [#allocation13]   ;;  %s568_s19 = int_to_ptr.hbm [resolvable:$true] %s567_s19 }
  0x35   : > { %3140 = dma.hbm_to_vmem [thread:$0]  (!%p3853_p6), %s568_s19, 1024, %s570_s4, [#allocation9], %s3690_s20, %s3690_s20, %s3691_s29  }
  0x36   : > { %s597_s0 = sshll.u32 %s3692_s30, 4  ;;  %s3693_s19 = smov [#allocation16]   ;;  %s598_s0 = int_to_ptr.vmem [resolvable:$true] %s597_s0 }
  0x37   : > { %s595_s25 = sshll.u32 %s4535_s12, 4  ;;  %s631_s15 = sshll.u32 %s3693_s19, 4  ;;  %s596_s25 = int_to_ptr.hbm [resolvable:$true] %s595_s25  ;;  %s632_s15 = int_to_ptr.vmem [resolvable:$true] %s631_s15 }
  0x38   : > { %3146 = dma.hbm_to_vmem [thread:$0]  (!%p3853_p6), %s596_s25, 1024, %s598_s0, [#allocation12], %s3690_s20, %s3690_s20, %s3691_s29  }
  0x39   : > { %3152 = dma.hbm_to_vmem [thread:$0]  (!%p3853_p6), %s630_s17, 1024, %s632_s15, [#allocation15], %s3690_s20, %s3690_s20, %s3691_s29  }
  0x3a   : > { %s2964_s21 = sadd.s32 4294967294, %s3680_s24   ;;  %s3893_s14 = sadd.s32 1, %s3680_s24  }
  0x3b   : > { %s70_s4 = ssub.s32 %s3680_s24, %s3893_s14  ;;  %s73_s18 = sadd.s32 1, %s3676_s23 }
  0x3c   : > { %p71_p7 = scmp.eq.s32.totalorder %s70_s4, 0  ;;  %p80_p8 = scmp.ne.s32.totalorder %s3676_s23, %s3672_s22 }
  0x3d   : > { %p81_p9 = scmp.eq.s32.totalorder %s3680_s24, 0  ;;  %p86_p10 = scmp.ne.s32.totalorder %s3672_s22, %s3668_s1 }
  0x3e   : > { %s3904_s26 = scalar_select %p71_p7, %s3676_s23, %s73_s18  }
  0x3f   : > { %p3906_p11 = por %p81_p9, %p80_p8  ;;  %p3912_p12 = por %p87_p1, %p86_p10 }
  0x40   : > { %p488_p13 = scmp.eq.s32.totalorder %s3836_s27, 1  ;;  %p494_p0 = scmp.eq.s32.totalorder %s2964_s21, 1 }
  0x41   : > { %p3169_p2 = scmp.lt.s32.totalorder %s3680_s24, 2  ;;  %s661_s20 = sand.u32 1, %s3676_s23  }
  0x42   : > { %p3919_p5 = por %p488_p13, %p80_p8  ;;  %p3923_p6 = por %p494_p0, %p86_p10 }
  0x43   : > { %s2975_s0 = sshll.u32 %s661_s20, 3  ;;  %s2976_s3 = sshll.u32 %s3680_s24, 3 }
  0x44   : > { %s4540_s19 = sld [smem:[#allocation25_spill]]  ;;  %s665_s4 = scalar_lea.vmem [#allocation2], %s2975_s0 }
  0x45   : > { %s673_s18 = sshll.u32 %s665_s4, 4  ;;  %p3933_p7 = pnand %p3169_p2, %p3906_p11  ;;  %s674_s18 = int_to_ptr.vmem [resolvable:$true] %s673_s18 }
  0x46   : > { %s662_s10 = scalar_lea.sflag [#allocation3], %s661_s20 }
  0x47   : > { %p3572_p9 = pneg %p3933_p7 }
  0x4a   : > { %s669_s15 = scalar_lea.hbm %s4540_s19, %s2976_s3  ;;  %s3575_s9 = scalar_lea.hbm %s4540_s19, 16 }
  0x4b   : > { %s671_s5 = sshll.u32 %s669_s15, 4  ;;  %s672_s5 = int_to_ptr.hbm [resolvable:$true] %s671_s5 }
  0x4c   : > { %s3568_s11 = sshra.s32 %s672_s5, 4  ;;  %s3569_s11 = int_to_ptr.hbm [resolvable:$true] %s3568_s11 }
  0x4d   : > { %s3570_s12 = scalar_lea.hbm %s3569_s11, 8  ;;  %p3576_p11 = scmp.lt.s32.totalorder %s3569_s11, %s4540_s19 }
  0x4e   : > { %p3571_p8 = scmp.ne.s32.totalorder %s3569_s11, %s3570_s12  ;;  %p3577_p0 = scmp.lt.s32.totalorder %s3575_s9, %s3570_s12 }
  0x50   : > { %p3573_p10 = pnand %p3572_p9, %p3571_p8  ;;  %p3578_p2 = por %p3577_p0, %p3576_p11 }
  0x52   : > { %p3574_p13 = pneg %p3573_p10 }
  0x54   : > { %p3579_p4 = pnand %p3578_p2, %p3574_p13 }
  0x56   : > { %3582 = shalt.err (!%p3579_p4)
}
  0x57   : > { %3156 = dma.hbm_to_vmem [thread:$0]  (!%p3933_p7), %s672_s5, 128, %s674_s18, %s662_s10  }
  0x58   : > { %682 = sbr.rel (%p3841_p3) target bundleno = 7784 (0x1e68), region = 100  ;;  %s3950_s20 = sand.u32 (!%p3841_p3), 1, %s3672_s22  }
  0x59   : > { %s4489_s15 = sshll.u32 (!%p3841_p3), %s3950_s20, 3  ;;  %s685_s4 = scalar_lea.sflag (!%p3841_p3), [#allocation3], %s3950_s20 }
  0x5a   : > { %s3956_s11 = scalar_lea.vmem (!%p3841_p3), [#allocation2], %s4489_s15 }
  0x5d   : > { %3643 = dma.done.wait (%p3912_p12), %s685_s4, 128  }
  0x5e   : > { %3645 = vsyncadd (%p3912_p12), %s685_s4, 4294967168 }
  0x5f   : > { %3647 = dma.done.wait (%p87_p1), [#allocation6], 160  }
  0x60   : > { %3649 = vsyncadd (%p87_p1), [#allocation6], 4294967136 }
  0x61   : > { %3651 = dma.done.wait (%p87_p1), [#allocation9], 1056  }
  0x62   : > { %3653 = vsyncadd (%p87_p1), [#allocation9], 4294966240 }
  0x63   : > { %3655 = dma.done.wait (%p87_p1), [#allocation12], 1056  }
  0x64   : > { %3657 = vsyncadd (%p87_p1), [#allocation12], 4294966240 }
  0x65   : > { %3659 = dma.done.wait (%p87_p1), [#allocation15], 1056  }
  0x66   : > { %3661 = vsyncadd (%p87_p1), [#allocation15], 4294966240  ;;  %p790_p3 = scmp.lt.s32.totalorder %s3836_s27, 1  ;;  %s4542_s2 = sld [smem:[#allocation28_spill]]  ;;  %vm812_vm0 = vcmask 261120   ;;  %vm843_vm1 = vcmask 64512  }
  0x67   : > { %s4543_s9 = sld [smem:[#allocation24_spill]]  ;;  %v3236_v5 = vld [vmem:[#allocation7] ss:$0 sm:$0xff]  ;;  %s4505_s13 = smov 120   ;;  %v796_v15 = vld [vmem:[#allocation5] sm:$0xff]  ;;  %vm1743_vm11 = vcmask 523264  }
  0x68   : > { %s791_s5 = scalar_select %p790_p3, %s3836_s27, 1  ;;  %vm797_vm2 = vcmp.gt.f32.partialorder %v796_v15, 0.0  ;;  %v3700_v17 = vmov -1e+09  }
  0x69   : > { %s4502_s15 = smov 72   ;;  %s4494_s12 = smov 104   ;;  %v4024_v18 = vsel %vm797_vm2, 0.0, %v3700_v17 }
  0x6a   : > { %s2988_s10 = sshll.u32 %s791_s5, 3  ;;  %s4496_s5 = smov 88  }
  0x6b   : > { %s4498_s28 = smov 80   ;;  %s4544_s6 = sld [smem:[#allocation30_spill]] }
  0x6c   : > { %v807_v0 = vld [vmem:[%s4542_s2 + $0x18] sm:$0xff]  ;;  %v806_v1 = vld [vmem:[%s4542_s2 + $0x10] sm:$0xff]  ;;  %v805_v2 = vld [vmem:[%s4542_s2 + $0x8] sm:$0xff]  ;;  %s4493_s0 = smov 64   ;;  %s4500_s3 = smov 112  }
  0x6d   : > { %s793_s17 = scalar_lea.vmem %s4543_s9, %s2988_s10  ;;  %828 = vmatpush.msra.mxu0 %v807_v0  ;;  %v804_v3 = vld [vmem:[%s4542_s2] sm:$0xff]  ;;  %s4504_s10 = smov 96  }
  0x6e   : > { %v3995_v4 = vld [vmem:[%s793_s17] sm:$0xff]  ;;  %s4491_s9 = smov 48   ;;  %s4492_s17 = smov 56  }
  0x6f   : > { %829 = vmatpush.msra.mxu0 %v806_v1  ;;  %s4490_s25 = smov 40   ;;  %s4545_s7 = sld [smem:[#allocation31_spill]] }
  0x70   : > { %s4546_s18 = sld [smem:[#allocation37_spill]]  ;;  %s4553_s4 = smov 112  }
  0x71   : > { %830 = vmatpush.msra.mxu0 %v805_v2  ;;  %v836_v8 = vld [vmem:[%s4544_s6] sm:$0xff]  ;;  %s4549_s21 = sld [smem:[#allocation40_spill]] }
  0x72   : > { %1015 = vmatpush.msra.mxu3 %v836_v8 }
  0x73   : > { %831 = vmatpush.msra.mxu0 %v804_v3 }
  0x74   : > { %2989 = vmatmul.msk.f32.vlgmr.msra.gmra.mxu0 %vm812_vm0, %v3995_v4 }
  0xf1   : > { %v833_v6 = vpop.f32.mrf.mxu0 }
  0xf2   : > { %v3999_v7 = vadd.f32 %v3236_v5, %v833_v6 }
  0xf4   : > { %909 = vrot.lane.b32.xlu2 %v3999_v7, %s4496_s5  ;;  %841 = vrot.lane.b32.xlu0 %v3999_v7, %s4504_s10 }
  0xfc   : > { %907 = vrot.lane.b32.xlu2 %v3999_v7, %s4505_s13 }
 0x104   : > { %1113 = vrot.lane.b32.xlu2 %v3999_v7, %s4502_s15 }
 0x10c   : > { %1111 = vrot.lane.b32.xlu2 %v3999_v7, %s4494_s12 }
 0x114   : > { %1022 = vrot.lane.b32.xlu2 %v3999_v7, %s4498_s28 }
 0x14e   : > { %v910_v9 = vpop.permute.xlu2 %909 }
 0x14f   : > { %2993 = vmatpush.xpose.msk.msrb.mxu0 %vm843_vm1, %v910_v9 }
 0x156   : > { %v908_v10 = vpop.permute.xlu2 %907 }
 0x157   : > { %2994 = vmatmul.msk.f32.vlgmr.msrb.gmra.mxu0 %vm843_vm1, %v908_v10 }
 0x15e   : > { %v1114_v11 = vpop.permute.xlu2 %1113 }
 0x15f   : > { %3002 = vmatpush.xpose.msk.msrb.mxu3 %vm843_vm1, %v1114_v11  ;;  %v837_v11 = vld [vmem:[%s4544_s6 + $0x8] sm:$0xff] }
 0x166   : > { %v1112_v12 = vpop.permute.xlu2 %1111  ;;  %v842_v13 = vpop.permute.xlu0 %841 }
 0x167   : > { %2990 = vmatpush.xpose.msk.msra.mxu1 %vm843_vm1, %v842_v13 }
 0x16a   : > { %2991 = vmatmul.msk.f32.vlgmr.msra.gmra.mxu1 %vm843_vm1, %v3999_v7 }
 0x16b   : > { %992 = vmatpush.msrb.mxu1 %v837_v11 }
 0x16e   : > { %v1023_v14 = vpop.permute.xlu2 %1022 }
 0x16f   : > { %2998 = vmatpush.xpose.msk.msra.mxu0 %vm843_vm1, %v1023_v14  ;;  %v839_v14 = vld [vmem:[%s4544_s6 + $0x18] sm:$0xff] }
 0x1d4   : > { %v932_v16 = vpop.f32.mrf.mxu0 }
 0x1d5   : > { %v935_v19 = vmul.f32 0.35355338, %v932_v16 }
 0x1d7   : > { %v936_v20 = vadd.f32 %v935_v19, %v4024_v18 }
 0x1d9   : > { %v937_v21 = vsel %vm843_vm1, %v936_v20, -inf }
 0x1da   : > { %938 = vmax.xlane.f32.xlu2 %v937_v21 }
 0x1e7   : > { %v865_v22 = vpop.f32.mrf.mxu1 }
 0x1e8   : > { %v868_v23 = vmul.f32 0.35355338, %v865_v22  ;;  %v3237_v22 = vld [vmem:[%s4545_s7] ss:$0 sm:$0xff] }
 0x1ea   : > { %v869_v24 = vadd.f32 %v868_v23, %v4024_v18 }
 0x1ec   : > { %v870_v25 = vsel %vm843_vm1, %v869_v24, -inf }
 0x1ed   : > { %871 = vmax.xlane.f32.xlu0 %v870_v25 }
 0x24d   : > { %v939_v42 = vpop.xlane.xlu2 %938 }
 0x24e   : > { %v940_v43 = vsub.f32 %v936_v20, %v939_v42  ;;  %v1272_v42 = vld [vmem:[#allocation10] sm:$0xff] }
 0x250   : > { %v941_v44 = vmul.f32 1.442695, %v940_v43  ;;  %v4080_v43 = vld [vmem:[%s3956_s11] sm:$0xff]  ;;  %s4558_s11 = smov 56  }
 0x260   : > { %v872_v26 = vpop.xlane.xlu0 %871 }
 0x261   : > { %v873_v27 = vsub.f32 %v869_v24, %v872_v26 }
 0x263   : > { %v874_v28 = vmul.f32 1.442695, %v873_v27 }
 0x265   : > { %3250 = vpow2.f32 %v874_v28  ;;  %v3706_v28 = vmov 32.0  }
 0x26b   : > { %v3251_v29 = vpop.eup %3250 }
 0x26c   : > { %v876_v30 = vsel %vm843_vm1, %v3251_v29, 0.0 }
 0x26d   : > { %877 = vadd.xlane.f32.xlu1 %v876_v30 }
 0x286   : > { %881 = vrot.lane.b32.xlu1 %v3999_v7, %s4493_s0  ;;  %s4555_s0 = smov 80  }
 0x28e   : > { %1020 = vrot.lane.b32.xlu1 %v3999_v7, %s4500_s3 }
 0x2e0   : > { %v878_v31 = vpop.xlane.xlu1 %877 }
 0x2e1   : > { %3252 = vrcp.f32 %v878_v31 }
 0x2e2   : > { %3254 = vpow2.f32 %v941_v44  ;;  %v1244_v44 = vld [vmem:[%s4468_s8 + $0x18] sm:$0xff] }
 0x2e7   : > { %v3253_v32 = vpop.eup %3252 }
 0x2e8   : > { %v880_v34 = vmul.f32 %v3253_v32, %v3251_v29  ;;  %v3255_v52 = vpop.eup %3254 }
 0x2e9   : > { %v943_v53 = vsel %vm843_vm1, %v3255_v52, 0.0 }
 0x2f8   : > { %v882_v33 = vpop.permute.xlu1 %881 }
 0x2f9   : > { %902 = vmatpush.msra.mxu2 %v882_v33 }
 0x2fa   : > { %2992 = vmatmul.msk.f32.vlgmr.msra.gmra.mxu2 %vm843_vm1, %v880_v34 }
 0x300   : > { %v1021_v35 = vpop.permute.xlu1 %1020 }
 0x301   : > { %2999 = vmatmul.msk.f32.vlgmr.msra.gmra.mxu0 %vm843_vm1, %v1021_v35 }
 0x37d   : > { %v904_v36 = vpop.f32.mrf.mxu2 }
 0x37e   : > { %2997 = vmatmul.msk.f32.vlgmr.msra.gmra.mxu3 %vm843_vm1, %v904_v36  ;;  %v1045_v37 = vpop.f32.mrf.mxu0 }
 0x37f   : > { %v1048_v38 = vmul.f32 0.35355338, %v1045_v37 }
 0x381   : > { %v1049_v39 = vadd.f32 %v1048_v38, %v4024_v18 }
 0x383   : > { %v1050_v40 = vsel %vm843_vm1, %v1049_v39, -inf }
 0x384   : > { %1051 = vmax.xlane.f32.xlu1 %v1050_v40  ;;  %v1274_v40 = vld [vmem:[#allocation10 + $0x10] sm:$0xff] }
 0x386   : > { %3003 = vmatmul.msk.f32.vlgmr.msrb.gmra.mxu3 %vm843_vm1, %v1112_v12 }
 0x39d   : > { %1061 = vrot.lane.b32.xlu1 %v3999_v7, %s4491_s9  ;;  %s4548_s9 = sld [smem:[#allocation27_spill]] }
 0x3a3   : > { %v799_v11 = vld [vmem:[%s4548_s9] sm:$0xff]  ;;  %s4559_s9 = smov 48  }
 0x3a4   : > { %vm800_vm7 = vcmp.gt.f32.partialorder %v799_v11, 0.0  ;;  %v1304_v11 = vld [vmem:[#allocation13 + $0x8] sm:$0xff] }
 0x3f7   : > { %v1052_v46 = vpop.xlane.xlu1 %1051 }
 0x3f8   : > { %v1053_v49 = vsub.f32 %v1049_v39, %v1052_v46  ;;  %v1275_v39 = vld [vmem:[#allocation10 + $0x18] sm:$0xff]  ;;  %v1242_v46 = vld [vmem:[%s4468_s8 + $0x8] sm:$0xff] }
 0x3f9   : > { %1295 = vmatpush.msra.mxu3 %v1275_v39 }
 0x3fa   : > { %v1054_v51 = vmul.f32 1.442695, %v1053_v49 }
 0x3fb   : > { %1296 = vmatpush.msra.mxu3 %v1274_v40 }
 0x3fc   : > { %3256 = vpow2.f32 %v1054_v51 }
 0x401   : > { %v4043_v41 = vpop.f32.mrf.mxu3 }
 0x402   : > { %v3257_v54 = vpop.eup %3256 }
 0x403   : > { %v1056_v55 = vsel %vm843_vm1, %v3257_v54, 0.0 }
 0x409   : > { %v1136_v45 = vpop.f32.mrf.mxu3 }
 0x40a   : > { %v1139_v47 = vmul.f32 0.35355338, %v1136_v45  ;;  %v1243_v45 = vld [vmem:[%s4468_s8 + $0x10] sm:$0xff] }
 0x40c   : > { %v1140_v48 = vadd.f32 %v1139_v47, %v4024_v18  ;;  %v1241_v47 = vld [vmem:[%s4468_s8] sm:$0xff] }
 0x40e   : > { %v1141_v50 = vsel %vm843_vm1, %v1140_v48, -inf }
 0x40f   : > { %1142 = vmax.xlane.f32.xlu0 %v1141_v50  ;;  %v1062_v2 = vpop.permute.xlu1 %1061 }
 0x417   : > { %944 = vadd.xlane.f32.xlu0 %v943_v53 }
 0x41f   : > { %1057 = vadd.xlane.f32.xlu0 %v1056_v55  ;;  %v4100_v55 = vld [vmem:[%s4546_s18] sm:$0x7] }
 0x433   : > { %948 = vrot.lane.b32.xlu0 %v3999_v7, %s4492_s17  ;;  %s4554_s17 = smov 64  }
 0x482   : > { %v1143_v56 = vpop.xlane.xlu0 %1142 }
 0x483   : > { %v1144_v57 = vsub.f32 %v1140_v48, %v1143_v56 }
 0x485   : > { %v1145_v58 = vmul.f32 1.442695, %v1144_v57 }
 0x487   : > { %3258 = vpow2.f32 %v1145_v58 }
 0x48a   : > { %v945_v61 = vpop.xlane.xlu0 %944 }
 0x48b   : > { %3260 = vrcp.f32 %v945_v61 }
 0x48d   : > { %v3259_v59 = vpop.eup %3258 }
 0x48e   : > { %v1147_v60 = vsel %vm843_vm1, %v3259_v59, 0.0 }
 0x48f   : > { %1148 = vadd.xlane.f32.xlu2 %v1147_v60 }
 0x491   : > { %v3261_v63 = vpop.eup %3260 }
 0x492   : > { %v1058_v62 = vpop.xlane.xlu0 %1057  ;;  %v947_v1 = vmul.f32 %v3261_v63, %v3255_v52 }
 0x493   : > { %3262 = vrcp.f32 %v1058_v62 }
 0x499   : > { %v3263_v3 = vpop.eup %3262 }
 0x49a   : > { %v1060_v5 = vmul.f32 %v3263_v3, %v3257_v54 }
 0x4a5   : > { %v949_v0 = vpop.permute.xlu0 %948 }
 0x4a6   : > { %969 = vmatpush.msrb.mxu2 %v949_v0 }
 0x4a7   : > { %1152 = vrot.lane.b32.xlu2 %v3999_v7, %s4490_s25  ;;  %2995 = vmatmul.msk.f32.vlgmr.msrb.gmra.mxu2 %vm843_vm1, %v947_v1  ;;  %v838_v7 = vld [vmem:[%s4544_s6 + $0x10] sm:$0xff]  ;;  %s4547_s25 = sld [smem:[#allocation38_spill]]  ;;  %v3238_v1 = vld [vmem:[#allocation11] ss:$0 sm:$0xff] }
 0x4a8   : > { %1082 = vmatpush.msra.mxu2 %v1062_v2  ;;  %1105 = vmatpush.msra.mxu1 %v838_v7 }
 0x4aa   : > { %1196 = vmatpush.msrb.mxu2 %v839_v14 }
 0x4ad   : > { %v4105_v58 = vld [vmem:[%s4547_s25] sm:$0x7] }
 0x4ae   : > { %v1239_v62 = vperm.slane %v4105_v58, 0 }
 0x4af   : > { %3000 = vmatmul.msk.f32.vlgmr.msra.gmra.mxu2 %vm843_vm1, %v1060_v5  ;;  %v3239_v5 = vld [vmem:[#allocation8] ss:$0 sm:$0xff] }
 0x502   : > { %v1149_v6 = vpop.xlane.xlu2 %1148 }
 0x503   : > { %3264 = vrcp.f32 %v1149_v6 }
 0x504   : > { %3266 = vrcp.f32 %v3706_v28 }
 0x509   : > { %v3265_v8 = vpop.eup %3264 }
 0x50a   : > { %v1151_v9 = vmul.f32 %v3265_v8, %v3259_v59  ;;  %v1153_v10 = vpop.permute.xlu2 %1152  ;;  %v3267_v29 = vpop.eup %3266  ;;  %v1237_v59 = vperm.slane %v4100_v55, 0 }
 0x50b   : > { %1173 = vmatpush.msrb.mxu0 %v1153_v10  ;;  %v1212_v30 = vmul.f32 32.0, %v3267_v29  ;;  %vm1216_vm3 = vweird.f32 %v3267_v29 }
 0x50c   : > { %3004 = vmatmul.msk.f32.vlgmr.msrb.gmra.mxu0 %vm843_vm1, %v1151_v9 }
 0x50d   : > { %v1213_v31 = vsub.f32 1.0, %v1212_v30 }
 0x50f   : > { %v1214_v32 = vmul.f32 %v3267_v29, %v1213_v31 }
 0x511   : > { %v1215_v33 = vadd.f32 %v3267_v29, %v1214_v32 }
 0x513   : > { %v4075_v34 = vsel %vm1216_vm3, %v3267_v29, %v1215_v33 }
 0x52a   : > { %v971_v12 = vpop.f32.mrf.mxu2 }
 0x52b   : > { %2996 = vmatmul.msk.f32.vlgmr.msrb.gmra.mxu1 %vm843_vm1, %v971_v12  ;;  %v4128_v12 = vsel %vm800_vm7, 0.0, %v3700_v17 }
 0x52c   : > { %1264 = vmatpush.msrb.mxu1 %v1244_v44 }
 0x52e   : > { %1265 = vmatpush.msrb.mxu1 %v1243_v45 }
 0x530   : > { %1266 = vmatpush.msrb.mxu1 %v1242_v46 }
 0x532   : > { %v1084_v13 = vpop.f32.mrf.mxu2  ;;  %1267 = vmatpush.msrb.mxu1 %v1241_v47 }
 0x533   : > { %3001 = vmatmul.msk.f32.vlgmr.msra.gmra.mxu1 %vm843_vm1, %v1084_v13 }
 0x589   : > { %v1175_v15 = vpop.f32.mrf.mxu0 }
 0x58a   : > { %3005 = vmatmul.msk.f32.vlgmr.msrb.gmra.mxu2 %vm843_vm1, %v1175_v15 }
 0x5a8   : > { %v994_v16 = vpop.f32.mrf.mxu1 }
 0x5a9   : > { %v1018_v20 = vadd.f32 %v4043_v41, %v994_v16  ;;  %v1273_v41 = vld [vmem:[#allocation10 + $0x8] sm:$0xff] }
 0x5aa   : > { %1297 = vmatpush.msra.mxu3 %v1273_v41 }
 0x5ac   : > { %1298 = vmatpush.msra.mxu3 %v1272_v42 }
 0x5ad   : > { %3007 = vmatmul.msk.f32.vlgmr.msra.gmra.mxu3 %vm812_vm0, %v4080_v43 }
 0x5b0   : > { %v1107_v19 = vpop.f32.mrf.mxu1 }
 0x5b1   : > { %v1110_v21 = vadd.f32 %v1107_v19, %v1018_v20 }
 0x60d   : > { %v1198_v23 = vpop.f32.mrf.mxu2 }
 0x60e   : > { %v1201_v24 = vadd.f32 %v1198_v23, %v1110_v21 }
 0x610   : > { %v1206_v25 = vadd.f32 %v3237_v22, %v1201_v24 }
 0x612   : > { %v1207_v26 = vadd.f32 %v1206_v25, %v3995_v4 }
 0x614   : > { %v1208_v27 = vsel %vm812_vm0, %v1207_v26, 0.0 }
 0x615   : > { %1209 = vadd.xlane.f32.xlu0 %v1208_v27 }
 0x630   : > { %v1300_v2 = vpop.f32.mrf.mxu3 }
 0x631   : > { %v4113_v3 = vadd.f32 %v3238_v1, %v1300_v2 }
 0x633   : > { %3008 = vmatpush.xpose.msk.msra.mxu0 %vm843_vm1, %v4113_v3 }
 0x637   : > { %1457 = vmatpush.msrb.mxu0 %v1304_v11 }
 0x688   : > { %v1210_v35 = vpop.xlane.xlu0 %1209 }
 0x689   : > { %v1218_v36 = vmul.f32 %v4075_v34, %v1210_v35 }
 0x68b   : > { %v1219_v37 = vsub.f32 %v1207_v26, %v1218_v36 }
 0x68d   : > { %v1220_v38 = vmul.f32 %v1219_v37, %v1219_v37 }
 0x68f   : > { %v1221_v4 = vsel %vm812_vm0, %v1220_v38, 0.0 }
 0x690   : > { %1222 = vadd.xlane.f32.xlu1 %v1221_v4 }
 0x6a9   : > { %1374 = vrot.lane.b32.xlu1 %v4113_v3, %s4505_s13 }
 0x6b1   : > { %1487 = vrot.lane.b32.xlu1 %v4113_v3, %s4500_s3 }
 0x703   : > { %v1223_v48 = vpop.xlane.xlu1 %1222 }
 0x704   : > { %v1224_v49 = vmul.f32 %v1223_v48, %v4075_v34 }
 0x706   : > { %v1225_v50 = vadd.f32 1e-05, %v1224_v49 }
 0x708   : > { %3268 = vrsqrt.f32 %v1225_v50  ;;  %vm1232_vm5 = vweird.f32 %v1225_v50 }
 0x70e   : > { %v3269_v51 = vpop.eup %3268 }
 0x70f   : > { %v1227_v52 = vmul.f32 %v3269_v51, %v1225_v50  ;;  %vm1233_vm4 = vweird.f32 %v3269_v51 }
 0x710   : > { %vm1234_vm6 = vmor %vm1232_vm5, %vm1233_vm4 }
 0x711   : > { %v1228_v53 = vmul.f32 %v3269_v51, %v1227_v52 }
 0x713   : > { %v1229_v54 = vmul.f32 0.5, %v1228_v53 }
 0x715   : > { %v1230_v56 = vsub.f32 1.5, %v1229_v54 }
 0x717   : > { %v1231_v57 = vmul.f32 %v3269_v51, %v1230_v56 }
 0x719   : > { %v1235_v60 = vsel %vm1234_vm6, %v3269_v51, %v1231_v57 }
 0x71a   : > { %v1236_v61 = vmul.f32 %v1235_v60, %v1219_v37  ;;  %v1303_v37 = vld [vmem:[#allocation13] sm:$0xff] }
 0x71b   : > { %v1375_v9 = vpop.permute.xlu1 %1374 }
 0x71c   : > { %v1238_v63 = vmul.f32 %v1237_v59, %v1236_v61  ;;  %3011 = vmatpush.xpose.msk.msra.mxu1 %vm843_vm1, %v1375_v9 }
 0x71e   : > { %v4109_v0 = vadd.f32 %v1239_v62, %v1238_v63 }
 0x720   : > { %3006 = vmatmul.msk.f32.vlgmr.msrb.gmra.mxu1 %vm812_vm0, %v4109_v0 }
 0x723   : > { %v1488_v10 = vpop.permute.xlu1 %1487 }
 0x724   : > { %3016 = vmatpush.xpose.msk.msrb.mxu1 %vm843_vm1, %v1488_v10 }
 0x79d   : > { %v1269_v6 = vpop.f32.mrf.mxu1 }
 0x79e   : > { %v1270_v8 = vadd.f32 %v3239_v5, %v1269_v6 }
 0x7a0   : > { %3009 = vmatmul.msk.f32.vlgmr.msra.gmra.mxu0 %vm843_vm1, %v1270_v8 }
 0x81d   : > { %v1330_v7 = vpop.f32.mrf.mxu0 }
 0x81e   : > { %v1333_v13 = vmul.f32 0.35355338, %v1330_v7  ;;  %v1305_v7 = vld [vmem:[#allocation13 + $0x10] sm:$0xff] }
 0x81f   : > { %1570 = vmatpush.msra.mxu0 %v1305_v7 }
 0x820   : > { %v1334_v14 = vadd.f32 %v1333_v13, %v4128_v12 }
 0x822   : > { %v1335_v15 = vsel %vm843_vm1, %v1334_v14, -inf }
 0x823   : > { %1336 = vmax.xlane.f32.xlu2 %v1335_v15 }
 0x83b   : > { %1372 = vrot.lane.b32.xlu2 %v1270_v8, %s4505_s13 }
 0x843   : > { %1485 = vrot.lane.b32.xlu2 %v1270_v8, %s4500_s3  ;;  %s4550_s3 = sld [smem:[#allocation39_spill]] }
 0x896   : > { %v1337_v16 = vpop.xlane.xlu2 %1336 }
 0x897   : > { %v1338_v19 = vsub.f32 %v1334_v14, %v1337_v16 }
 0x899   : > { %v1339_v20 = vmul.f32 1.442695, %v1338_v19 }
 0x89b   : > { %3270 = vpow2.f32 %v1339_v20 }
 0x89e   : > { %v1373_v21 = vpop.permute.xlu2 %1372 }
 0x89f   : > { %3012 = vmatmul.msk.f32.vlgmr.msra.gmra.mxu1 %vm843_vm1, %v1373_v21  ;;  %v1306_v21 = vld [vmem:[#allocation13 + $0x18] sm:$0xff] }
 0x8a1   : > { %v3271_v22 = vpop.eup %3270 }
 0x8a2   : > { %v1341_v17 = vsel %vm843_vm1, %v3271_v22, 0.0 }
 0x8a3   : > { %1342 = vadd.xlane.f32.xlu0 %v1341_v17 }
 0x8a6   : > { %v1486_v23 = vpop.permute.xlu2 %1485 }
 0x8a7   : > { %3017 = vmatmul.msk.f32.vlgmr.msrb.gmra.mxu1 %vm843_vm1, %v1486_v23 }
 0x8b7   : > { %1346 = vrot.lane.b32.xlu0 %v4113_v3, %s4504_s10 }
 0x8bf   : > { %1578 = vrot.lane.b32.xlu0 %v4113_v3, %s4494_s12 }
 0x8c7   : > { %1576 = vrot.lane.b32.xlu0 %v1270_v8, %s4494_s12  ;;  %s4557_s12 = smov 104  }
 0x916   : > { %v1343_v25 = vpop.xlane.xlu0 %1342 }
 0x917   : > { %3272 = vrcp.f32 %v1343_v25  ;;  %v3240_v25 = vld [vmem:[#allocation14] ss:$0 sm:$0xff] }
 0x91c   : > { %v1397_v24 = vpop.f32.mrf.mxu1 }
 0x91d   : > { %v1400_v26 = vmul.f32 0.35355338, %v1397_v24  ;;  %v3273_v31 = vpop.eup %3272 }
 0x91e   : > { %v1345_v33 = vmul.f32 %v3273_v31, %v3271_v22 }
 0x91f   : > { %v1401_v27 = vadd.f32 %v1400_v26, %v4128_v12 }
 0x921   : > { %v1402_v28 = vsel %vm843_vm1, %v1401_v27, -inf }
 0x922   : > { %1403 = vmax.xlane.f32.xlu0 %v1402_v28 }
 0x924   : > { %v1510_v29 = vpop.f32.mrf.mxu1 }
 0x925   : > { %v1513_v30 = vmul.f32 0.35355338, %v1510_v29 }
 0x927   : > { %v1514_v32 = vadd.f32 %v1513_v30, %v4128_v12 }
 0x929   : > { %v1347_v35 = vpop.permute.xlu0 %1346  ;;  %v1515_v36 = vsel %vm843_vm1, %v1514_v32, -inf }
 0x92a   : > { %1367 = vmatpush.msra.mxu2 %v1347_v35  ;;  %1516 = vmax.xlane.f32.xlu1 %v1515_v36 }
 0x92b   : > { %3010 = vmatmul.msk.f32.vlgmr.msra.gmra.mxu2 %vm843_vm1, %v1345_v33 }
 0x92c   : > { %1480 = vmatpush.msrb.mxu2 %v1303_v37  ;;  %v1702_v37 = vld [vmem:[#allocation16 + $0x18] sm:$0xff] }
 0x931   : > { %v1579_v38 = vpop.permute.xlu0 %1578 }
 0x932   : > { %3020 = vmatpush.xpose.msk.msra.mxu2 %vm843_vm1, %v1579_v38  ;;  %v1701_v38 = vld [vmem:[#allocation16 + $0x10] sm:$0xff] }
 0x939   : > { %v1577_v4 = vpop.permute.xlu0 %1576 }
 0x995   : > { %v1404_v39 = vpop.xlane.xlu0 %1403 }
 0x996   : > { %v1405_v40 = vsub.f32 %v1401_v27, %v1404_v39  ;;  %v1699_v39 = vld [vmem:[#allocation16] sm:$0xff] }
 0x998   : > { %v1406_v41 = vmul.f32 1.442695, %v1405_v40  ;;  %v1737_v40 = vld [vmem:[%s4549_s21 + $0x30] sm:$0xff] }
 0x99a   : > { %3274 = vpow2.f32 %v1406_v41  ;;  %v1736_v41 = vld [vmem:[%s4549_s21 + $0x28] sm:$0xff] }
 0x99d   : > { %v1517_v42 = vpop.xlane.xlu1 %1516 }
 0x99e   : > { %v1518_v44 = vsub.f32 %v1514_v32, %v1517_v42 }
 0x9a0   : > { %v3275_v45 = vpop.eup %3274  ;;  %v1519_v46 = vmul.f32 1.442695, %v1518_v44 }
 0x9a1   : > { %v1408_v47 = vsel %vm843_vm1, %v3275_v45, 0.0 }
 0x9a2   : > { %3276 = vpow2.f32 %v1519_v46  ;;  %1409 = vadd.xlane.f32.xlu0 %v1408_v47  ;;  %v1734_v47 = vld [vmem:[%s4549_s21 + $0x18] sm:$0xff] }
 0x9a8   : > { %v3277_v48 = vpop.eup %3276 }
 0x9a9   : > { %v1521_v49 = vsel %vm843_vm1, %v3277_v48, 0.0 }
 0x9aa   : > { %1522 = vadd.xlane.f32.xlu1 %v1521_v49 }
 0x9ae   : > { %v1369_v50 = vpop.f32.mrf.mxu2 }
 0x9af   : > { %3015 = vmatmul.msk.f32.vlgmr.msrb.gmra.mxu2 %vm843_vm1, %v1369_v50 }
 0x9b7   : > { %3021 = vmatmul.msk.f32.vlgmr.msra.gmra.mxu2 %vm843_vm1, %v1577_v4  ;;  %v1700_v4 = vld [vmem:[#allocation16 + $0x8] sm:$0xff] }
 0x9c3   : > { %1526 = vrot.lane.b32.xlu1 %v4113_v3, %s4498_s28  ;;  %s4551_s28 = sld [smem:[#allocation41_spill]] }
 0xa15   : > { %v1410_v57 = vpop.xlane.xlu0 %1409 }
 0xa16   : > { %3278 = vrcp.f32 %v1410_v57 }
 0xa1c   : > { %v3279_v63 = vpop.eup %3278 }
 0xa1d   : > { %v1523_v61 = vpop.xlane.xlu1 %1522  ;;  %v1412_v1 = vmul.f32 %v3279_v63, %v3275_v45  ;;  %v1735_v45 = vld [vmem:[%s4549_s21 + $0x20] sm:$0xff]  ;;  %v1732_v63 = vld [vmem:[%s4549_s21 + $0x8] sm:$0xff] }
 0xa32   : > { %v1482_v51 = vpop.f32.mrf.mxu2 }
 0xa35   : > { %v1527_v5 = vpop.permute.xlu1 %1526 }
 0xa3a   : > { %v1601_v52 = vpop.f32.mrf.mxu2 }
 0xa3b   : > { %v1604_v53 = vmul.f32 0.35355338, %v1601_v52 }
 0xa3d   : > { %v1605_v54 = vadd.f32 %v1604_v53, %v4128_v12 }
 0xa3f   : > { %v1606_v56 = vsel %vm843_vm1, %v1605_v54, -inf }
 0xa40   : > { %1607 = vmax.xlane.f32.xlu2 %v1606_v56 }
 0xa58   : > { %1413 = vrot.lane.b32.xlu2 %v4113_v3, %s4496_s5  ;;  %s4556_s5 = smov 88  }
 0xab3   : > { %v1608_v59 = vpop.xlane.xlu2 %1607 }
 0xab4   : > { %v1609_v60 = vsub.f32 %v1605_v54, %v1608_v59  ;;  %v1695_v54 = vperm.slane %v4100_v55, 1  ;;  %v1697_v59 = vperm.slane %v4105_v58, 1 }
 0xab6   : > { %v1610_v62 = vmul.f32 1.442695, %v1609_v60 }
 0xab8   : > { %3280 = vpow2.f32 %v1610_v62  ;;  %v1733_v62 = vld [vmem:[%s4549_s21 + $0x10] sm:$0xff] }
 0xab9   : > { %3282 = vrcp.f32 %v1523_v61 }
 0xabb   : > { %v1414_v2 = vpop.permute.xlu2 %1413 }
 0xabc   : > { %1434 = vmatpush.msrb.mxu3 %v1414_v2  ;;  %v3241_v2 = vld [vmem:[%s4550_s3] ss:$0 sm:$0xff] }
 0xabd   : > { %3013 = vmatmul.msk.f32.vlgmr.msrb.gmra.mxu3 %vm843_vm1, %v1412_v1  ;;  %v1731_v1 = vld [vmem:[%s4549_s21] sm:$0xff] }
 0xabe   : > { %v3281_v6 = vpop.eup %3280  ;;  %1547 = vmatpush.msra.mxu3 %v1527_v5 }
 0xabf   : > { %v1612_v8 = vsel %vm843_vm1, %v3281_v6, 0.0  ;;  %v3283_v9 = vpop.eup %3282 }
 0xac0   : > { %1613 = vadd.xlane.f32.xlu0 %v1612_v8  ;;  %v1525_v10 = vmul.f32 %v3283_v9, %v3277_v48  ;;  %1661 = vmatpush.msrb.mxu3 %v1306_v21  ;;  %v3242_v9 = vld [vmem:[%s4551_s28] ss:$0 sm:$0xff]  ;;  %v3031_v21 = vld [vmem:[%s4542_s2 + $0x38] sm:$0xff] }
 0xac5   : > { %3018 = vmatmul.msk.f32.vlgmr.msra.gmra.mxu3 %vm843_vm1, %v1525_v10 }
 0xad4   : > { %1617 = vrot.lane.b32.xlu0 %v4113_v3, %s4502_s15  ;;  %s4552_s15 = smov 72  }
 0xb33   : > { %v1614_v13 = vpop.xlane.xlu0 %1613 }
 0xb34   : > { %3284 = vrcp.f32 %v1614_v13 }
 0xb3a   : > { %v3285_v15 = vpop.eup %3284 }
 0xb3b   : > { %v1616_v16 = vmul.f32 %v3285_v15, %v3281_v6 }
 0xb40   : > { %v1436_v14 = vpop.f32.mrf.mxu3 }
 0xb41   : > { %3014 = vmatmul.msk.f32.vlgmr.msrb.gmra.mxu0 %vm843_vm1, %v1436_v14 }
 0xb42   : > { %1722 = vmatpush.msrb.mxu0 %v1702_v37 }
 0xb44   : > { %1723 = vmatpush.msrb.mxu0 %v1701_v38 }
 0xb46   : > { %v1618_v19 = vpop.permute.xlu0 %1617  ;;  %1724 = vmatpush.msrb.mxu0 %v1700_v4  ;;  %v3243_v4 = vld [vmem:[#allocation7 + $0x1] ss:$0 sm:$0xff] }
 0xb47   : > { %1638 = vmatpush.msra.mxu1 %v1618_v19 }
 0xb48   : > { %v1549_v20 = vpop.f32.mrf.mxu3  ;;  %3022 = vmatmul.msk.f32.vlgmr.msra.gmra.mxu1 %vm843_vm1, %v1616_v16  ;;  %1725 = vmatpush.msrb.mxu0 %v1699_v39 }
 0xb49   : > { %3019 = vmatmul.msk.f32.vlgmr.msra.gmra.mxu0 %vm843_vm1, %v1549_v20  ;;  %1823 = vmatpush.msrb.mxu1 %v3031_v21 }
 0xbbe   : > { %v1459_v22 = vpop.f32.mrf.mxu0 }
 0xbbf   : > { %v1483_v23 = vadd.f32 %v1482_v51, %v1459_v22  ;;  %v3029_v22 = vld [vmem:[%s4542_s2 + $0x28] sm:$0xff] }
 0xbc5   : > { %v1640_v3 = vpop.f32.mrf.mxu1 }
 0xbc6   : > { %3023 = vmatmul.msk.f32.vlgmr.msrb.gmra.mxu3 %vm843_vm1, %v1640_v3  ;;  %v1572_v17 = vpop.f32.mrf.mxu0  ;;  %v3030_v3 = vld [vmem:[%s4542_s2 + $0x30] sm:$0xff] }
 0xbc7   : > { %v1575_v24 = vadd.f32 %v1572_v17, %v1483_v23  ;;  %1824 = vmatpush.msrb.mxu1 %v3030_v3  ;;  %v3028_v17 = vld [vmem:[%s4542_s2 + $0x20] sm:$0xff]  ;;  %s4561_s2 = smov 120  }
 0xbc9   : > { %1825 = vmatpush.msrb.mxu1 %v3029_v22 }
 0xbcb   : > { %1826 = vmatpush.msrb.mxu1 %v3028_v17 }
 0xc49   : > { %v1663_v26 = vpop.f32.mrf.mxu3 }
 0xc4a   : > { %v1666_v27 = vadd.f32 %v1663_v26, %v1575_v24 }
 0xc4c   : > { %v1671_v28 = vadd.f32 %v3240_v25, %v1666_v27 }
 0xc4e   : > { %v1672_v29 = vadd.f32 %v1671_v28, %v4109_v0  ;;  %v1738_v0 = vld [vmem:[%s4549_s21 + $0x38] sm:$0xff] }
 0xc4f   : > { %1755 = vmatpush.msrb.mxu2 %v1738_v0 }
 0xc50   : > { %v1673_v30 = vsel %vm812_vm0, %v1672_v29, 0.0 }
 0xc51   : > { %1674 = vadd.xlane.f32.xlu2 %v1673_v30  ;;  %1756 = vmatpush.msrb.mxu2 %v1737_v40 }
 0xc53   : > { %1757 = vmatpush.msrb.mxu2 %v1736_v41 }
 0xc55   : > { %1758 = vmatpush.msrb.mxu2 %v1735_v45 }
 0xc57   : > { %1759 = vmatpush.msrb.mxu2 %v1734_v47 }
 0xc59   : > { %1760 = vmatpush.msrb.mxu2 %v1733_v62 }
 0xc5b   : > { %1761 = vmatpush.msrb.mxu2 %v1732_v63 }
 0xc5d   : > { %1762 = vmatpush.msrb.mxu2 %v1731_v1 }
 0xcc4   : > { %v1675_v31 = vpop.xlane.xlu2 %1674 }
 0xcc5   : > { %v1676_v32 = vmul.f32 %v1675_v31, %v4075_v34 }
 0xcc7   : > { %v1677_v33 = vsub.f32 %v1672_v29, %v1676_v32  ;;  %v1790_v32 = vperm.slane %v4100_v55, 2  ;;  %v3033_v55 = vld [vmem:[%s4544_s6 + $0x20] sm:$0xff] }
 0xcc8   : > { %2010 = vmatpush.msra.mxu2 %v3033_v55 }
 0xcc9   : > { %v1678_v35 = vmul.f32 %v1677_v33, %v1677_v33 }
 0xccb   : > { %v1679_v36 = vsel %vm812_vm0, %v1678_v35, 0.0 }
 0xccc   : > { %1680 = vadd.xlane.f32.xlu0 %v1679_v36  ;;  %v1792_v36 = vperm.slane %v4105_v58, 2 }
 0xd3f   : > { %v1681_v42 = vpop.xlane.xlu0 %1680 }
 0xd40   : > { %v1682_v44 = vmul.f32 %v1681_v42, %v4075_v34 }
 0xd42   : > { %v1683_v46 = vadd.f32 1e-05, %v1682_v44 }
 0xd44   : > { %3286 = vrsqrt.f32 %v1683_v46  ;;  %vm1690_vm9 = vweird.f32 %v1683_v46 }
 0xd4a   : > { %v3287_v48 = vpop.eup %3286 }
 0xd4b   : > { %v1685_v49 = vmul.f32 %v3287_v48, %v1683_v46  ;;  %vm1691_vm8 = vweird.f32 %v3287_v48 }
 0xd4c   : > { %vm1692_vm10 = vmor %vm1690_vm9, %vm1691_vm8 }
 0xd4d   : > { %v1686_v50 = vmul.f32 %v3287_v48, %v1685_v49 }
 0xd4f   : > { %v1687_v51 = vmul.f32 0.5, %v1686_v50 }
 0xd51   : > { %v1688_v52 = vsub.f32 1.5, %v1687_v51 }
 0xd53   : > { %v1689_v53 = vmul.f32 %v3287_v48, %v1688_v52 }
 0xd55   : > { %v1693_v56 = vsel %vm1692_vm10, %v3287_v48, %v1689_v53 }
 0xd56   : > { %v1694_v57 = vmul.f32 %v1693_v56, %v1677_v33 }
 0xd58   : > { %v1696_v60 = vmul.f32 %v1695_v54, %v1694_v57 }
 0xd5a   : > { %v1698_v61 = vadd.f32 %v1697_v59, %v1696_v60 }
 0xd5c   : > { %3024 = vmatmul.msk.f32.vlgmr.msrb.gmra.mxu0 %vm812_vm0, %v1698_v61 }
 0xdd9   : > { %v1727_v5 = vpop.f32.mrf.mxu0 }
 0xdda   : > { %v1728_v6 = vadd.f32 %v3241_v2, %v1727_v5 }
 0xddc   : > { %v1730_v8 = vmax.f32 %v1728_v6, 0.0 }
 0xdde   : > { %3025 = vmatmul.msk.f32.vlgmr.msrb.gmra.mxu2 %vm1743_vm11, %v1730_v8 }
 0xe61   : > { %v1764_v10 = vpop.f32.mrf.mxu2 }
 0xe62   : > { %v1765_v11 = vadd.f32 %v3242_v9, %v1764_v10 }
 0xe64   : > { %v1767_v7 = vadd.f32 %v1765_v11, %v1698_v61 }
 0xe66   : > { %v1768_v13 = vsel %vm812_vm0, %v1767_v7, 0.0 }
 0xe67   : > { %1769 = vadd.xlane.f32.xlu1 %v1768_v13 }
 0xeda   : > { %v1770_v14 = vpop.xlane.xlu1 %1769 }
 0xedb   : > { %v1771_v15 = vmul.f32 %v1770_v14, %v4075_v34 }
 0xedd   : > { %v1772_v16 = vsub.f32 %v1767_v7, %v1771_v15 }
 0xedf   : > { %v1773_v19 = vmul.f32 %v1772_v16, %v1772_v16 }
 0xee1   : > { %v1774_v20 = vsel %vm812_vm0, %v1773_v19, 0.0 }
 0xee2   : > { %1775 = vadd.xlane.f32.xlu2 %v1774_v20 }
 0xf55   : > { %v1776_v23 = vpop.xlane.xlu2 %1775 }
 0xf56   : > { %v1777_v24 = vmul.f32 %v1776_v23, %v4075_v34 }
 0xf58   : > { %v1778_v25 = vadd.f32 1e-05, %v1777_v24 }
 0xf5a   : > { %3288 = vrsqrt.f32 %v1778_v25  ;;  %vm1785_vm13 = vweird.f32 %v1778_v25 }
 0xf60   : > { %v3289_v26 = vpop.eup %3288 }
 0xf61   : > { %v1780_v27 = vmul.f32 %v3289_v26, %v1778_v25  ;;  %vm1786_vm12 = vweird.f32 %v3289_v26 }
 0xf62   : > { %vm1787_vm14 = vmor %vm1785_vm13, %vm1786_vm12 }
 0xf63   : > { %v1781_v28 = vmul.f32 %v3289_v26, %v1780_v27 }
 0xf65   : > { %v1782_v29 = vmul.f32 0.5, %v1781_v28 }
 0xf67   : > { %v1783_v30 = vsub.f32 1.5, %v1782_v29 }
 0xf69   : > { %v1784_v31 = vmul.f32 %v3289_v26, %v1783_v30 }
 0xf6b   : > { %v1788_v33 = vsel %vm1787_vm14, %v3289_v26, %v1784_v31 }
 0xf6c   : > { %v1789_v35 = vmul.f32 %v1788_v33, %v1772_v16 }
 0xf6e   : > { %v1791_v37 = vmul.f32 %v1790_v32, %v1789_v35 }
 0xf70   : > { %v4224_v38 = vadd.f32 %v1792_v36, %v1791_v37 }
 0xf72   : > { %3032 = vmatmul.msk.f32.vlgmr.msrb.gmra.mxu1 %vm812_vm0, %v4224_v38 }
 0xfef   : > { %v1828_v39 = vpop.f32.mrf.mxu1 }
 0xff0   : > { %v4228_v0 = vadd.f32 %v3243_v4, %v1828_v39  ;;  %v3034_v39 = vld [vmem:[%s4544_s6 + $0x28] sm:$0xff] }
 0xff2   : > { %1837 = vrot.lane.b32.xlu0 %v4228_v0, %s4504_s10 }
 0xffa   : > { %1902 = vrot.lane.b32.xlu0 %v4228_v0, %s4505_s13 }
0x1002   : > { %2108 = vrot.lane.b32.xlu0 %v4228_v0, %s4552_s15 }
0x100a   : > { %2015 = vrot.lane.b32.xlu0 %v4228_v0, %s4553_s4 }
0x1064   : > { %v1838_v58 = vpop.permute.xlu0 %1837 }
0x1065   : > { %3037 = vmatpush.xpose.msk.msra.mxu3 %vm843_vm1, %v1838_v58  ;;  %v3035_v58 = vld [vmem:[%s4544_s6 + $0x30] sm:$0xff] }
0x1068   : > { %3038 = vmatmul.msk.f32.vlgmr.msra.gmra.mxu3 %vm843_vm1, %v4228_v0 }
0x106c   : > { %v1903_v40 = vpop.permute.xlu0 %1902 }
0x1074   : > { %v2109_v41 = vpop.permute.xlu0 %2108 }
0x1075   : > { %3049 = vmatpush.xpose.msk.msrb.mxu2 %vm843_vm1, %v2109_v41 }
0x107c   : > { %v2016_v60 = vpop.permute.xlu0 %2015 }
0x10eb   : > { %v1860_v42 = vpop.f32.mrf.mxu3 }
0x10ec   : > { %v1863_v44 = vmul.f32 0.35355338, %v1860_v42 }
0x10ee   : > { %v1864_v45 = vadd.f32 %v1863_v44, %v4024_v18 }
0x10f0   : > { %v1865_v46 = vsel %vm843_vm1, %v1864_v45, -inf }
0x10f1   : > { %1866 = vmax.xlane.f32.xlu1 %v1865_v46 }
0x110a   : > { %1876 = vrot.lane.b32.xlu1 %v4228_v0, %s4554_s17  ;;  %s4560_s17 = smov 40  }
0x1112   : > { %2017 = vrot.lane.b32.xlu1 %v4228_v0, %s4555_s0 }
0x1164   : > { %v1867_v47 = vpop.xlane.xlu1 %1866 }
0x1165   : > { %v1868_v48 = vsub.f32 %v1864_v45, %v1867_v47  ;;  %v3036_v45 = vld [vmem:[%s4544_s6 + $0x38] sm:$0xff] }
0x1167   : > { %v1869_v49 = vmul.f32 1.442695, %v1868_v48 }
0x1169   : > { %3290 = vpow2.f32 %v1869_v49 }
0x116f   : > { %v3291_v50 = vpop.eup %3290 }
0x1170   : > { %v1871_v51 = vsel %vm843_vm1, %v3291_v50, 0.0 }
0x1171   : > { %1872 = vadd.xlane.f32.xlu2 %v1871_v51  ;;  %v3244_v51 = vld [vmem:[%s4545_s7 + $0x1] ss:$0 sm:$0xff]  ;;  %s4563_s7 = sld [smem:[#allocation42_spill]] }
0x117c   : > { %v1877_v52 = vpop.permute.xlu1 %1876 }
0x117d   : > { %1897 = vmatpush.msra.mxu0 %v1877_v52 }
0x117f   : > { %1987 = vmatpush.msrb.mxu0 %v3034_v39 }
0x1184   : > { %v2018_v59 = vpop.permute.xlu1 %2017 }
0x1189   : > { %1904 = vrot.lane.b32.xlu2 %v4228_v0, %s4556_s5 }
0x1191   : > { %2106 = vrot.lane.b32.xlu2 %v4228_v0, %s4557_s12 }
0x11e4   : > { %v1873_v53 = vpop.xlane.xlu2 %1872 }
0x11e5   : > { %3292 = vrcp.f32 %v1873_v53 }
0x11eb   : > { %v3293_v54 = vpop.eup %3292 }
0x11ec   : > { %v1875_v56 = vmul.f32 %v3293_v54, %v3291_v50  ;;  %v1905_v57 = vpop.permute.xlu2 %1904 }
0x11ed   : > { %3040 = vmatpush.xpose.msk.msra.mxu1 %vm843_vm1, %v1905_v57 }
0x11ee   : > { %3039 = vmatmul.msk.f32.vlgmr.msra.gmra.mxu0 %vm843_vm1, %v1875_v56 }
0x11ef   : > { %2100 = vmatpush.msra.mxu0 %v3035_v58 }
0x11f0   : > { %3041 = vmatmul.msk.f32.vlgmr.msra.gmra.mxu1 %vm843_vm1, %v1903_v40 }
0x11f1   : > { %3045 = vmatpush.xpose.msk.msrb.mxu1 %vm843_vm1, %v2018_v59 }
0x11f4   : > { %v2107_v5 = vpop.permute.xlu2 %2106 }
0x11f8   : > { %3046 = vmatmul.msk.f32.vlgmr.msrb.gmra.mxu1 %vm843_vm1, %v2016_v60 }
0x126b   : > { %v1899_v61 = vpop.f32.mrf.mxu0 }
0x126c   : > { %3044 = vmatmul.msk.f32.vlgmr.msra.gmra.mxu2 %vm843_vm1, %v1899_v61 }
0x126d   : > { %v1927_v62 = vpop.f32.mrf.mxu1 }
0x126e   : > { %v1930_v63 = vmul.f32 0.35355338, %v1927_v62 }
0x1270   : > { %v1931_v1 = vadd.f32 %v1930_v63, %v4024_v18 }
0x1272   : > { %v1932_v2 = vsel %vm843_vm1, %v1931_v1, -inf }
0x1273   : > { %1933 = vmax.xlane.f32.xlu2 %v1932_v2  ;;  %v2266_v2 = vld [vmem:[#allocation10 + $0x30] sm:$0xff] }
0x1274   : > { %3050 = vmatmul.msk.f32.vlgmr.msrb.gmra.mxu2 %vm843_vm1, %v2107_v5  ;;  %v2265_v5 = vld [vmem:[#allocation10 + $0x28] sm:$0xff] }
0x1275   : > { %v2040_v6 = vpop.f32.mrf.mxu1 }
0x1276   : > { %v2043_v8 = vmul.f32 0.35355338, %v2040_v6  ;;  %v2264_v6 = vld [vmem:[#allocation10 + $0x20] sm:$0xff] }
0x1278   : > { %v2044_v9 = vadd.f32 %v2043_v8, %v4024_v18  ;;  %v3056_v8 = vld [vmem:[%s4468_s8 + $0x30] sm:$0xff] }
0x127a   : > { %v2045_v10 = vsel %vm843_vm1, %v2044_v9, -inf }
0x127b   : > { %2046 = vmax.xlane.f32.xlu1 %v2045_v10  ;;  %v3054_v10 = vld [vmem:[%s4468_s8 + $0x20] sm:$0xff] }
0x12e6   : > { %v1934_v11 = vpop.xlane.xlu2 %1933 }
0x12e7   : > { %v1935_v7 = vsub.f32 %v1931_v1, %v1934_v11  ;;  %v2267_v1 = vld [vmem:[#allocation10 + $0x38] sm:$0xff] }
0x12e8   : > { %2285 = vmatpush.msra.mxu2 %v2267_v1 }
0x12e9   : > { %v1936_v13 = vmul.f32 1.442695, %v1935_v7 }
0x12ea   : > { %2286 = vmatpush.msra.mxu2 %v2266_v2 }
0x12eb   : > { %3294 = vpow2.f32 %v1936_v13 }
0x12ec   : > { %2287 = vmatpush.msra.mxu2 %v2265_v5 }
0x12ee   : > { %v2047_v14 = vpop.xlane.xlu1 %2046  ;;  %2288 = vmatpush.msra.mxu2 %v2264_v6 }
0x12ef   : > { %v2048_v15 = vsub.f32 %v2044_v9, %v2047_v14  ;;  %v2012_v16 = vpop.f32.mrf.mxu2  ;;  %3059 = vmatmul.msk.f32.vlgmr.msra.gmra.mxu2 %vm812_vm0, %v4080_v43  ;;  %v3055_v9 = vld [vmem:[%s4468_s8 + $0x28] sm:$0xff] }
0x12f1   : > { %v3295_v19 = vpop.eup %3294  ;;  %v2049_v20 = vmul.f32 1.442695, %v2048_v15 }
0x12f2   : > { %v1938_v21 = vsel %vm843_vm1, %v3295_v19, 0.0 }
0x12f3   : > { %3296 = vpow2.f32 %v2049_v20  ;;  %1939 = vadd.xlane.f32.xlu2 %v1938_v21 }
0x12f7   : > { %v2131_v3 = vpop.f32.mrf.mxu2 }
0x12f8   : > { %v2134_v22 = vmul.f32 0.35355338, %v2131_v3  ;;  %v4323_v3 = vld [vmem:[%s4547_s25 + $0x4] sm:$0x7] }
0x12f9   : > { %v3297_v17 = vpop.eup %3296 }
0x12fa   : > { %v2051_v23 = vsel %vm843_vm1, %v3297_v17, 0.0  ;;  %v2135_v24 = vadd.f32 %v2134_v22, %v4024_v18 }
0x12fb   : > { %2052 = vadd.xlane.f32.xlu1 %v2051_v23 }
0x12fc   : > { %v2136_v25 = vsel %vm843_vm1, %v2135_v24, -inf }
0x12fd   : > { %2137 = vmax.xlane.f32.xlu0 %v2136_v25 }
0x1311   : > { %1943 = vrot.lane.b32.xlu0 %v4228_v0, %s4558_s11  ;;  %s4562_s11 = smov 96  }
0x1314   : > { %2056 = vrot.lane.b32.xlu1 %v4228_v0, %s4559_s9  ;;  %s3089_s9 = sshll.u32 %s3836_s27, 3  ;;  %s2791_s27 = scalar_lea.sflag [#allocation4], %s3950_s20 }
0x1366   : > { %v1940_v29 = vpop.xlane.xlu2 %1939 }
0x136e   : > { %v2053_v18 = vpop.xlane.xlu1 %2052 }
0x1370   : > { %v2138_v26 = vpop.xlane.xlu0 %2137 }
0x1371   : > { %v2139_v27 = vsub.f32 %v2135_v24, %v2138_v26  ;;  %v2228_v24 = vperm.slane %v4323_v3, 0 }
0x1373   : > { %v2140_v28 = vmul.f32 1.442695, %v2139_v27  ;;  %v3245_v27 = vld [vmem:[#allocation11 + $0x1] ss:$0 sm:$0xff] }
0x1375   : > { %3298 = vpow2.f32 %v2140_v28  ;;  %v2290_v28 = vpop.f32.mrf.mxu2 }
0x1376   : > { %3300 = vrcp.f32 %v1940_v29  ;;  %v4331_v29 = vadd.f32 %v3245_v27, %v2290_v28 }
0x1377   : > { %3302 = vrcp.f32 %v2053_v18 }
0x137b   : > { %v3299_v30 = vpop.eup %3298 }
0x137c   : > { %v2142_v31 = vsel %vm843_vm1, %v3299_v30, 0.0  ;;  %v3301_v32 = vpop.eup %3300 }
0x137d   : > { %2143 = vadd.xlane.f32.xlu2 %v2142_v31  ;;  %v1942_v33 = vmul.f32 %v3301_v32, %v3295_v19  ;;  %v3303_v37 = vpop.eup %3302  ;;  %v4318_v19 = vld [vmem:[%s4546_s18 + $0x4] sm:$0x7] }
0x137e   : > { %v2055_v4 = vmul.f32 %v3303_v37, %v3297_v17  ;;  %v2226_v22 = vperm.slane %v4318_v19, 0 }
0x1383   : > { %v1944_v35 = vpop.permute.xlu0 %1943 }
0x1384   : > { %1964 = vmatpush.msrb.mxu3 %v1944_v35 }
0x1385   : > { %3042 = vmatmul.msk.f32.vlgmr.msrb.gmra.mxu3 %vm843_vm1, %v1942_v33 }
0x1386   : > { %v2057_v36 = vpop.permute.xlu1 %2056 }
0x1387   : > { %2077 = vmatpush.msra.mxu3 %v2057_v36 }
0x1389   : > { %2191 = vmatpush.msrb.mxu3 %v3036_v45 }
0x138d   : > { %3047 = vmatmul.msk.f32.vlgmr.msra.gmra.mxu3 %vm843_vm1, %v2055_v4 }
0x1395   : > { %2147 = vrot.lane.b32.xlu2 %v4228_v0, %s4560_s17 }
0x13f0   : > { %v2144_v55 = vpop.xlane.xlu2 %2143 }
0x13f1   : > { %3304 = vrcp.f32 %v2144_v55 }
0x13f7   : > { %v3305_v40 = vpop.eup %3304 }
0x13f8   : > { %v2146_v41 = vmul.f32 %v3305_v40, %v3299_v30  ;;  %v2148_v42 = vpop.permute.xlu2 %2147  ;;  %v3246_v30 = vld [vmem:[#allocation8 + $0x1] ss:$0 sm:$0xff] }
0x13f9   : > { %2168 = vmatpush.msra.mxu1 %v2148_v42 }
0x13fa   : > { %3051 = vmatmul.msk.f32.vlgmr.msra.gmra.mxu1 %vm843_vm1, %v2146_v41 }
0x13fb   : > { %3060 = vmatpush.xpose.msk.msrb.mxu1 %vm843_vm1, %v4331_v29 }
0x1408   : > { %v1966_v44 = vpop.f32.mrf.mxu3 }
0x1409   : > { %3043 = vmatmul.msk.f32.vlgmr.msrb.gmra.mxu0 %vm843_vm1, %v1966_v44 }
0x1410   : > { %v2079_v0 = vpop.f32.mrf.mxu3 }
0x1411   : > { %3048 = vmatmul.msk.f32.vlgmr.msra.gmra.mxu0 %vm843_vm1, %v2079_v0 }
0x1477   : > { %v2170_v46 = vpop.f32.mrf.mxu1 }
0x1478   : > { %3052 = vmatmul.msk.f32.vlgmr.msrb.gmra.mxu3 %vm843_vm1, %v2170_v46 }
0x1486   : > { %v1989_v47 = vpop.f32.mrf.mxu0 }
0x1487   : > { %v2013_v49 = vadd.f32 %v2012_v16, %v1989_v47 }
0x148e   : > { %v2102_v48 = vpop.f32.mrf.mxu0 }
0x148f   : > { %v2105_v50 = vadd.f32 %v2102_v48, %v2013_v49 }
0x14fb   : > { %v2193_v52 = vpop.f32.mrf.mxu3 }
0x14fc   : > { %v2196_v53 = vadd.f32 %v2193_v52, %v2105_v50  ;;  %v2294_v50 = vld [vmem:[#allocation13 + $0x20] sm:$0xff] }
0x14fe   : > { %v2202_v54 = vadd.f32 %v3244_v51, %v2196_v53 }
0x1500   : > { %v2203_v56 = vadd.f32 %v2202_v54, %v4224_v38  ;;  %v3057_v38 = vld [vmem:[%s4468_s8 + $0x38] sm:$0xff] }
0x1501   : > { %2255 = vmatpush.msrb.mxu0 %v3057_v38 }
0x1502   : > { %v2204_v57 = vsel %vm812_vm0, %v2203_v56, 0.0 }
0x1503   : > { %2205 = vadd.xlane.f32.xlu0 %v2204_v57  ;;  %2256 = vmatpush.msrb.mxu0 %v3056_v8 }
0x1505   : > { %2257 = vmatpush.msrb.mxu0 %v3055_v9 }
0x1507   : > { %2258 = vmatpush.msrb.mxu0 %v3054_v10 }
0x1576   : > { %v2206_v59 = vpop.xlane.xlu0 %2205 }
0x1577   : > { %v2207_v60 = vmul.f32 %v2206_v59, %v4075_v34 }
0x1579   : > { %v2208_v61 = vsub.f32 %v2203_v56, %v2207_v60 }
0x157b   : > { %v2209_v62 = vmul.f32 %v2208_v61, %v2208_v61 }
0x157d   : > { %v2210_v63 = vsel %vm812_vm0, %v2209_v62, 0.0 }
0x157e   : > { %2211 = vadd.xlane.f32.xlu1 %v2210_v63 }
0x1597   : > { %2365 = vrot.lane.b32.xlu1 %v4331_v29, %s4561_s2 }
0x15f1   : > { %v2212_v43 = vpop.xlane.xlu1 %2211 }
0x15f2   : > { %v2213_v11 = vmul.f32 %v2212_v43, %v4075_v34 }
0x15f4   : > { %v2214_v7 = vadd.f32 1e-05, %v2213_v11 }
0x15f6   : > { %3306 = vrsqrt.f32 %v2214_v7  ;;  %vm2221_vm2 = vweird.f32 %v2214_v7 }
0x15fc   : > { %v3307_v13 = vpop.eup %3306 }
0x15fd   : > { %v2216_v14 = vmul.f32 %v3307_v13, %v2214_v7  ;;  %vm2222_vm15 = vweird.f32 %v3307_v13 }
0x15fe   : > { %vm2223_vm3 = vmor %vm2221_vm2, %vm2222_vm15 }
0x15ff   : > { %v2217_v15 = vmul.f32 %v3307_v13, %v2216_v14 }
0x1601   : > { %v2218_v16 = vmul.f32 0.5, %v2217_v15 }
0x1603   : > { %v2219_v20 = vsub.f32 1.5, %v2218_v16 }
0x1605   : > { %v2220_v21 = vmul.f32 %v3307_v13, %v2219_v20 }
0x1607   : > { %v2224_v17 = vsel %vm2223_vm3, %v3307_v13, %v2220_v21 }
0x1608   : > { %v2225_v23 = vmul.f32 %v2224_v17, %v2208_v61 }
0x1609   : > { %v2366_v32 = vpop.permute.xlu1 %2365 }
0x160a   : > { %v2227_v25 = vmul.f32 %v2226_v22, %v2225_v23  ;;  %3063 = vmatpush.xpose.msk.msra.mxu0 %vm843_vm1, %v2366_v32 }
0x160c   : > { %v4327_v26 = vadd.f32 %v2228_v24, %v2227_v25 }
0x160e   : > { %3058 = vmatmul.msk.f32.vlgmr.msrb.gmra.mxu0 %vm812_vm0, %v4327_v26 }
0x168b   : > { %v2260_v31 = vpop.f32.mrf.mxu0 }
0x168c   : > { %v2261_v18 = vadd.f32 %v3246_v30, %v2260_v31  ;;  %v2295_v31 = vld [vmem:[#allocation13 + $0x28] sm:$0xff] }
0x168d   : > { %2448 = vmatpush.msra.mxu1 %v2295_v31 }
0x168e   : > { %2567 = vrot.lane.b32.xlu1 %v2261_v18, %s4557_s12  ;;  %3061 = vmatmul.msk.f32.vlgmr.msrb.gmra.mxu1 %vm843_vm1, %v2261_v18 }
0x1700   : > { %v2568_v54 = vpop.permute.xlu1 %2567 }
0x170b   : > { %v2321_v33 = vpop.f32.mrf.mxu1 }
0x170c   : > { %v2324_v35 = vmul.f32 0.35355338, %v2321_v33 }
0x170e   : > { %v2325_v36 = vadd.f32 %v2324_v35, %v4128_v12 }
0x1710   : > { %v2326_v37 = vsel %vm843_vm1, %v2325_v36, -inf }
0x1711   : > { %2327 = vmax.xlane.f32.xlu2 %v2326_v37 }
0x1729   : > { %2363 = vrot.lane.b32.xlu2 %v2261_v18, %s4561_s2  ;;  %s2801_s2 = scalar_lea.hbm %s4563_s7, %s3089_s9  ;;  %s3618_s9 = scalar_lea.hbm %s4563_s7, 16 }
0x1731   : > { %2476 = vrot.lane.b32.xlu2 %v2261_v18, %s4553_s4  ;;  %v2296_v18 = vld [vmem:[#allocation13 + $0x30] sm:$0xff] }
0x1732   : > { %2561 = vmatpush.msrb.mxu1 %v2296_v18 }
0x1784   : > { %v2328_v4 = vpop.xlane.xlu2 %2327 }
0x1785   : > { %v2329_v39 = vsub.f32 %v2325_v36, %v2328_v4 }
0x1787   : > { %v2330_v55 = vmul.f32 1.442695, %v2329_v39  ;;  %v2297_v39 = vld [vmem:[#allocation13 + $0x38] sm:$0xff] }
0x1789   : > { %3308 = vpow2.f32 %v2330_v55 }
0x178c   : > { %v2364_v58 = vpop.permute.xlu2 %2363 }
0x178d   : > { %3064 = vmatmul.msk.f32.vlgmr.msra.gmra.mxu0 %vm843_vm1, %v2364_v58 }
0x178f   : > { %v3309_v40 = vpop.eup %3308 }
0x1790   : > { %v2332_v41 = vsel %vm843_vm1, %v3309_v40, 0.0 }
0x1791   : > { %2333 = vadd.xlane.f32.xlu0 %v2332_v41 }
0x1794   : > { %v2477_v53 = vpop.permute.xlu2 %2476 }
0x17a5   : > { %2337 = vrot.lane.b32.xlu0 %v4331_v29, %s4562_s11  ;;  %s4564_s11 = sshll.u32 %s3950_s20, 3 }
0x17ad   : > { %2569 = vrot.lane.b32.xlu0 %v4331_v29, %s4557_s12 }
0x17b5   : > { %2478 = vrot.lane.b32.xlu0 %v4331_v29, %s4553_s4 }
0x1804   : > { %v2334_v44 = vpop.xlane.xlu0 %2333 }
0x1805   : > { %3310 = vrcp.f32 %v2334_v44 }
0x180a   : > { %v2388_v42 = vpop.f32.mrf.mxu0 }
0x180b   : > { %v2391_v0 = vmul.f32 0.35355338, %v2388_v42  ;;  %v3311_v47 = vpop.eup %3310  ;;  %v3247_v42 = vld [vmem:[#allocation14 + $0x1] ss:$0 sm:$0xff] }
0x180c   : > { %v2336_v48 = vmul.f32 %v3311_v47, %v3309_v40 }
0x180d   : > { %v2392_v45 = vadd.f32 %v2391_v0, %v4128_v12 }
0x180f   : > { %v2393_v46 = vsel %vm843_vm1, %v2392_v45, -inf }
0x1810   : > { %2394 = vmax.xlane.f32.xlu1 %v2393_v46 }
0x1817   : > { %v2338_v49 = vpop.permute.xlu0 %2337 }
0x1818   : > { %2358 = vmatpush.msra.mxu3 %v2338_v49 }
0x1819   : > { %3062 = vmatmul.msk.f32.vlgmr.msra.gmra.mxu3 %vm843_vm1, %v2336_v48 }
0x181a   : > { %2471 = vmatpush.msrb.mxu3 %v2294_v50 }
0x181f   : > { %v2570_v51 = vpop.permute.xlu0 %2569 }
0x1820   : > { %3072 = vmatpush.xpose.msk.msra.mxu3 %vm843_vm1, %v2570_v51 }
0x1827   : > { %v2479_v52 = vpop.permute.xlu0 %2478 }
0x1828   : > { %3068 = vmatpush.xpose.msk.msrb.mxu0 %vm843_vm1, %v2479_v52 }
0x182b   : > { %3069 = vmatmul.msk.f32.vlgmr.msrb.gmra.mxu0 %vm843_vm1, %v2477_v53  ;;  %v2695_v53 = vld [vmem:[#allocation16 + $0x38] sm:$0xff] }
0x1883   : > { %v2395_v56 = vpop.xlane.xlu1 %2394 }
0x1884   : > { %v2396_v57 = vsub.f32 %v2392_v45, %v2395_v56  ;;  %v2693_v56 = vld [vmem:[#allocation16 + $0x28] sm:$0xff] }
0x1886   : > { %v2397_v59 = vmul.f32 1.442695, %v2396_v57  ;;  %v2692_v57 = vld [vmem:[#allocation16 + $0x20] sm:$0xff] }
0x1888   : > { %3312 = vpow2.f32 %v2397_v59  ;;  %v3084_v59 = vld [vmem:[%s4549_s21 + $0x70] sm:$0xff] }
0x188e   : > { %v3313_v60 = vpop.eup %3312 }
0x188f   : > { %v2399_v61 = vsel %vm843_vm1, %v3313_v60, 0.0 }
0x1890   : > { %2400 = vadd.xlane.f32.xlu1 %v2399_v61 }
0x189c   : > { %v2360_v62 = vpop.f32.mrf.mxu3 }
0x189d   : > { %3067 = vmatmul.msk.f32.vlgmr.msrb.gmra.mxu3 %vm843_vm1, %v2360_v62 }
0x18a5   : > { %3073 = vmatmul.msk.f32.vlgmr.msra.gmra.mxu3 %vm843_vm1, %v2568_v54  ;;  %v2694_v54 = vld [vmem:[#allocation16 + $0x30] sm:$0xff] }
0x18a8   : > { %v2501_v63 = vpop.f32.mrf.mxu0 }
0x18a9   : > { %v2504_v1 = vmul.f32 0.35355338, %v2501_v63  ;;  %v3082_v63 = vld [vmem:[%s4549_s21 + $0x60] sm:$0xff] }
0x18ab   : > { %v2505_v2 = vadd.f32 %v2504_v1, %v4128_v12 }
0x18ad   : > { %v2506_v5 = vsel %vm843_vm1, %v2505_v2, -inf }
0x18ae   : > { %2507 = vmax.xlane.f32.xlu0 %v2506_v5 }
0x1903   : > { %v2401_v15 = vpop.xlane.xlu1 %2400 }
0x1920   : > { %v2473_v6 = vpop.f32.mrf.mxu3 }
0x1921   : > { %v2508_v38 = vpop.xlane.xlu0 %2507 }
0x1922   : > { %v2509_v8 = vsub.f32 %v2505_v2, %v2508_v38  ;;  %v3081_v2 = vld [vmem:[%s4549_s21 + $0x58] sm:$0xff] }
0x1924   : > { %v2510_v9 = vmul.f32 1.442695, %v2509_v8 }
0x1926   : > { %3314 = vpow2.f32 %v2510_v9 }
0x1927   : > { %3316 = vrcp.f32 %v2401_v15 }
0x1928   : > { %v2592_v10 = vpop.f32.mrf.mxu3 }
0x1929   : > { %v2595_v43 = vmul.f32 0.35355338, %v2592_v10 }
0x192b   : > { %v2596_v11 = vadd.f32 %v2595_v43, %v4128_v12  ;;  %v2687_v43 = vperm.slane %v4318_v19, 1 }
0x192c   : > { %v3315_v7 = vpop.eup %3314 }
0x192d   : > { %v2512_v13 = vsel %vm843_vm1, %v3315_v7, 0.0  ;;  %v2597_v14 = vsel %vm843_vm1, %v2596_v11, -inf  ;;  %v3317_v22 = vpop.eup %3316 }
0x192e   : > { %2513 = vadd.xlane.f32.xlu0 %v2512_v13  ;;  %2598 = vmax.xlane.f32.xlu2 %v2597_v14  ;;  %v2403_v17 = vmul.f32 %v3317_v22, %v3313_v60  ;;  %v3083_v60 = vld [vmem:[%s4549_s21 + $0x68] sm:$0xff]  ;;  %v2689_v13 = vperm.slane %v4323_v3, 1  ;;  %v3248_v22 = vld [vmem:[%s4550_s3 + $0x1] ss:$0 sm:$0xff] }
0x1942   : > { %2517 = vrot.lane.b32.xlu0 %v4331_v29, %s4555_s0  ;;  %s2805_s0 = sshll.u32 %s2801_s2, 4  ;;  %s2806_s0 = int_to_ptr.hbm [resolvable:$true] %s2805_s0 }
0x1946   : > { %2404 = vrot.lane.b32.xlu2 %v4331_v29, %s4556_s5  ;;  %s3612_s5 = sshra.s32 %s2806_s0, 4  ;;  %s3613_s5 = int_to_ptr.hbm [resolvable:$true] %s3612_s5 }
0x1947   : > { %s3614_s12 = scalar_lea.hbm %s3613_s5, 8  ;;  %p3619_p7 = scmp.lt.s32.totalorder %s3613_s5, %s4563_s7 }
0x1948   : > { %p3615_p1 = scmp.ne.s32.totalorder %s3613_s5, %s3614_s12  ;;  %p3620_p8 = scmp.lt.s32.totalorder %s3618_s9, %s3614_s12 }
0x194a   : > { %p3616_p4 = pnand %p3615_p1, %p3919_p5  ;;  %p3621_p9 = por %p3620_p8, %p3619_p7 }
0x194c   : > { %p3617_p12 = pneg %p3616_p4 }
0x194e   : > { %p3622_p10 = pnand %p3621_p9, %p3617_p12 }
0x19a1   : > { %v2599_v16 = vpop.xlane.xlu2 %2598  ;;  %v2514_v12 = vpop.xlane.xlu0 %2513 }
0x19a2   : > { %v2600_v20 = vsub.f32 %v2596_v11, %v2599_v16  ;;  %v3080_v16 = vld [vmem:[%s4549_s21 + $0x50] sm:$0xff] }
0x19a4   : > { %v2601_v21 = vmul.f32 1.442695, %v2600_v20  ;;  %v3079_v20 = vld [vmem:[%s4549_s21 + $0x48] sm:$0xff] }
0x19a6   : > { %3318 = vpow2.f32 %v2601_v21  ;;  %v3078_v21 = vld [vmem:[%s4549_s21 + $0x40] sm:$0xff] }
0x19a7   : > { %3320 = vrcp.f32 %v2514_v12 }
0x19a9   : > { %v2405_v23 = vpop.permute.xlu2 %2404 }
0x19aa   : > { %2425 = vmatpush.msrb.mxu2 %v2405_v23 }
0x19ab   : > { %3065 = vmatmul.msk.f32.vlgmr.msrb.gmra.mxu2 %vm843_vm1, %v2403_v17 }
0x19ac   : > { %v3319_v24 = vpop.eup %3318 }
0x19ad   : > { %v2603_v25 = vsel %vm843_vm1, %v3319_v24, 0.0  ;;  %v3321_v27 = vpop.eup %3320 }
0x19ae   : > { %2604 = vadd.xlane.f32.xlu1 %v2603_v25  ;;  %v2516_v28 = vmul.f32 %v3321_v27, %v3315_v7 }
0x19b4   : > { %v2518_v30 = vpop.permute.xlu0 %2517 }
0x19b5   : > { %2538 = vmatpush.msra.mxu2 %v2518_v30 }
0x19b6   : > { %3070 = vmatmul.msk.f32.vlgmr.msra.gmra.mxu2 %vm843_vm1, %v2516_v28 }
0x19b7   : > { %2652 = vmatpush.msrb.mxu2 %v2297_v39 }
0x19c7   : > { %2608 = vrot.lane.b32.xlu1 %v4331_v29, %s4552_s15  ;;  %s789_s15 = scalar_lea.vmem [#allocation17], %s4564_s11 }
0x19c8   : > { %s2803_s4 = sshll.u32 %s789_s15, 4  ;;  %s2804_s4 = int_to_ptr.vmem [resolvable:$true] %s2803_s4 }
0x1a21   : > { %v2605_v32 = vpop.xlane.xlu1 %2604 }
0x1a22   : > { %3322 = vrcp.f32 %v2605_v32 }
0x1a28   : > { %v3323_v35 = vpop.eup %3322 }
0x1a29   : > { %v2607_v36 = vmul.f32 %v3323_v35, %v3319_v24  ;;  %v3249_v24 = vld [vmem:[%s4551_s28 + $0x1] ss:$0 sm:$0xff] }
0x1a2e   : > { %v2427_v33 = vpop.f32.mrf.mxu2 }
0x1a2f   : > { %3066 = vmatmul.msk.f32.vlgmr.msra.gmra.mxu1 %vm843_vm1, %v2427_v33 }
0x1a30   : > { %2716 = vmatpush.msra.mxu1 %v2695_v53 }
0x1a32   : > { %2717 = vmatpush.msra.mxu1 %v2694_v54 }
0x1a34   : > { %2718 = vmatpush.msra.mxu1 %v2693_v56 }
0x1a36   : > { %2719 = vmatpush.msra.mxu1 %v2692_v57 }
0x1a39   : > { %v2540_v37 = vpop.f32.mrf.mxu2  ;;  %v2609_v4 = vpop.permute.xlu1 %2608 }
0x1a3a   : > { %3071 = vmatmul.msk.f32.vlgmr.msrb.gmra.mxu1 %vm843_vm1, %v2540_v37  ;;  %2629 = vmatpush.msra.mxu0 %v2609_v4 }
0x1a3b   : > { %3074 = vmatmul.msk.f32.vlgmr.msra.gmra.mxu0 %vm843_vm1, %v2607_v36 }
0x1aac   : > { %v2450_v55 = vpop.f32.mrf.mxu1 }
0x1aad   : > { %v2474_v40 = vadd.f32 %v2473_v6, %v2450_v55 }
0x1ab7   : > { %v2563_v58 = vpop.f32.mrf.mxu1 }
0x1ab8   : > { %v2631_v29 = vpop.f32.mrf.mxu0  ;;  %v2566_v41 = vadd.f32 %v2563_v58, %v2474_v40 }
0x1ab9   : > { %3075 = vmatmul.msk.f32.vlgmr.msrb.gmra.mxu2 %vm843_vm1, %v2631_v29 }
0x1b3c   : > { %v2654_v44 = vpop.f32.mrf.mxu2 }
0x1b3d   : > { %v2657_v0 = vadd.f32 %v2654_v44, %v2566_v41 }
0x1b3f   : > { %v2663_v45 = vadd.f32 %v3247_v42, %v2657_v0  ;;  %v2785_v42 = vperm.slane %v4318_v19, 2  ;;  %v2787_v0 = vperm.slane %v4323_v3, 2 }
0x1b41   : > { %v2664_v46 = vadd.f32 %v2663_v45, %v4327_v26  ;;  %v3085_v26 = vld [vmem:[%s4549_s21 + $0x78] sm:$0xff] }
0x1b42   : > { %2750 = vmatpush.msrb.mxu3 %v3085_v26 }
0x1b43   : > { %v2665_v47 = vsel %vm812_vm0, %v2664_v46, 0.0 }
0x1b44   : > { %2666 = vadd.xlane.f32.xlu2 %v2665_v47  ;;  %2751 = vmatpush.msrb.mxu3 %v3084_v59 }
0x1b46   : > { %2752 = vmatpush.msrb.mxu3 %v3083_v60 }
0x1b48   : > { %2753 = vmatpush.msrb.mxu3 %v3082_v63 }
0x1b4a   : > { %2754 = vmatpush.msrb.mxu3 %v3081_v2 }
0x1b4c   : > { %2755 = vmatpush.msrb.mxu3 %v3080_v16 }
0x1b4e   : > { %2756 = vmatpush.msrb.mxu3 %v3079_v20 }
0x1b50   : > { %2757 = vmatpush.msrb.mxu3 %v3078_v21 }
0x1bb7   : > { %v2667_v48 = vpop.xlane.xlu2 %2666 }
0x1bb8   : > { %v2668_v49 = vmul.f32 %v2667_v48, %v4075_v34 }
0x1bba   : > { %v2669_v50 = vsub.f32 %v2664_v46, %v2668_v49 }
0x1bbc   : > { %v2670_v51 = vmul.f32 %v2669_v50, %v2669_v50 }
0x1bbe   : > { %v2671_v52 = vsel %vm812_vm0, %v2670_v51, 0.0 }
0x1bbf   : > { %2672 = vadd.xlane.f32.xlu0 %v2671_v52 }
0x1c32   : > { %v2673_v61 = vpop.xlane.xlu0 %2672 }
0x1c33   : > { %v2674_v62 = vmul.f32 %v2673_v61, %v4075_v34 }
0x1c35   : > { %v2675_v1 = vadd.f32 1e-05, %v2674_v62 }
0x1c37   : > { %3324 = vrsqrt.f32 %v2675_v1  ;;  %vm2682_vm4 = vweird.f32 %v2675_v1 }
0x1c3d   : > { %v3325_v5 = vpop.eup %3324 }
0x1c3e   : > { %v2677_v6 = vmul.f32 %v3325_v5, %v2675_v1  ;;  %vm2683_vm1 = vweird.f32 %v3325_v5 }
0x1c3f   : > { %vm2684_vm5 = vmor %vm2682_vm4, %vm2683_vm1 }
0x1c40   : > { %v2678_v38 = vmul.f32 %v3325_v5, %v2677_v6 }
0x1c42   : > { %v2679_v8 = vmul.f32 0.5, %v2678_v38 }
0x1c44   : > { %v2680_v9 = vsub.f32 1.5, %v2679_v8 }
0x1c46   : > { %v2681_v10 = vmul.f32 %v3325_v5, %v2680_v9 }
0x1c48   : > { %v2685_v11 = vsel %vm2684_vm5, %v3325_v5, %v2681_v10 }
0x1c49   : > { %v2686_v7 = vmul.f32 %v2685_v11, %v2669_v50 }
0x1c4b   : > { %v2688_v14 = vmul.f32 %v2687_v43, %v2686_v7 }
0x1c4d   : > { %v2690_v15 = vadd.f32 %v2689_v13, %v2688_v14 }
0x1c4f   : > { %3077 = vmatmul.msk.f32.vlgmr.msra.gmra.mxu1 %vm812_vm0, %v2690_v15 }
0x1ccc   : > { %v2721_v12 = vpop.f32.mrf.mxu1 }
0x1ccd   : > { %v2722_v17 = vadd.f32 %v3248_v22, %v2721_v12 }
0x1ccf   : > { %v2724_v23 = vmax.f32 %v2722_v17, 0.0 }
0x1cd1   : > { %3087 = vmatmul.msk.f32.vlgmr.msrb.gmra.mxu3 %vm1743_vm11, %v2724_v23 }
0x1d54   : > { %v2759_v25 = vpop.f32.mrf.mxu3 }
0x1d55   : > { %v2760_v27 = vadd.f32 %v3249_v24, %v2759_v25 }
0x1d57   : > { %v2762_v28 = vadd.f32 %v2760_v27, %v2690_v15 }
0x1d59   : > { %v2763_v30 = vsel %vm812_vm0, %v2762_v28, 0.0 }
0x1d5a   : > { %2764 = vadd.xlane.f32.xlu1 %v2763_v30 }
0x1dcd   : > { %v2765_v31 = vpop.xlane.xlu1 %2764 }
0x1dce   : > { %v2766_v18 = vmul.f32 %v2765_v31, %v4075_v34 }
0x1dd0   : > { %v2767_v32 = vsub.f32 %v2762_v28, %v2766_v18 }
0x1dd2   : > { %v2768_v33 = vmul.f32 %v2767_v32, %v2767_v32 }
0x1dd4   : > { %v2769_v35 = vsel %vm812_vm0, %v2768_v33, 0.0 }
0x1dd5   : > { %2770 = vadd.xlane.f32.xlu2 %v2769_v35 }
0x1e48   : > { %v2771_v36 = vpop.xlane.xlu2 %2770 }
0x1e49   : > { %v2772_v37 = vmul.f32 %v2771_v36, %v4075_v34 }
0x1e4b   : > { %v2773_v4 = vadd.f32 1e-05, %v2772_v37 }
0x1e4d   : > { %3326 = vrsqrt.f32 %v2773_v4  ;;  %vm2780_vm7 = vweird.f32 %v2773_v4 }
0x1e53   : > { %v3327_v39 = vpop.eup %3326 }
0x1e54   : > { %v2775_v29 = vmul.f32 %v3327_v39, %v2773_v4  ;;  %vm2781_vm6 = vweird.f32 %v3327_v39 }
0x1e55   : > { %vm2782_vm8 = vmor %vm2780_vm7, %vm2781_vm6 }
0x1e56   : > { %v2776_v55 = vmul.f32 %v3327_v39, %v2775_v29 }
0x1e58   : > { %v2777_v58 = vmul.f32 0.5, %v2776_v55 }
0x1e5a   : > { %v2778_v40 = vsub.f32 1.5, %v2777_v58 }
0x1e5c   : > { %v2779_v41 = vmul.f32 %v3327_v39, %v2778_v40 }
0x1e5e   : > { %v2783_v34 = vsel %vm2782_vm8, %v3327_v39, %v2779_v41 }
0x1e5f   : > { %v2784_v44 = vmul.f32 %v2783_v34, %v2767_v32 }
0x1e61   : > { %v2786_v45 = vmul.f32 %v2785_v42, %v2784_v44 }
0x1e63   : > { %v2788_v46 = vadd.f32 %v2787_v0, %v2786_v45 }
0x1e65   : > { %2789 = vst.msk [vmem:[%s789_s15] sm:$0xff] %vm812_vm0, %v2788_v46 }
0x1e66   : > { %3625 = shalt.err (!%p3622_p10)
}
0x1e67   : > { %3126 = dma.vmem_to_hbm [thread:$0]  (%p3919_p5), %s2804_s4, 128, %s2806_s0, %s2791_s27  }
0x1e68 PF: > { %s2817_s20 = sand.u32 1, %s3668_s1   ;;  %p4565_p13 = scmp.ge.s32.totalorder %s3680_s24, 2 }
0x1e69   : > { %s2818_s2 = scalar_lea.sflag [#allocation4], %s2817_s20 }
0x1e6a   : > { %p3158_p11 = pnand %p4565_p13, %p3923_p6 }
0x1e6c   : > { %p3159_p0 = pneg %p3158_p11 }
0x1e6e   : > { %3663 = dma.done.wait (%p3159_p0), %s2818_s2, 128  }
0x1e6f   : > { %3665 = vsyncadd (%p3159_p0), %s2818_s2, 4294967168  ;;  %p37_p2 = scmp.ge.s32.totalorder %s3893_s14, 4   ;;  %s4566_s1 = smov %s3672_s22 }
0x1e70   : > { %s4567_s22 = smov %s3676_s23  ;;  %s4568_s23 = smov %s3904_s26 }
0x1e71   : > { %s4569_s24 = smov %s3893_s14  ;;  %39 = sbr.rel (!%p37_p2) target bundleno = 29 (0x1d), region = 196 }
0x1e76   :  { %2824 = vsyncpa [#allocation3], 1 }
0x1e77   :  { %2826 = vsyncpa [#allocation3 + $0x1], 1 }
0x1e78   :  { %2827 = vsyncpa [#allocation6], 1 }
0x1e79   :  { %2828 = vsyncpa [#allocation9], 1 }
0x1e7a   :  { %2829 = vsyncpa [#allocation12], 1 }
0x1e7b   :  { %2830 = vsyncpa [#allocation15], 1 }
0x1e7c   :  { %2831 = vsyncpa [#allocation4], 1 }
0x1e7d   :  { %2833 = vsyncpa [#allocation4 + $0x1], 1 }

</bundles_post_ra>
